<compile_context>
chip_gen: v7x
topology: tpu7x:2x2x1
jax: 0.10.0
libtpu: 0.0.40
codegen_flags: <defaults>
</compile_context>

<pallas_src>
import jax
import jax.numpy as jnp
from jax.experimental import pallas as pl
from jax.experimental.pallas import tpu as pltpu

# ----------------------------- model dimensions -----------------------------
HIDDEN = 50                     # GRU hidden size
HPAD = 128                      # lane-padded hidden width (cols 50: stay zero)
PRIV = 41                       # priviliged_size
EXT_LAT = 4 * 24                # 96  exteroceptive latent size
PRIV_LAT = 24
PROPRIO = 3 + 3 + 3 + 3 + 12 + 12 + 3 * 12 + 2 * 12 + 2 * 12 + 8   # 128
EXT_RAW = 4 * 52                # 208 raw exteroceptive input
GB_OUT = EXT_LAT + PRIV_LAT     # 120
MLP_IN = PROPRIO + GB_OUT       # 248
ACT = 12                        # actor output
RECON = EXT_RAW + PRIV          # 249

# lane-aligned padded sizes (padded weight rows/cols are zero -> exact math)
EXT_PAD = 256                   # recon extero head 208 -> 256
ACT_PAD = 128                   # action 12 -> 128
PRIV_PAD = 128                  # priv recon 41 -> 128
GATE = 128                      # per-gate padded width inside fused GRU matmuls
BIAS_W = 640                    # bias slab width (max layer width: fused heads)
MAX_TB = 256                    # batch tile cap (raise to 512 on v6e if desired)

# TODO(synk): teacher_policy.actor / heights_encoder layer sizes are not defined
# in the source file; assumed ge: 208->128->96 (ELU) and actor: 248->256->160->
# 128->12 (ELU between hidden layers), same as the previous version.
PARAM_SHAPES = [
    # ge (heights encoder)
    ("ge_w1", (EXT_RAW, 128)), ("ge_b1", (1, 128)),
    ("ge_w2", (128, EXT_LAT)), ("ge_b2", (1, EXT_LAT)),
    # GRU layer 0 (input 224), PyTorch gate order [r, z, n] along columns
    ("gru_wih0", (PROPRIO + EXT_LAT, 3 * HIDDEN)), ("gru_whh0", (HIDDEN, 3 * HIDDEN)),
    ("gru_bih0", (1, 3 * HIDDEN)), ("gru_bhh0", (1, 3 * HIDDEN)),
    # GRU layer 1 (input 50)
    ("gru_wih1", (HIDDEN, 3 * HIDDEN)), ("gru_whh1", (HIDDEN, 3 * HIDDEN)),
    ("gru_bih1", (1, 3 * HIDDEN)), ("gru_bhh1", (1, 3 * HIDDEN)),
    # belief encoder ga: 50 -> 64 -> 64 -> 96
    ("enc_ga_w1", (HIDDEN, 64)), ("enc_ga_b1", (1, 64)),
    ("enc_ga_w2", (64, 64)), ("enc_ga_b2", (1, 64)),
    ("enc_ga_w3", (64, EXT_LAT)), ("enc_ga_b3", (1, EXT_LAT)),
    # belief encoder gb: 50 -> 64 -> 64 -> 120
    ("enc_gb_w1", (HIDDEN, 64)), ("enc_gb_b1", (1, 64)),
    ("enc_gb_w2", (64, 64)), ("enc_gb_b2", (1, 64)),
    ("enc_gb_w3", (64, GB_OUT)), ("enc_gb_b3", (1, GB_OUT)),
    # belief decoder ga: 50 -> 64 -> 128 -> 208
    ("dec_ga_w1", (HIDDEN, 64)), ("dec_ga_b1", (1, 64)),
    ("dec_ga_w2", (64, 128)), ("dec_ga_b2", (1, 128)),
    ("dec_ga_w3", (128, EXT_RAW)), ("dec_ga_b3", (1, EXT_RAW)),
    # belief decoder exteroceptive_decoder: 50 -> 64 -> 128 -> 208
    ("dec_ex_w1", (HIDDEN, 64)), ("dec_ex_b1", (1, 64)),
    ("dec_ex_w2", (64, 128)), ("dec_ex_b2", (1, 128)),
    ("dec_ex_w3", (128, EXT_RAW)), ("dec_ex_b3", (1, EXT_RAW)),
    # belief decoder priviliged_decoder: 50 -> 64 -> 64 -> 41
    ("dec_pv_w1", (HIDDEN, 64)), ("dec_pv_b1", (1, 64)),
    ("dec_pv_w2", (64, 64)), ("dec_pv_b2", (1, 64)),
    ("dec_pv_w3", (64, PRIV)), ("dec_pv_b3", (1, PRIV)),
    # actor mlp
    ("mlp_w1", (MLP_IN, 256)), ("mlp_b1", (1, 256)),
    ("mlp_w2", (256, 160)), ("mlp_b2", (1, 160)),
    ("mlp_w3", (160, 128)), ("mlp_b3", (1, 128)),
    ("mlp_w4", (128, ACT)), ("mlp_b4", (1, ACT)),
]

# packed kernel parameters (7 operands)
KP_ORDER = ("ge_w", "gru_w", "heads_w1", "heads_w2", "heads_w3", "mlp_w", "biases")

# bias slab row indices
(B_GE1, B_GE2,
 B_G0R, B_G0Z, B_G0I, B_G0H,
 B_G1R, B_G1Z, B_G1I, B_G1H,
 B_HD1,
 B_EGA2, B_EGB2, B_DGA2, B_DEX2, B_DPV2,
 B_EGA3, B_EGB3, B_DGA3, B_DEX3, B_DPV3,
 B_MLP1, B_MLP2, B_MLP3, B_MLP4) = range(25)
N_BIAS = 25


# ------------------------------- shared math --------------------------------
def _elu(x):
    # min-guard dropped (review micro-opt): the discarded exp(inf) branch is
    # masked by the where and never produces NaN.
    return jnp.where(x > 0.0, x, jnp.exp(x) - 1.0)


def _round_up(x, m):
    return ((x + m - 1) // m) * m


def _pad_to(a, rows=None, cols=None):
    r = a.shape[0] if rows is None else rows
    c = a.shape[1] if cols is None else cols
    return jnp.pad(a, ((0, r - a.shape[0]), (0, c - a.shape[1])))


# ------------------------------ param re-layout ------------------------------
def prepare_params(params, use_bf16_weights=True):
    """One-time re-layout of PyTorch-style params into 7 packed kernel slabs."""
    p = {name: params[i] for i, (name, _) in enumerate(PARAM_SHAPES)}
    wdt = jnp.bfloat16 if use_bf16_weights else jnp.float32

    # heights encoder slab (208 + 128 = 336 rows, 128 cols)
    ge_w = jnp.concatenate([p["ge_w1"], _pad_to(p["ge_w2"], cols=128)], axis=0)

    # GRU slab (5 * 128 rows, 3 * 128 cols): each source's fused [r|z|n] weights
    # with every gate's 50 columns padded to a 128-lane block.
    def gate_expand(w):  # (in, 150) -> (in, 384)
        return jnp.concatenate(
            [_pad_to(w[:, g * HIDDEN:(g + 1) * HIDDEN], cols=GATE) for g in range(3)],
            axis=1)

    gru_w = jnp.concatenate([
        gate_expand(p["gru_wih0"][:PROPRIO]),                      # x_p    (128,384)
        _pad_to(gate_expand(p["gru_wih0"][PROPRIO:]), rows=128),   # ex_enc (96->128)
        _pad_to(gate_expand(p["gru_whh0"]), rows=128),             # h0     (50->128)
        _pad_to(gate_expand(p["gru_wih1"]), rows=128),             # h0n
        _pad_to(gate_expand(p["gru_whh1"]), rows=128),             # h1
    ], axis=0)                                                     # (640, 384)

    # five `output`-fed heads, layer 1 fused along N: (128, 5*128)
    heads_w1 = jnp.concatenate([
        _pad_to(p["enc_ga_w1"], rows=HPAD, cols=128),
        _pad_to(p["enc_gb_w1"], rows=HPAD, cols=128),
        _pad_to(p["dec_ga_w1"], rows=HPAD, cols=128),
        _pad_to(p["dec_ex_w1"], rows=HPAD, cols=128),
        _pad_to(p["dec_pv_w1"], rows=HPAD, cols=128)], axis=1)

    # layer 2 per head, packed as 128-aligned column blocks of one slab
    heads_w2 = jnp.concatenate([
        _pad_to(p["enc_ga_w2"], rows=128, cols=128),
        _pad_to(p["enc_gb_w2"], rows=128, cols=128),
        _pad_to(p["dec_ga_w2"], rows=128, cols=128),
        _pad_to(p["dec_ex_w2"], rows=128, cols=128),
        _pad_to(p["dec_pv_w2"], rows=128, cols=128)], axis=1)      # (128, 640)

    # layer 3 per head: (128, 128+128+256+256+128 = 896)
    heads_w3 = jnp.concatenate([
        _pad_to(p["enc_ga_w3"], rows=128, cols=128),
        _pad_to(p["enc_gb_w3"], rows=128, cols=128),
        _pad_to(p["dec_ga_w3"], rows=128, cols=EXT_PAD),
        _pad_to(p["dec_ex_w3"], rows=128, cols=EXT_PAD),
        _pad_to(p["dec_pv_w3"], rows=128, cols=128)], axis=1)

    # actor MLP slab (896 rows, 256 cols); first layer split at the proprio/belief
    # seam so no lane concat is needed in the kernel.
    mlp_w = jnp.concatenate([
        p["mlp_w1"][:PROPRIO],                                     # (128, 256)
        _pad_to(p["mlp_w1"][PROPRIO:], rows=128),                  # belief 120->128
        _pad_to(p["mlp_w2"], cols=256),                            # (256, 160->256)
        _pad_to(p["mlp_w3"], rows=256, cols=256),                  # (160->256, 128)
        _pad_to(p["mlp_w4"], rows=128, cols=256),                  # (128, 12->)
    ], axis=0)

    # one f32 bias slab (25, 640); combined GRU r/z biases like PyTorch's GRU math
    def row(v):
        return _pad_to(v.reshape(1, -1), cols=BIAS_W)

    def gbias(b, g):
        return b[:, g * HIDDEN:(g + 1) * HIDDEN]

    bias_rows = [
        row(p["ge_b1"]),                                               # B_GE1
        row(p["ge_b2"]),                                               # B_GE2
        row(gbias(p["gru_bih0"], 0) + gbias(p["gru_bhh0"], 0)),        # B_G0R
        row(gbias(p["gru_bih0"], 1) + gbias(p["gru_bhh0"], 1)),        # B_G0Z
        row(gbias(p["gru_bih0"], 2)),                                  # B_G0I
        row(gbias(p["gru_bhh0"], 2)),                                  # B_G0H
        row(gbias(p["gru_bih1"], 0) + gbias(p["gru_bhh1"], 0)),        # B_G1R
        row(gbias(p["gru_bih1"], 1) + gbias(p["gru_bhh1"], 1)),        # B_G1Z
        row(gbias(p["gru_bih1"], 2)),                                  # B_G1I
        row(gbias(p["gru_bhh1"], 2)),                                  # B_G1H
        jnp.concatenate([_pad_to(p["enc_ga_b1"], cols=128),            # B_HD1
                         _pad_to(p["enc_gb_b1"], cols=128),
                         _pad_to(p["dec_ga_b1"], cols=128),
                         _pad_to(p["dec_ex_b1"], cols=128),
                         _pad_to(p["dec_pv_b1"], cols=128)], axis=1),
        row(p["enc_ga_b2"]), row(p["enc_gb_b2"]), row(p["dec_ga_b2"]),
        row(p["dec_ex_b2"]), row(p["dec_pv_b2"]),
        row(p["enc_ga_b3"]), row(p["enc_gb_b3"]), row(p["dec_ga_b3"]),
        row(p["dec_ex_b3"]), row(p["dec_pv_b3"]),
        row(p["mlp_b1"]), row(p["mlp_b2"]), row(p["mlp_b3"]), row(p["mlp_b4"]),
    ]
    biases = jnp.concatenate(bias_rows, axis=0).astype(jnp.float32)    # (25, 640)

    return {
        "ge_w": ge_w.astype(wdt),
        "gru_w": gru_w.astype(wdt),
        "heads_w1": heads_w1.astype(wdt),
        "heads_w2": heads_w2.astype(wdt),
        "heads_w3": heads_w3.astype(wdt),
        "mlp_w": mlp_w.astype(wdt),
        "biases": biases,                    # always f32
    }


# --------------------------------- kernel -----------------------------------
def student_kernel(prop_ref, ext_ref, h0_ref, h1_ref,
                   ge_w_ref, gru_w_ref, hw1_ref, hw2_ref, hw3_ref, mlp_w_ref, b_ref,
                   act_ref, extdec_ref, privdec_ref, h0_out_ref, h1_out_ref):
    wdt = ge_w_ref.dtype                       # bf16 or f32 MXU operand dtype

    def mm(x, w):                              # MXU matmul, f32 accumulation
        return jnp.dot(x, w, preferred_element_type=jnp.float32)

    def bias(r, width):                        # one f32 bias row -> (1, width)
        return b_ref[r:r + 1, :width]

    x_p = prop_ref[...]                        # (tb, 128) f32
    x_e = ext_ref[...]                         # (tb, 208) f32 (un-padded)
    h0 = h0_ref[...]                           # (tb, 128) f32, cols 50: zero
    h1 = h1_ref[...]
    x_p_c = x_p.astype(wdt)                    # hoisted cast (GRU + actor MLP)

    # ---- ge: heights encoder -> exteroceptive latent (cols 96: exactly 0) ----
    t = _elu(mm(x_e.astype(wdt), ge_w_ref[0:EXT_RAW, :]) + bias(B_GE1, 128))
    ex_enc = mm(t.astype(wdt), ge_w_ref[EXT_RAW:EXT_RAW + 128, :]) + bias(B_GE2, 128)

    # ---- BeliefEncoder: 2-layer GRU, gates fused along N (r|z|n @ 128 each) ----
    gi0 = (mm(x_p_c, gru_w_ref[0:128, :]) +
           mm(ex_enc.astype(wdt), gru_w_ref[128:256, :]))           # (tb, 384)
    gh0 = mm(h0.astype(wdt), gru_w_ref[256:384, :])                 # (tb, 384)
    r0 = jax.nn.sigmoid(gi0[:, 0:128] + gh0[:, 0:128] + bias(B_G0R, 128))
    z0 = jax.nn.sigmoid(gi0[:, 128:256] + gh0[:, 128:256] + bias(B_G0Z, 128))
    n0 = jnp.tanh(gi0[:, 256:384] + bias(B_G0I, 128) +
                  r0 * (gh0[:, 256:384] + bias(B_G0H, 128)))
    h0n = (1.0 - z0) * n0 + z0 * h0            # padded lanes stay exactly 0

    gi1 = mm(h0n.astype(wdt), gru_w_ref[384:512, :])
    gh1 = mm(h1.astype(wdt), gru_w_ref[512:640, :])
    r1 = jax.nn.sigmoid(gi1[:, 0:128] + gh1[:, 0:128] + bias(B_G1R, 128))
    z1 = jax.nn.sigmoid(gi1[:, 128:256] + gh1[:, 128:256] + bias(B_G1Z, 128))
    n1 = jnp.tanh(gi1[:, 256:384] + bias(B_G1I, 128) +
                  r1 * (gh1[:, 256:384] + bias(B_G1H, 128)))
    h1n = (1.0 - z1) * n1 + z1 * h1
    out_c = h1n.astype(wdt)                    # GRU output (tb, 128)

    # ---- the five `output`-fed heads: fused first layer, one (128, 640) matmul ----
    hd1 = _elu(mm(out_c, hw1_ref[...]) + bias(B_HD1, BIAS_W))       # (tb, 640)
    hd1c = hd1.astype(wdt)                     # hoisted cast (5 uses)

    ega2 = _elu(mm(hd1c[:, 0:128], hw2_ref[:, 0:128]) + bias(B_EGA2, 128))
    egb2 = _elu(mm(hd1c[:, 128:256], hw2_ref[:, 128:256]) + bias(B_EGB2, 128))
    dga2 = _elu(mm(hd1c[:, 256:384], hw2_ref[:, 256:384]) + bias(B_DGA2, 128))
    dex2 = _elu(mm(hd1c[:, 384:512], hw2_ref[:, 384:512]) + bias(B_DEX2, 128))
    dpv2 = _elu(mm(hd1c[:, 512:640], hw2_ref[:, 512:640]) + bias(B_DPV2, 128))

    # encoder gating ga / belief gb (belief cols 0:96 ext+att, 96:120 priv, rest 0)
    alpha_e = jax.nn.sigmoid(mm(ega2.astype(wdt), hw3_ref[:, 0:128]) + bias(B_EGA3, 128))
    ext_att = alpha_e * ex_enc                 # cols 96: exactly 0
    belief = mm(egb2.astype(wdt), hw3_ref[:, 128:256]) + bias(B_EGB3, 128) + ext_att

    # ---- actor MLP (concat(proprio, belief) as split matmuls on one slab) ----
    m = _elu(mm(x_p_c, mlp_w_ref[0:128, :]) +
             mm(belief.astype(wdt), mlp_w_ref[128:256, :]) + bias(B_MLP1, 256))
    m = _elu(mm(m.astype(wdt), mlp_w_ref[256:512, :]) + bias(B_MLP2, 256))
    m = _elu(mm(m.astype(wdt), mlp_w_ref[512:768, 0:128]) + bias(B_MLP3, 128))
    action = mm(m.astype(wdt), mlp_w_ref[768:896, 0:128]) + bias(B_MLP4, 128)

    # ---- BeliefDecoder (on GRU output & raw exteroceptive) ----
    alpha_d = jax.nn.sigmoid(mm(dga2.astype(wdt), hw3_ref[:, 256:512]) + bias(B_DGA3, EXT_PAD))
    ext_dec = mm(dex2.astype(wdt), hw3_ref[:, 512:768]) + bias(B_DEX3, EXT_PAD)   # (tb, 256)
    priv_dec = mm(dpv2.astype(wdt), hw3_ref[:, 768:896]) + bias(B_DPV3, 128)      # (tb, 128)

    # ---- stores (lane-dense HBM writeback; one in-VMEM partial update adds the
    #      alpha_d * raw-extero term on the valid 208 lanes only) ----
    act_ref[...] = action
    privdec_ref[...] = priv_dec
    h0_out_ref[...] = h0n
    h1_out_ref[...] = h1n
    extdec_ref[...] = ext_dec
    extdec_ref[:, 0:EXT_RAW] = ext_dec[:, 0:EXT_RAW] + alpha_d[:, 0:EXT_RAW] * x_e


# --------------------------------- wrapper ----------------------------------
def student_policy_forward(proprio, extero, h0, h1, kparams, *, tb=None):
    """proprio (N,128), extero (N,208), h0/h1 (N,128) [cols 50: zero] ->
    (action (N,12), recon (N,249), h0_new (N,128), h1_new (N,128))."""
    n = proprio.shape[0]
    n8 = _round_up(max(n, 8), 8)
    if tb is None:
        if n8 < 2 * 128:
            tb = n8                                   # one grid step
        elif n8 <= 2 * MAX_TB:
            tb = _round_up(pl.cdiv(n8, 2), 8)         # >=2 steps -> both v7x TCs
        else:
            tb = MAX_TB
    n_pad = _round_up(n, tb)
    if n_pad != n:
        padb = lambda x: jnp.pad(x, ((0, n_pad - n), (0, 0)))
        proprio, extero, h0, h1 = map(padb, (proprio, extero, h0, h1))

    grid = (n_pad // tb,)
    plist = [kparams[k] for k in KP_ORDER]

    in_specs = (
        [pl.BlockSpec((tb, PROPRIO), lambda i: (i, 0)),
         pl.BlockSpec((tb, EXT_RAW), lambda i: (i, 0)),
         pl.BlockSpec((tb, HPAD), lambda i: (i, 0)),
         pl.BlockSpec((tb, HPAD), lambda i: (i, 0))]
        # packed weights: full-array blocks with a constant index map -> fetched
        # once and kept resident across grid steps.
        # TODO(synk): on VMEM-tight configs (v7x, tb>=512) add
        # pipeline_mode=pl.Buffered(1) to these constant blocks.
        + [pl.BlockSpec(kparams[k].shape, lambda i: (0, 0)) for k in KP_ORDER])

    out_specs = [
        pl.BlockSpec((tb, ACT_PAD), lambda i: (i, 0)),    # action (padded)
        pl.BlockSpec((tb, EXT_PAD), lambda i: (i, 0)),    # extero recon (padded)
        pl.BlockSpec((tb, PRIV_PAD), lambda i: (i, 0)),   # priv recon (padded)
        pl.BlockSpec((tb, HPAD), lambda i: (i, 0)),       # new h0
        pl.BlockSpec((tb, HPAD), lambda i: (i, 0)),       # new h1
    ]
    out_shape = [
        jax.ShapeDtypeStruct((n_pad, ACT_PAD), jnp.float32),
        jax.ShapeDtypeStruct((n_pad, EXT_PAD), jnp.float32),
        jax.ShapeDtypeStruct((n_pad, PRIV_PAD), jnp.float32),
        jax.ShapeDtypeStruct((n_pad, HPAD), jnp.float32),
        jax.ShapeDtypeStruct((n_pad, HPAD), jnp.float32),
    ]

    action_p, ext_p, priv_p, h0n, h1n = pl.pallas_call(
        student_kernel,
        grid=grid,
        in_specs=in_specs,
        out_specs=out_specs,
        out_shape=out_shape,
        # recurrent state updated in place: h0 -> out 3, h1 -> out 4
        input_output_aliases={2: 3, 3: 4},
        compiler_params=pltpu.CompilerParams(
            dimension_semantics=("parallel",),
            vmem_limit_bytes=32 * 1024 * 1024),
    )(proprio, extero, h0, h1, *plist)

    action = action_p[:n, :ACT]
    recon = jnp.concatenate([ext_p[:n, :EXT_RAW], priv_p[:n, :PRIV]], axis=-1)
    return action, recon, h0n[:n], h1n[:n]


# ------------------------------ param init ----------------------------------
def init_params(key):
    params = []
    for idx, (_, shape) in enumerate(PARAM_SHAPES):
        k = jax.random.fold_in(key, idx)
        fan_in = shape[0] if shape[0] > 1 else shape[1]
        scale = 1.0 / jnp.sqrt(jnp.asarray(fan_in, jnp.float32))
        params.append(scale * jax.random.normal(k, shape, dtype=jnp.float32))
    return params


# ----------------------------- pure-JAX reference ----------------------------
def reference_forward(proprio, extero, h0, h1, params):
    p = {name: params[i] for i, (name, _) in enumerate(PARAM_SHAPES)}
    lin = lambda x, w, b: jnp.dot(x, w) + b

    ex_enc = lin(_elu(lin(extero, p["ge_w1"], p["ge_b1"])), p["ge_w2"], p["ge_b2"])

    def gru(x, h, wih, whh, bih, bhh):
        gi = jnp.dot(x, wih) + bih
        gh = jnp.dot(h, whh) + bhh
        r = jax.nn.sigmoid(gi[:, :HIDDEN] + gh[:, :HIDDEN])
        z = jax.nn.sigmoid(gi[:, HIDDEN:2 * HIDDEN] + gh[:, HIDDEN:2 * HIDDEN])
        n = jnp.tanh(gi[:, 2 * HIDDEN:] + r * gh[:, 2 * HIDDEN:])
        return (1.0 - z) * n + z * h

    rnn_in = jnp.concatenate([proprio, ex_enc], axis=-1)
    h0n = gru(rnn_in, h0, p["gru_wih0"], p["gru_whh0"], p["gru_bih0"], p["gru_bhh0"])
    h1n = gru(h0n, h1, p["gru_wih1"], p["gru_whh1"], p["gru_bih1"], p["gru_bhh1"])
    out = h1n

    a = _elu(lin(out, p["enc_ga_w1"], p["enc_ga_b1"]))
    a = _elu(lin(a, p["enc_ga_w2"], p["enc_ga_b2"]))
    alpha_e = jax.nn.sigmoid(lin(a, p["enc_ga_w3"], p["enc_ga_b3"]))
    ext_att = alpha_e * ex_enc

    b = _elu(lin(out, p["enc_gb_w1"], p["enc_gb_b1"]))
    b = _elu(lin(b, p["enc_gb_w2"], p["enc_gb_b2"]))
    belief = lin(b, p["enc_gb_w3"], p["enc_gb_b3"])
    belief = belief.at[:, :EXT_LAT].add(ext_att)

    m = jnp.concatenate([proprio, belief], axis=-1)
    m = _elu(lin(m, p["mlp_w1"], p["mlp_b1"]))
    m = _elu(lin(m, p["mlp_w2"], p["mlp_b2"]))
    m = _elu(lin(m, p["mlp_w3"], p["mlp_b3"]))
    action = lin(m, p["mlp_w4"], p["mlp_b4"])

    d = _elu(lin(out, p["dec_ga_w1"], p["dec_ga_b1"]))
    d = _elu(lin(d, p["dec_ga_w2"], p["dec_ga_b2"]))
    alpha_d = jax.nn.sigmoid(lin(d, p["dec_ga_w3"], p["dec_ga_b3"]))

    e = _elu(lin(out, p["dec_ex_w1"], p["dec_ex_b1"]))
    e = _elu(lin(e, p["dec_ex_w2"], p["dec_ex_b2"]))
    ext_dec = lin(e, p["dec_ex_w3"], p["dec_ex_b3"]) + alpha_d * extero

    q = _elu(lin(out, p["dec_pv_w1"], p["dec_pv_b1"]))
    q = _elu(lin(q, p["dec_pv_w2"], p["dec_pv_b2"]))
    priv = lin(q, p["dec_pv_w3"], p["dec_pv_b3"])

    recon = jnp.concatenate([ext_dec, priv], axis=-1)
    return action, recon, h0n, h1n


# ---------------------------------- main -------------------------------------
if __name__ == "__main__":
    key = jax.random.PRNGKey(0)
    n_envs = 16

    kp_key, ke_key = jax.random.split(key)
    proprio = jax.random.normal(kp_key, (n_envs, PROPRIO), dtype=jnp.float32)
    extero = jax.random.normal(ke_key, (n_envs, EXT_RAW), dtype=jnp.float32)

    # TODO(synk): StudentPolicy mutates the persistent self.hidden buffer and has
    # reset()/reset_graph(); the GRU state is threaded functionally here, padded
    # to (N,128) (cols 50: stay exactly zero across steps) and updated in place
    # via input_output_aliases.
    h0_50 = jnp.zeros((n_envs, HIDDEN), dtype=jnp.float32)
    h1_50 = jnp.zeros((n_envs, HIDDEN), dtype=jnp.float32)

    params = init_params(jax.random.fold_in(key, 1234))
    kp_f32 = prepare_params(params, use_bf16_weights=False)
    kp_bf16 = prepare_params(params, use_bf16_weights=True)   # recommended on all gens

    def check(name, got, want, atol, rtol):
        if not bool(jnp.allclose(got, want, atol=atol, rtol=rtol)):
            diff = float(jnp.max(jnp.abs(got - want)))
            raise AssertionError(f"{name}: max abs diff {diff}")

    # pure-JAX reference, two recurrent steps
    ra1, rr1, rh0_1, rh1_1 = reference_forward(proprio, extero, h0_50, h1_50, params)
    ra2, rr2, rh0_2, rh1_2 = reference_forward(proprio, extero, rh0_1, rh1_1, params)

    # ---- f32-weight kernel: tight correctness, two steps (recurrent path) ----
    h0f = jnp.zeros((n_envs, HPAD), dtype=jnp.float32)
    h1f = jnp.zeros((n_envs, HPAD), dtype=jnp.float32)
    a1, r1, h0n1, h1n1 = student_policy_forward(proprio, extero, h0f, h1f, kp_f32)
    jax.block_until_ready((a1, r1, h0n1, h1n1))
    assert a1.shape == (n_envs, ACT) and r1.shape == (n_envs, RECON)
    assert h0n1.shape == (n_envs, HPAD) and h1n1.shape == (n_envs, HPAD)
    check("action(step1,f32)", a1, ra1, 1e-2, 1e-2)
    check("recon(step1,f32)", r1, rr1, 1e-2, 1e-2)
    check("h0(step1,f32)", h0n1[:, :HIDDEN], rh0_1, 1e-2, 1e-2)
    check("h1(step1,f32)", h1n1[:, :HIDDEN], rh1_1, 1e-2, 1e-2)
    assert float(jnp.max(jnp.abs(h0n1[:, HIDDEN:]))) < 1e-6   # pad lanes stay zero
    assert float(jnp.max(jnp.abs(h1n1[:, HIDDEN:]))) < 1e-6

    a2, r2, h0n2, h1n2 = student_policy_forward(proprio, extero, h0n1, h1n1, kp_f32)
    jax.block_until_ready((a2, r2, h0n2, h1n2))
    check("action(step2,f32)", a2, ra2, 1e-2, 1e-2)
    check("recon(step2,f32)", r2, rr2, 1e-2, 1e-2)
    check("h0(step2,f32)", h0n2[:, :HIDDEN], rh0_2, 1e-2, 1e-2)
    check("h1(step2,f32)", h1n2[:, :HIDDEN], rh1_2, 1e-2, 1e-2)

    # ---- bf16-weight kernel (production path): sanity + recurrent step ----
    h0b = jnp.zeros((n_envs, HPAD), dtype=jnp.float32)
    h1b = jnp.zeros((n_envs, HPAD), dtype=jnp.float32)
    b1, br1, bh0, bh1 = student_policy_forward(proprio, extero, h0b, h1b, kp_bf16)
    jax.block_until_ready((b1, br1, bh0, bh1))
    check("action(step1,bf16)", b1, ra1, 8e-2, 8e-2)
    check("recon(step1,bf16)", br1, rr1, 8e-2, 8e-2)
    check("h0(step1,bf16)", bh0[:, :HIDDEN], rh0_1, 8e-2, 8e-2)
    b2, br2, bh0b, bh1b = student_policy_forward(proprio, extero, bh0, bh1, kp_bf16)
    jax.block_until_ready((b2, br2, bh0b, bh1b))
    assert bool(jnp.all(jnp.isfinite(b2))) and bool(jnp.all(jnp.isfinite(br2)))

    print("KERNEL_OK")
</pallas_src>

<mosaic_0001>
module attributes {stable_mosaic.version = 11 : i64} {
  func.func @student_kernel(%arg0: i32, %arg1: memref<16x128xf32, #tpu.memory_space<vmem>>, %arg2: memref<16x208xf32, #tpu.memory_space<vmem>>, %arg3: memref<16x128xf32, #tpu.memory_space<vmem>>, %arg4: memref<16x128xf32, #tpu.memory_space<vmem>>, %arg5: memref<336x128xf32, #tpu.memory_space<vmem>>, %arg6: memref<640x384xf32, #tpu.memory_space<vmem>>, %arg7: memref<128x640xf32, #tpu.memory_space<vmem>>, %arg8: memref<128x640xf32, #tpu.memory_space<vmem>>, %arg9: memref<128x896xf32, #tpu.memory_space<vmem>>, %arg10: memref<896x256xf32, #tpu.memory_space<vmem>>, %arg11: memref<25x640xf32, #tpu.memory_space<vmem>>, %arg12: memref<16x128xf32, #tpu.memory_space<vmem>>, %arg13: memref<16x256xf32, #tpu.memory_space<vmem>>, %arg14: memref<16x128xf32, #tpu.memory_space<vmem>>, %arg15: memref<16x128xf32, #tpu.memory_space<vmem>>, %arg16: memref<16x128xf32, #tpu.memory_space<vmem>>) attributes {dimension_semantics = [#tpu.dimension_semantics<parallel>], iteration_bounds = array<i64: 1>, scalar_prefetch = 0 : i64, scratch_operands = 0 : i64, tpu.core_type = #tpu.core_type<tc>, window_params = [{transform_indices = @transform_0, window_bounds = array<i64: 16, 128>}, {transform_indices = @transform_1, window_bounds = array<i64: 16, 208>}, {transform_indices = @transform_2, window_bounds = array<i64: 16, 128>}, {transform_indices = @transform_3, window_bounds = array<i64: 16, 128>}, {pipeline_mode = #tpu.pipeline_mode<synchronous>, transform_indices = @transform_4, window_bounds = array<i64: 336, 128>}, {pipeline_mode = #tpu.pipeline_mode<synchronous>, transform_indices = @transform_5, window_bounds = array<i64: 640, 384>}, {pipeline_mode = #tpu.pipeline_mode<synchronous>, transform_indices = @transform_6, window_bounds = array<i64: 128, 640>}, {pipeline_mode = #tpu.pipeline_mode<synchronous>, transform_indices = @transform_7, window_bounds = array<i64: 128, 640>}, {pipeline_mode = #tpu.pipeline_mode<synchronous>, transform_indices = @transform_8, window_bounds = array<i64: 128, 896>}, {pipeline_mode = #tpu.pipeline_mode<synchronous>, transform_indices = @transform_9, window_bounds = array<i64: 896, 256>}, {pipeline_mode = #tpu.pipeline_mode<synchronous>, transform_indices = @transform_10, window_bounds = array<i64: 25, 640>}, {transform_indices = @transform_11, window_bounds = array<i64: 16, 128>}, {transform_indices = @transform_12, window_bounds = array<i64: 16, 256>}, {transform_indices = @transform_13, window_bounds = array<i64: 16, 128>}, {transform_indices = @transform_14, window_bounds = array<i64: 16, 128>}, {transform_indices = @transform_15, window_bounds = array<i64: 16, 128>}]} {
    %c0 = arith.constant 0 : index
    %c0_0 = arith.constant 0 : index
    %0 = vector.load %arg1[%c0, %c0_0] : memref<16x128xf32, #tpu.memory_space<vmem>>, vector<16x128xf32>
    %c0_1 = arith.constant 0 : index
    %c0_2 = arith.constant 0 : index
    %1 = vector.load %arg2[%c0_1, %c0_2] : memref<16x208xf32, #tpu.memory_space<vmem>>, vector<16x208xf32>
    %c0_3 = arith.constant 0 : index
    %c0_4 = arith.constant 0 : index
    %2 = vector.load %arg3[%c0_3, %c0_4] : memref<16x128xf32, #tpu.memory_space<vmem>>, vector<16x128xf32>
    %c0_5 = arith.constant 0 : index
    %c0_6 = arith.constant 0 : index
    %3 = vector.load %arg4[%c0_5, %c0_6] : memref<16x128xf32, #tpu.memory_space<vmem>>, vector<16x128xf32>
    %c0_7 = arith.constant 0 : index
    %c0_8 = arith.constant 0 : index
    %4 = vector.load %arg5[%c0_7, %c0_8] : memref<336x128xf32, #tpu.memory_space<vmem>>, vector<208x128xf32>
    %cst = arith.constant dense<0.000000e+00> : vector<16x128xf32>
    %5 = tpu.matmul %1, %4, %cst {dimension_numbers = #tpu.dot_dimension_numbers<[1], [0], [0], [1], [0, 0, 1, 1], [], []>} : vector<16x208xf32>, vector<208x128xf32>, vector<16x128xf32> -> vector<16x128xf32>
    %c0_9 = arith.constant 0 : index
    %c0_10 = arith.constant 0 : index
    %6 = vector.load %arg11[%c0_9, %c0_10] : memref<25x640xf32, #tpu.memory_space<vmem>>, vector<1x128xf32>
    %7 = vector.broadcast %6 : vector<1x128xf32> to vector<16x128xf32>
    %8 = arith.addf %5, %7 : vector<16x128xf32>
    %cst_11 = arith.constant 0.000000e+00 : f32
    %9 = vector.broadcast %cst_11 : f32 to vector<16x128xf32>
    %10 = arith.cmpf ogt, %8, %9 : vector<16x128xf32>
    %11 = math.exp %8 : vector<16x128xf32>
    %cst_12 = arith.constant 1.000000e+00 : f32
    %12 = vector.broadcast %cst_12 : f32 to vector<16x128xf32>
    %13 = arith.subf %11, %12 : vector<16x128xf32>
    %14 = arith.select %10, %8, %13 : vector<16x128xi1>, vector<16x128xf32>
    %c208 = arith.constant 208 : index
    %c0_13 = arith.constant 0 : index
    %15 = vector.load %arg5[%c208, %c0_13] : memref<336x128xf32, #tpu.memory_space<vmem>>, vector<128x128xf32>
    %cst_14 = arith.constant dense<0.000000e+00> : vector<16x128xf32>
    %16 = tpu.matmul %14, %15, %cst_14 {dimension_numbers = #tpu.dot_dimension_numbers<[1], [0], [0], [1], [0, 0, 1, 1], [], []>} : vector<16x128xf32>, vector<128x128xf32>, vector<16x128xf32> -> vector<16x128xf32>
    %c1 = arith.constant 1 : index
    %c0_15 = arith.constant 0 : index
    %17 = vector.load %arg11[%c1, %c0_15] : memref<25x640xf32, #tpu.memory_space<vmem>>, vector<1x128xf32>
    %18 = vector.broadcast %17 : vector<1x128xf32> to vector<16x128xf32>
    %19 = arith.addf %16, %18 : vector<16x128xf32>
    %c0_16 = arith.constant 0 : index
    %c0_17 = arith.constant 0 : index
    %20 = vector.load %arg6[%c0_16, %c0_17] : memref<640x384xf32, #tpu.memory_space<vmem>>, vector<128x384xf32>
    %cst_18 = arith.constant dense<0.000000e+00> : vector<16x384xf32>
    %21 = tpu.matmul %0, %20, %cst_18 {dimension_numbers = #tpu.dot_dimension_numbers<[1], [0], [0], [1], [0, 0, 1, 1], [], []>} : vector<16x128xf32>, vector<128x384xf32>, vector<16x384xf32> -> vector<16x384xf32>
    %c128 = arith.constant 128 : index
    %c0_19 = arith.constant 0 : index
    %22 = vector.load %arg6[%c128, %c0_19] : memref<640x384xf32, #tpu.memory_space<vmem>>, vector<128x384xf32>
    %cst_20 = arith.constant dense<0.000000e+00> : vector<16x384xf32>
    %23 = tpu.matmul %19, %22, %cst_20 {dimension_numbers = #tpu.dot_dimension_numbers<[1], [0], [0], [1], [0, 0, 1, 1], [], []>} : vector<16x128xf32>, vector<128x384xf32>, vector<16x384xf32> -> vector<16x384xf32>
    %24 = arith.addf %21, %23 : vector<16x384xf32>
    %c256 = arith.constant 256 : index
    %c0_21 = arith.constant 0 : index
    %25 = vector.load %arg6[%c256, %c0_21] : memref<640x384xf32, #tpu.memory_space<vmem>>, vector<128x384xf32>
    %cst_22 = arith.constant dense<0.000000e+00> : vector<16x384xf32>
    %26 = tpu.matmul %2, %25, %cst_22 {dimension_numbers = #tpu.dot_dimension_numbers<[1], [0], [0], [1], [0, 0, 1, 1], [], []>} : vector<16x128xf32>, vector<128x384xf32>, vector<16x384xf32> -> vector<16x384xf32>
    %27 = vector.extract_strided_slice %24 {offsets = [0, 0], sizes = [16, 128], strides = [1, 1]} : vector<16x384xf32> to vector<16x128xf32>
    %28 = vector.extract_strided_slice %26 {offsets = [0, 0], sizes = [16, 128], strides = [1, 1]} : vector<16x384xf32> to vector<16x128xf32>
    %29 = arith.addf %27, %28 : vector<16x128xf32>
    %c2 = arith.constant 2 : index
    %c0_23 = arith.constant 0 : index
    %30 = vector.load %arg11[%c2, %c0_23] : memref<25x640xf32, #tpu.memory_space<vmem>>, vector<1x128xf32>
    %31 = vector.broadcast %30 : vector<1x128xf32> to vector<16x128xf32>
    %32 = arith.addf %29, %31 : vector<16x128xf32>
    %33 = arith.negf %32 : vector<16x128xf32>
    %34 = math.exp %33 : vector<16x128xf32>
    %cst_24 = arith.constant 1.000000e+00 : f32
    %35 = vector.broadcast %cst_24 : f32 to vector<16x128xf32>
    %36 = arith.addf %35, %34 : vector<16x128xf32>
    %37 = arith.divf %35, %36 : vector<16x128xf32>
    %38 = vector.extract_strided_slice %24 {offsets = [0, 128], sizes = [16, 128], strides = [1, 1]} : vector<16x384xf32> to vector<16x128xf32>
    %39 = vector.extract_strided_slice %26 {offsets = [0, 128], sizes = [16, 128], strides = [1, 1]} : vector<16x384xf32> to vector<16x128xf32>
    %40 = arith.addf %38, %39 : vector<16x128xf32>
    %c3 = arith.constant 3 : index
    %c0_25 = arith.constant 0 : index
    %41 = vector.load %arg11[%c3, %c0_25] : memref<25x640xf32, #tpu.memory_space<vmem>>, vector<1x128xf32>
    %42 = vector.broadcast %41 : vector<1x128xf32> to vector<16x128xf32>
    %43 = arith.addf %40, %42 : vector<16x128xf32>
    %44 = arith.negf %43 : vector<16x128xf32>
    %45 = math.exp %44 : vector<16x128xf32>
    %cst_26 = arith.constant 1.000000e+00 : f32
    %46 = vector.broadcast %cst_26 : f32 to vector<16x128xf32>
    %47 = arith.addf %46, %45 : vector<16x128xf32>
    %48 = arith.divf %46, %47 : vector<16x128xf32>
    %49 = vector.extract_strided_slice %24 {offsets = [0, 256], sizes = [16, 128], strides = [1, 1]} : vector<16x384xf32> to vector<16x128xf32>
    %c4 = arith.constant 4 : index
    %c0_27 = arith.constant 0 : index
    %50 = vector.load %arg11[%c4, %c0_27] : memref<25x640xf32, #tpu.memory_space<vmem>>, vector<1x128xf32>
    %51 = vector.broadcast %50 : vector<1x128xf32> to vector<16x128xf32>
    %52 = arith.addf %49, %51 : vector<16x128xf32>
    %53 = vector.extract_strided_slice %26 {offsets = [0, 256], sizes = [16, 128], strides = [1, 1]} : vector<16x384xf32> to vector<16x128xf32>
    %c5 = arith.constant 5 : index
    %c0_28 = arith.constant 0 : index
    %54 = vector.load %arg11[%c5, %c0_28] : memref<25x640xf32, #tpu.memory_space<vmem>>, vector<1x128xf32>
    %55 = vector.broadcast %54 : vector<1x128xf32> to vector<16x128xf32>
    %56 = arith.addf %53, %55 : vector<16x128xf32>
    %57 = arith.mulf %37, %56 : vector<16x128xf32>
    %58 = arith.addf %52, %57 : vector<16x128xf32>
    %59 = math.tanh %58 : vector<16x128xf32>
    %cst_29 = arith.constant 1.000000e+00 : f32
    %60 = vector.broadcast %cst_29 : f32 to vector<16x128xf32>
    %61 = arith.subf %60, %48 : vector<16x128xf32>
    %62 = arith.mulf %61, %59 : vector<16x128xf32>
    %63 = arith.mulf %48, %2 : vector<16x128xf32>
    %64 = arith.addf %62, %63 : vector<16x128xf32>
    %c384 = arith.constant 384 : index
    %c0_30 = arith.constant 0 : index
    %65 = vector.load %arg6[%c384, %c0_30] : memref<640x384xf32, #tpu.memory_space<vmem>>, vector<128x384xf32>
    %cst_31 = arith.constant dense<0.000000e+00> : vector<16x384xf32>
    %66 = tpu.matmul %64, %65, %cst_31 {dimension_numbers = #tpu.dot_dimension_numbers<[1], [0], [0], [1], [0, 0, 1, 1], [], []>} : vector<16x128xf32>, vector<128x384xf32>, vector<16x384xf32> -> vector<16x384xf32>
    %c512 = arith.constant 512 : index
    %c0_32 = arith.constant 0 : index
    %67 = vector.load %arg6[%c512, %c0_32] : memref<640x384xf32, #tpu.memory_space<vmem>>, vector<128x384xf32>
    %cst_33 = arith.constant dense<0.000000e+00> : vector<16x384xf32>
    %68 = tpu.matmul %3, %67, %cst_33 {dimension_numbers = #tpu.dot_dimension_numbers<[1], [0], [0], [1], [0, 0, 1, 1], [], []>} : vector<16x128xf32>, vector<128x384xf32>, vector<16x384xf32> -> vector<16x384xf32>
    %69 = vector.extract_strided_slice %66 {offsets = [0, 0], sizes = [16, 128], strides = [1, 1]} : vector<16x384xf32> to vector<16x128xf32>
    %70 = vector.extract_strided_slice %68 {offsets = [0, 0], sizes = [16, 128], strides = [1, 1]} : vector<16x384xf32> to vector<16x128xf32>
    %71 = arith.addf %69, %70 : vector<16x128xf32>
    %c6 = arith.constant 6 : index
    %c0_34 = arith.constant 0 : index
    %72 = vector.load %arg11[%c6, %c0_34] : memref<25x640xf32, #tpu.memory_space<vmem>>, vector<1x128xf32>
    %73 = vector.broadcast %72 : vector<1x128xf32> to vector<16x128xf32>
    %74 = arith.addf %71, %73 : vector<16x128xf32>
    %75 = arith.negf %74 : vector<16x128xf32>
    %76 = math.exp %75 : vector<16x128xf32>
    %cst_35 = arith.constant 1.000000e+00 : f32
    %77 = vector.broadcast %cst_35 : f32 to vector<16x128xf32>
    %78 = arith.addf %77, %76 : vector<16x128xf32>
    %79 = arith.divf %77, %78 : vector<16x128xf32>
    %80 = vector.extract_strided_slice %66 {offsets = [0, 128], sizes = [16, 128], strides = [1, 1]} : vector<16x384xf32> to vector<16x128xf32>
    %81 = vector.extract_strided_slice %68 {offsets = [0, 128], sizes = [16, 128], strides = [1, 1]} : vector<16x384xf32> to vector<16x128xf32>
    %82 = arith.addf %80, %81 : vector<16x128xf32>
    %c7 = arith.constant 7 : index
    %c0_36 = arith.constant 0 : index
    %83 = vector.load %arg11[%c7, %c0_36] : memref<25x640xf32, #tpu.memory_space<vmem>>, vector<1x128xf32>
    %84 = vector.broadcast %83 : vector<1x128xf32> to vector<16x128xf32>
    %85 = arith.addf %82, %84 : vector<16x128xf32>
    %86 = arith.negf %85 : vector<16x128xf32>
    %87 = math.exp %86 : vector<16x128xf32>
    %cst_37 = arith.constant 1.000000e+00 : f32
    %88 = vector.broadcast %cst_37 : f32 to vector<16x128xf32>
    %89 = arith.addf %88, %87 : vector<16x128xf32>
    %90 = arith.divf %88, %89 : vector<16x128xf32>
    %91 = vector.extract_strided_slice %66 {offsets = [0, 256], sizes = [16, 128], strides = [1, 1]} : vector<16x384xf32> to vector<16x128xf32>
    %c8 = arith.constant 8 : index
    %c0_38 = arith.constant 0 : index
    %92 = vector.load %arg11[%c8, %c0_38] : memref<25x640xf32, #tpu.memory_space<vmem>>, vector<1x128xf32>
    %93 = vector.broadcast %92 : vector<1x128xf32> to vector<16x128xf32>
    %94 = arith.addf %91, %93 : vector<16x128xf32>
    %95 = vector.extract_strided_slice %68 {offsets = [0, 256], sizes = [16, 128], strides = [1, 1]} : vector<16x384xf32> to vector<16x128xf32>
    %c9 = arith.constant 9 : index
    %c0_39 = arith.constant 0 : index
    %96 = vector.load %arg11[%c9, %c0_39] : memref<25x640xf32, #tpu.memory_space<vmem>>, vector<1x128xf32>
    %97 = vector.broadcast %96 : vector<1x128xf32> to vector<16x128xf32>
    %98 = arith.addf %95, %97 : vector<16x128xf32>
    %99 = arith.mulf %79, %98 : vector<16x128xf32>
    %100 = arith.addf %94, %99 : vector<16x128xf32>
    %101 = math.tanh %100 : vector<16x128xf32>
    %cst_40 = arith.constant 1.000000e+00 : f32
    %102 = vector.broadcast %cst_40 : f32 to vector<16x128xf32>
    %103 = arith.subf %102, %90 : vector<16x128xf32>
    %104 = arith.mulf %103, %101 : vector<16x128xf32>
    %105 = arith.mulf %90, %3 : vector<16x128xf32>
    %106 = arith.addf %104, %105 : vector<16x128xf32>
    %c0_41 = arith.constant 0 : index
    %c0_42 = arith.constant 0 : index
    %107 = vector.load %arg7[%c0_41, %c0_42] : memref<128x640xf32, #tpu.memory_space<vmem>>, vector<128x640xf32>
    %cst_43 = arith.constant dense<0.000000e+00> : vector<16x640xf32>
    %108 = tpu.matmul %106, %107, %cst_43 {dimension_numbers = #tpu.dot_dimension_numbers<[1], [0], [0], [1], [0, 0, 1, 1], [], []>} : vector<16x128xf32>, vector<128x640xf32>, vector<16x640xf32> -> vector<16x640xf32>
    %c10 = arith.constant 10 : index
    %c0_44 = arith.constant 0 : index
    %109 = vector.load %arg11[%c10, %c0_44] : memref<25x640xf32, #tpu.memory_space<vmem>>, vector<1x640xf32>
    %110 = vector.broadcast %109 : vector<1x640xf32> to vector<16x640xf32>
    %111 = arith.addf %108, %110 : vector<16x640xf32>
    %cst_45 = arith.constant 0.000000e+00 : f32
    %112 = vector.broadcast %cst_45 : f32 to vector<16x640xf32>
    %113 = arith.cmpf ogt, %111, %112 : vector<16x640xf32>
    %114 = math.exp %111 : vector<16x640xf32>
    %cst_46 = arith.constant 1.000000e+00 : f32
    %115 = vector.broadcast %cst_46 : f32 to vector<16x640xf32>
    %116 = arith.subf %114, %115 : vector<16x640xf32>
    %117 = arith.select %113, %111, %116 : vector<16x640xi1>, vector<16x640xf32>
    %118 = vector.extract_strided_slice %117 {offsets = [0, 0], sizes = [16, 128], strides = [1, 1]} : vector<16x640xf32> to vector<16x128xf32>
    %c0_47 = arith.constant 0 : index
    %c0_48 = arith.constant 0 : index
    %119 = vector.load %arg8[%c0_47, %c0_48] : memref<128x640xf32, #tpu.memory_space<vmem>>, vector<128x128xf32>
    %cst_49 = arith.constant dense<0.000000e+00> : vector<16x128xf32>
    %120 = tpu.matmul %118, %119, %cst_49 {dimension_numbers = #tpu.dot_dimension_numbers<[1], [0], [0], [1], [0, 0, 1, 1], [], []>} : vector<16x128xf32>, vector<128x128xf32>, vector<16x128xf32> -> vector<16x128xf32>
    %c11 = arith.constant 11 : index
    %c0_50 = arith.constant 0 : index
    %121 = vector.load %arg11[%c11, %c0_50] : memref<25x640xf32, #tpu.memory_space<vmem>>, vector<1x128xf32>
    %122 = vector.broadcast %121 : vector<1x128xf32> to vector<16x128xf32>
    %123 = arith.addf %120, %122 : vector<16x128xf32>
    %cst_51 = arith.constant 0.000000e+00 : f32
    %124 = vector.broadcast %cst_51 : f32 to vector<16x128xf32>
    %125 = arith.cmpf ogt, %123, %124 : vector<16x128xf32>
    %126 = math.exp %123 : vector<16x128xf32>
    %cst_52 = arith.constant 1.000000e+00 : f32
    %127 = vector.broadcast %cst_52 : f32 to vector<16x128xf32>
    %128 = arith.subf %126, %127 : vector<16x128xf32>
    %129 = arith.select %125, %123, %128 : vector<16x128xi1>, vector<16x128xf32>
    %130 = vector.extract_strided_slice %117 {offsets = [0, 128], sizes = [16, 128], strides = [1, 1]} : vector<16x640xf32> to vector<16x128xf32>
    %c0_53 = arith.constant 0 : index
    %c128_54 = arith.constant 128 : index
    %131 = vector.load %arg8[%c0_53, %c128_54] : memref<128x640xf32, #tpu.memory_space<vmem>>, vector<128x128xf32>
    %cst_55 = arith.constant dense<0.000000e+00> : vector<16x128xf32>
    %132 = tpu.matmul %130, %131, %cst_55 {dimension_numbers = #tpu.dot_dimension_numbers<[1], [0], [0], [1], [0, 0, 1, 1], [], []>} : vector<16x128xf32>, vector<128x128xf32>, vector<16x128xf32> -> vector<16x128xf32>
    %c12 = arith.constant 12 : index
    %c0_56 = arith.constant 0 : index
    %133 = vector.load %arg11[%c12, %c0_56] : memref<25x640xf32, #tpu.memory_space<vmem>>, vector<1x128xf32>
    %134 = vector.broadcast %133 : vector<1x128xf32> to vector<16x128xf32>
    %135 = arith.addf %132, %134 : vector<16x128xf32>
    %cst_57 = arith.constant 0.000000e+00 : f32
    %136 = vector.broadcast %cst_57 : f32 to vector<16x128xf32>
    %137 = arith.cmpf ogt, %135, %136 : vector<16x128xf32>
    %138 = math.exp %135 : vector<16x128xf32>
    %cst_58 = arith.constant 1.000000e+00 : f32
    %139 = vector.broadcast %cst_58 : f32 to vector<16x128xf32>
    %140 = arith.subf %138, %139 : vector<16x128xf32>
    %141 = arith.select %137, %135, %140 : vector<16x128xi1>, vector<16x128xf32>
    %142 = vector.extract_strided_slice %117 {offsets = [0, 256], sizes = [16, 128], strides = [1, 1]} : vector<16x640xf32> to vector<16x128xf32>
    %c0_59 = arith.constant 0 : index
    %c256_60 = arith.constant 256 : index
    %143 = vector.load %arg8[%c0_59, %c256_60] : memref<128x640xf32, #tpu.memory_space<vmem>>, vector<128x128xf32>
    %cst_61 = arith.constant dense<0.000000e+00> : vector<16x128xf32>
    %144 = tpu.matmul %142, %143, %cst_61 {dimension_numbers = #tpu.dot_dimension_numbers<[1], [0], [0], [1], [0, 0, 1, 1], [], []>} : vector<16x128xf32>, vector<128x128xf32>, vector<16x128xf32> -> vector<16x128xf32>
    %c13 = arith.constant 13 : index
    %c0_62 = arith.constant 0 : index
    %145 = vector.load %arg11[%c13, %c0_62] : memref<25x640xf32, #tpu.memory_space<vmem>>, vector<1x128xf32>
    %146 = vector.broadcast %145 : vector<1x128xf32> to vector<16x128xf32>
    %147 = arith.addf %144, %146 : vector<16x128xf32>
    %cst_63 = arith.constant 0.000000e+00 : f32
    %148 = vector.broadcast %cst_63 : f32 to vector<16x128xf32>
    %149 = arith.cmpf ogt, %147, %148 : vector<16x128xf32>
    %150 = math.exp %147 : vector<16x128xf32>
    %cst_64 = arith.constant 1.000000e+00 : f32
    %151 = vector.broadcast %cst_64 : f32 to vector<16x128xf32>
    %152 = arith.subf %150, %151 : vector<16x128xf32>
    %153 = arith.select %149, %147, %152 : vector<16x128xi1>, vector<16x128xf32>
    %154 = vector.extract_strided_slice %117 {offsets = [0, 384], sizes = [16, 128], strides = [1, 1]} : vector<16x640xf32> to vector<16x128xf32>
    %c0_65 = arith.constant 0 : index
    %c384_66 = arith.constant 384 : index
    %155 = vector.load %arg8[%c0_65, %c384_66] : memref<128x640xf32, #tpu.memory_space<vmem>>, vector<128x128xf32>
    %cst_67 = arith.constant dense<0.000000e+00> : vector<16x128xf32>
    %156 = tpu.matmul %154, %155, %cst_67 {dimension_numbers = #tpu.dot_dimension_numbers<[1], [0], [0], [1], [0, 0, 1, 1], [], []>} : vector<16x128xf32>, vector<128x128xf32>, vector<16x128xf32> -> vector<16x128xf32>
    %c14 = arith.constant 14 : index
    %c0_68 = arith.constant 0 : index
    %157 = vector.load %arg11[%c14, %c0_68] : memref<25x640xf32, #tpu.memory_space<vmem>>, vector<1x128xf32>
    %158 = vector.broadcast %157 : vector<1x128xf32> to vector<16x128xf32>
    %159 = arith.addf %156, %158 : vector<16x128xf32>
    %cst_69 = arith.constant 0.000000e+00 : f32
    %160 = vector.broadcast %cst_69 : f32 to vector<16x128xf32>
    %161 = arith.cmpf ogt, %159, %160 : vector<16x128xf32>
    %162 = math.exp %159 : vector<16x128xf32>
    %cst_70 = arith.constant 1.000000e+00 : f32
    %163 = vector.broadcast %cst_70 : f32 to vector<16x128xf32>
    %164 = arith.subf %162, %163 : vector<16x128xf32>
    %165 = arith.select %161, %159, %164 : vector<16x128xi1>, vector<16x128xf32>
    %166 = vector.extract_strided_slice %117 {offsets = [0, 512], sizes = [16, 128], strides = [1, 1]} : vector<16x640xf32> to vector<16x128xf32>
    %c0_71 = arith.constant 0 : index
    %c512_72 = arith.constant 512 : index
    %167 = vector.load %arg8[%c0_71, %c512_72] : memref<128x640xf32, #tpu.memory_space<vmem>>, vector<128x128xf32>
    %cst_73 = arith.constant dense<0.000000e+00> : vector<16x128xf32>
    %168 = tpu.matmul %166, %167, %cst_73 {dimension_numbers = #tpu.dot_dimension_numbers<[1], [0], [0], [1], [0, 0, 1, 1], [], []>} : vector<16x128xf32>, vector<128x128xf32>, vector<16x128xf32> -> vector<16x128xf32>
    %c15 = arith.constant 15 : index
    %c0_74 = arith.constant 0 : index
    %169 = vector.load %arg11[%c15, %c0_74] : memref<25x640xf32, #tpu.memory_space<vmem>>, vector<1x128xf32>
    %170 = vector.broadcast %169 : vector<1x128xf32> to vector<16x128xf32>
    %171 = arith.addf %168, %170 : vector<16x128xf32>
    %cst_75 = arith.constant 0.000000e+00 : f32
    %172 = vector.broadcast %cst_75 : f32 to vector<16x128xf32>
    %173 = arith.cmpf ogt, %171, %172 : vector<16x128xf32>
    %174 = math.exp %171 : vector<16x128xf32>
    %cst_76 = arith.constant 1.000000e+00 : f32
    %175 = vector.broadcast %cst_76 : f32 to vector<16x128xf32>
    %176 = arith.subf %174, %175 : vector<16x128xf32>
    %177 = arith.select %173, %171, %176 : vector<16x128xi1>, vector<16x128xf32>
    %c0_77 = arith.constant 0 : index
    %c0_78 = arith.constant 0 : index
    %178 = vector.load %arg9[%c0_77, %c0_78] : memref<128x896xf32, #tpu.memory_space<vmem>>, vector<128x128xf32>
    %cst_79 = arith.constant dense<0.000000e+00> : vector<16x128xf32>
    %179 = tpu.matmul %129, %178, %cst_79 {dimension_numbers = #tpu.dot_dimension_numbers<[1], [0], [0], [1], [0, 0, 1, 1], [], []>} : vector<16x128xf32>, vector<128x128xf32>, vector<16x128xf32> -> vector<16x128xf32>
    %c16 = arith.constant 16 : index
    %c0_80 = arith.constant 0 : index
    %180 = vector.load %arg11[%c16, %c0_80] : memref<25x640xf32, #tpu.memory_space<vmem>>, vector<1x128xf32>
    %181 = vector.broadcast %180 : vector<1x128xf32> to vector<16x128xf32>
    %182 = arith.addf %179, %181 : vector<16x128xf32>
    %183 = arith.negf %182 : vector<16x128xf32>
    %184 = math.exp %183 : vector<16x128xf32>
    %cst_81 = arith.constant 1.000000e+00 : f32
    %185 = vector.broadcast %cst_81 : f32 to vector<16x128xf32>
    %186 = arith.addf %185, %184 : vector<16x128xf32>
    %187 = arith.divf %185, %186 : vector<16x128xf32>
    %188 = arith.mulf %187, %19 : vector<16x128xf32>
    %c0_82 = arith.constant 0 : index
    %c128_83 = arith.constant 128 : index
    %189 = vector.load %arg9[%c0_82, %c128_83] : memref<128x896xf32, #tpu.memory_space<vmem>>, vector<128x128xf32>
    %cst_84 = arith.constant dense<0.000000e+00> : vector<16x128xf32>
    %190 = tpu.matmul %141, %189, %cst_84 {dimension_numbers = #tpu.dot_dimension_numbers<[1], [0], [0], [1], [0, 0, 1, 1], [], []>} : vector<16x128xf32>, vector<128x128xf32>, vector<16x128xf32> -> vector<16x128xf32>
    %c17 = arith.constant 17 : index
    %c0_85 = arith.constant 0 : index
    %191 = vector.load %arg11[%c17, %c0_85] : memref<25x640xf32, #tpu.memory_space<vmem>>, vector<1x128xf32>
    %192 = vector.broadcast %191 : vector<1x128xf32> to vector<16x128xf32>
    %193 = arith.addf %190, %192 : vector<16x128xf32>
    %194 = arith.addf %193, %188 : vector<16x128xf32>
    %c0_86 = arith.constant 0 : index
    %c0_87 = arith.constant 0 : index
    %195 = vector.load %arg10[%c0_86, %c0_87] : memref<896x256xf32, #tpu.memory_space<vmem>>, vector<128x256xf32>
    %cst_88 = arith.constant dense<0.000000e+00> : vector<16x256xf32>
    %196 = tpu.matmul %0, %195, %cst_88 {dimension_numbers = #tpu.dot_dimension_numbers<[1], [0], [0], [1], [0, 0, 1, 1], [], []>} : vector<16x128xf32>, vector<128x256xf32>, vector<16x256xf32> -> vector<16x256xf32>
    %c128_89 = arith.constant 128 : index
    %c0_90 = arith.constant 0 : index
    %197 = vector.load %arg10[%c128_89, %c0_90] : memref<896x256xf32, #tpu.memory_space<vmem>>, vector<128x256xf32>
    %cst_91 = arith.constant dense<0.000000e+00> : vector<16x256xf32>
    %198 = tpu.matmul %194, %197, %cst_91 {dimension_numbers = #tpu.dot_dimension_numbers<[1], [0], [0], [1], [0, 0, 1, 1], [], []>} : vector<16x128xf32>, vector<128x256xf32>, vector<16x256xf32> -> vector<16x256xf32>
    %199 = arith.addf %196, %198 : vector<16x256xf32>
    %c21 = arith.constant 21 : index
    %c0_92 = arith.constant 0 : index
    %200 = vector.load %arg11[%c21, %c0_92] : memref<25x640xf32, #tpu.memory_space<vmem>>, vector<1x256xf32>
    %201 = vector.broadcast %200 : vector<1x256xf32> to vector<16x256xf32>
    %202 = arith.addf %199, %201 : vector<16x256xf32>
    %cst_93 = arith.constant 0.000000e+00 : f32
    %203 = vector.broadcast %cst_93 : f32 to vector<16x256xf32>
    %204 = arith.cmpf ogt, %202, %203 : vector<16x256xf32>
    %205 = math.exp %202 : vector<16x256xf32>
    %cst_94 = arith.constant 1.000000e+00 : f32
    %206 = vector.broadcast %cst_94 : f32 to vector<16x256xf32>
    %207 = arith.subf %205, %206 : vector<16x256xf32>
    %208 = arith.select %204, %202, %207 : vector<16x256xi1>, vector<16x256xf32>
    %c256_95 = arith.constant 256 : index
    %c0_96 = arith.constant 0 : index
    %209 = vector.load %arg10[%c256_95, %c0_96] : memref<896x256xf32, #tpu.memory_space<vmem>>, vector<256x256xf32>
    %cst_97 = arith.constant dense<0.000000e+00> : vector<16x256xf32>
    %210 = tpu.matmul %208, %209, %cst_97 {dimension_numbers = #tpu.dot_dimension_numbers<[1], [0], [0], [1], [0, 0, 1, 1], [], []>} : vector<16x256xf32>, vector<256x256xf32>, vector<16x256xf32> -> vector<16x256xf32>
    %c22 = arith.constant 22 : index
    %c0_98 = arith.constant 0 : index
    %211 = vector.load %arg11[%c22, %c0_98] : memref<25x640xf32, #tpu.memory_space<vmem>>, vector<1x256xf32>
    %212 = vector.broadcast %211 : vector<1x256xf32> to vector<16x256xf32>
    %213 = arith.addf %210, %212 : vector<16x256xf32>
    %cst_99 = arith.constant 0.000000e+00 : f32
    %214 = vector.broadcast %cst_99 : f32 to vector<16x256xf32>
    %215 = arith.cmpf ogt, %213, %214 : vector<16x256xf32>
    %216 = math.exp %213 : vector<16x256xf32>
    %cst_100 = arith.constant 1.000000e+00 : f32
    %217 = vector.broadcast %cst_100 : f32 to vector<16x256xf32>
    %218 = arith.subf %216, %217 : vector<16x256xf32>
    %219 = arith.select %215, %213, %218 : vector<16x256xi1>, vector<16x256xf32>
    %c512_101 = arith.constant 512 : index
    %c0_102 = arith.constant 0 : index
    %220 = vector.load %arg10[%c512_101, %c0_102] : memref<896x256xf32, #tpu.memory_space<vmem>>, vector<256x128xf32>
    %cst_103 = arith.constant dense<0.000000e+00> : vector<16x128xf32>
    %221 = tpu.matmul %219, %220, %cst_103 {dimension_numbers = #tpu.dot_dimension_numbers<[1], [0], [0], [1], [0, 0, 1, 1], [], []>} : vector<16x256xf32>, vector<256x128xf32>, vector<16x128xf32> -> vector<16x128xf32>
    %c23 = arith.constant 23 : index
    %c0_104 = arith.constant 0 : index
    %222 = vector.load %arg11[%c23, %c0_104] : memref<25x640xf32, #tpu.memory_space<vmem>>, vector<1x128xf32>
    %223 = vector.broadcast %222 : vector<1x128xf32> to vector<16x128xf32>
    %224 = arith.addf %221, %223 : vector<16x128xf32>
    %cst_105 = arith.constant 0.000000e+00 : f32
    %225 = vector.broadcast %cst_105 : f32 to vector<16x128xf32>
    %226 = arith.cmpf ogt, %224, %225 : vector<16x128xf32>
    %227 = math.exp %224 : vector<16x128xf32>
    %cst_106 = arith.constant 1.000000e+00 : f32
    %228 = vector.broadcast %cst_106 : f32 to vector<16x128xf32>
    %229 = arith.subf %227, %228 : vector<16x128xf32>
    %230 = arith.select %226, %224, %229 : vector<16x128xi1>, vector<16x128xf32>
    %c768 = arith.constant 768 : index
    %c0_107 = arith.constant 0 : index
    %231 = vector.load %arg10[%c768, %c0_107] : memref<896x256xf32, #tpu.memory_space<vmem>>, vector<128x128xf32>
    %cst_108 = arith.constant dense<0.000000e+00> : vector<16x128xf32>
    %232 = tpu.matmul %230, %231, %cst_108 {dimension_numbers = #tpu.dot_dimension_numbers<[1], [0], [0], [1], [0, 0, 1, 1], [], []>} : vector<16x128xf32>, vector<128x128xf32>, vector<16x128xf32> -> vector<16x128xf32>
    %c24 = arith.constant 24 : index
    %c0_109 = arith.constant 0 : index
    %233 = vector.load %arg11[%c24, %c0_109] : memref<25x640xf32, #tpu.memory_space<vmem>>, vector<1x128xf32>
    %234 = vector.broadcast %233 : vector<1x128xf32> to vector<16x128xf32>
    %235 = arith.addf %232, %234 : vector<16x128xf32>
    %c0_110 = arith.constant 0 : index
    %c256_111 = arith.constant 256 : index
    %236 = vector.load %arg9[%c0_110, %c256_111] : memref<128x896xf32, #tpu.memory_space<vmem>>, vector<128x256xf32>
    %cst_112 = arith.constant dense<0.000000e+00> : vector<16x256xf32>
    %237 = tpu.matmul %153, %236, %cst_112 {dimension_numbers = #tpu.dot_dimension_numbers<[1], [0], [0], [1], [0, 0, 1, 1], [], []>} : vector<16x128xf32>, vector<128x256xf32>, vector<16x256xf32> -> vector<16x256xf32>
    %c18 = arith.constant 18 : index
    %c0_113 = arith.constant 0 : index
    %238 = vector.load %arg11[%c18, %c0_113] : memref<25x640xf32, #tpu.memory_space<vmem>>, vector<1x256xf32>
    %239 = vector.broadcast %238 : vector<1x256xf32> to vector<16x256xf32>
    %240 = arith.addf %237, %239 : vector<16x256xf32>
    %241 = arith.negf %240 : vector<16x256xf32>
    %242 = math.exp %241 : vector<16x256xf32>
    %cst_114 = arith.constant 1.000000e+00 : f32
    %243 = vector.broadcast %cst_114 : f32 to vector<16x256xf32>
    %244 = arith.addf %243, %242 : vector<16x256xf32>
    %245 = arith.divf %243, %244 : vector<16x256xf32>
    %c0_115 = arith.constant 0 : index
    %c512_116 = arith.constant 512 : index
    %246 = vector.load %arg9[%c0_115, %c512_116] : memref<128x896xf32, #tpu.memory_space<vmem>>, vector<128x256xf32>
    %cst_117 = arith.constant dense<0.000000e+00> : vector<16x256xf32>
    %247 = tpu.matmul %165, %246, %cst_117 {dimension_numbers = #tpu.dot_dimension_numbers<[1], [0], [0], [1], [0, 0, 1, 1], [], []>} : vector<16x128xf32>, vector<128x256xf32>, vector<16x256xf32> -> vector<16x256xf32>
    %c19 = arith.constant 19 : index
    %c0_118 = arith.constant 0 : index
    %248 = vector.load %arg11[%c19, %c0_118] : memref<25x640xf32, #tpu.memory_space<vmem>>, vector<1x256xf32>
    %249 = vector.broadcast %248 : vector<1x256xf32> to vector<16x256xf32>
    %250 = arith.addf %247, %249 : vector<16x256xf32>
    %c0_119 = arith.constant 0 : index
    %c768_120 = arith.constant 768 : index
    %251 = vector.load %arg9[%c0_119, %c768_120] : memref<128x896xf32, #tpu.memory_space<vmem>>, vector<128x128xf32>
    %cst_121 = arith.constant dense<0.000000e+00> : vector<16x128xf32>
    %252 = tpu.matmul %177, %251, %cst_121 {dimension_numbers = #tpu.dot_dimension_numbers<[1], [0], [0], [1], [0, 0, 1, 1], [], []>} : vector<16x128xf32>, vector<128x128xf32>, vector<16x128xf32> -> vector<16x128xf32>
    %c20 = arith.constant 20 : index
    %c0_122 = arith.constant 0 : index
    %253 = vector.load %arg11[%c20, %c0_122] : memref<25x640xf32, #tpu.memory_space<vmem>>, vector<1x128xf32>
    %254 = vector.broadcast %253 : vector<1x128xf32> to vector<16x128xf32>
    %255 = arith.addf %252, %254 : vector<16x128xf32>
    %c0_123 = arith.constant 0 : index
    %c0_124 = arith.constant 0 : index
    %256 = vector.load %arg12[%c0_123, %c0_124] : memref<16x128xf32, #tpu.memory_space<vmem>>, vector<16x128xf32>
    tpu.vector_store %arg12[%c0_123, %c0_124], %235 {strides = array<i32>} : memref<16x128xf32, #tpu.memory_space<vmem>>, vector<16x128xf32>,
    %c0_125 = arith.constant 0 : index
    %c0_126 = arith.constant 0 : index
    %257 = vector.load %arg14[%c0_125, %c0_126] : memref<16x128xf32, #tpu.memory_space<vmem>>, vector<16x128xf32>
    tpu.vector_store %arg14[%c0_125, %c0_126], %255 {strides = array<i32>} : memref<16x128xf32, #tpu.memory_space<vmem>>, vector<16x128xf32>,
    %c0_127 = arith.constant 0 : index
    %c0_128 = arith.constant 0 : index
    %258 = vector.load %arg15[%c0_127, %c0_128] : memref<16x128xf32, #tpu.memory_space<vmem>>, vector<16x128xf32>
    tpu.vector_store %arg15[%c0_127, %c0_128], %64 {strides = array<i32>} : memref<16x128xf32, #tpu.memory_space<vmem>>, vector<16x128xf32>,
    %c0_129 = arith.constant 0 : index
    %c0_130 = arith.constant 0 : index
    %259 = vector.load %arg16[%c0_129, %c0_130] : memref<16x128xf32, #tpu.memory_space<vmem>>, vector<16x128xf32>
    tpu.vector_store %arg16[%c0_129, %c0_130], %106 {strides = array<i32>} : memref<16x128xf32, #tpu.memory_space<vmem>>, vector<16x128xf32>,
    %c0_131 = arith.constant 0 : index
    %c0_132 = arith.constant 0 : index
    %260 = vector.load %arg13[%c0_131, %c0_132] : memref<16x256xf32, #tpu.memory_space<vmem>>, vector<16x256xf32>
    tpu.vector_store %arg13[%c0_131, %c0_132], %250 {strides = array<i32>} : memref<16x256xf32, #tpu.memory_space<vmem>>, vector<16x256xf32>,
    %261 = vector.extract_strided_slice %250 {offsets = [0, 0], sizes = [16, 208], strides = [1, 1]} : vector<16x256xf32> to vector<16x208xf32>
    %262 = vector.extract_strided_slice %245 {offsets = [0, 0], sizes = [16, 208], strides = [1, 1]} : vector<16x256xf32> to vector<16x208xf32>
    %263 = arith.mulf %262, %1 : vector<16x208xf32>
    %264 = arith.addf %261, %263 : vector<16x208xf32>
    %c0_133 = arith.constant 0 : index
    %c0_134 = arith.constant 0 : index
    %265 = vector.load %arg13[%c0_133, %c0_134] : memref<16x256xf32, #tpu.memory_space<vmem>>, vector<16x208xf32>
    tpu.vector_store %arg13[%c0_133, %c0_134], %264 {strides = array<i32>} : memref<16x256xf32, #tpu.memory_space<vmem>>, vector<16x208xf32>,
    return
  }
  func.func @transform_0(%arg0: i32) -> (i32, i32) {
    %c0_i32 = arith.constant 0 : i32
    %c0_i32_0 = arith.constant 0 : i32
    return %arg0, %c0_i32 : i32, i32
  }
  func.func @transform_1(%arg0: i32) -> (i32, i32) {
    %c0_i32 = arith.constant 0 : i32
    %c0_i32_0 = arith.constant 0 : i32
    return %arg0, %c0_i32 : i32, i32
  }
  func.func @transform_2(%arg0: i32) -> (i32, i32) {
    %c0_i32 = arith.constant 0 : i32
    %c0_i32_0 = arith.constant 0 : i32
    return %arg0, %c0_i32 : i32, i32
  }
  func.func @transform_3(%arg0: i32) -> (i32, i32) {
    %c0_i32 = arith.constant 0 : i32
    %c0_i32_0 = arith.constant 0 : i32
    return %arg0, %c0_i32 : i32, i32
  }
  func.func @transform_4(%arg0: i32) -> (i32, i32) {
    %c0_i32 = arith.constant 0 : i32
    %c0_i32_0 = arith.constant 0 : i32
    %c0_i32_1 = arith.constant 0 : i32
    return %c0_i32, %c0_i32_0 : i32, i32
  }
  func.func @transform_5(%arg0: i32) -> (i32, i32) {
    %c0_i32 = arith.constant 0 : i32
    %c0_i32_0 = arith.constant 0 : i32
    %c0_i32_1 = arith.constant 0 : i32
    return %c0_i32, %c0_i32_0 : i32, i32
  }
  func.func @transform_6(%arg0: i32) -> (i32, i32) {
    %c0_i32 = arith.constant 0 : i32
    %c0_i32_0 = arith.constant 0 : i32
    %c0_i32_1 = arith.constant 0 : i32
    return %c0_i32, %c0_i32_0 : i32, i32
  }
  func.func @transform_7(%arg0: i32) -> (i32, i32) {
    %c0_i32 = arith.constant 0 : i32
    %c0_i32_0 = arith.constant 0 : i32
    %c0_i32_1 = arith.constant 0 : i32
    return %c0_i32, %c0_i32_0 : i32, i32
  }
  func.func @transform_8(%arg0: i32) -> (i32, i32) {
    %c0_i32 = arith.constant 0 : i32
    %c0_i32_0 = arith.constant 0 : i32
    %c0_i32_1 = arith.constant 0 : i32
    return %c0_i32, %c0_i32_0 : i32, i32
  }
  func.func @transform_9(%arg0: i32) -> (i32, i32) {
    %c0_i32 = arith.constant 0 : i32
    %c0_i32_0 = arith.constant 0 : i32
    %c0_i32_1 = arith.constant 0 : i32
    return %c0_i32, %c0_i32_0 : i32, i32
  }
  func.func @transform_10(%arg0: i32) -> (i32, i32) {
    %c0_i32 = arith.constant 0 : i32
    %c0_i32_0 = arith.constant 0 : i32
    %c0_i32_1 = arith.constant 0 : i32
    return %c0_i32, %c0_i32_0 : i32, i32
  }
  func.func @transform_11(%arg0: i32) -> (i32, i32) {
    %c0_i32 = arith.constant 0 : i32
    %c0_i32_0 = arith.constant 0 : i32
    return %arg0, %c0_i32 : i32, i32
  }
  func.func @transform_12(%arg0: i32) -> (i32, i32) {
    %c0_i32 = arith.constant 0 : i32
    %c0_i32_0 = arith.constant 0 : i32
    return %arg0, %c0_i32 : i32, i32
  }
  func.func @transform_13(%arg0: i32) -> (i32, i32) {
    %c0_i32 = arith.constant 0 : i32
    %c0_i32_0 = arith.constant 0 : i32
    return %arg0, %c0_i32 : i32, i32
  }
  func.func @transform_14(%arg0: i32) -> (i32, i32) {
    %c0_i32 = arith.constant 0 : i32
    %c0_i32_0 = arith.constant 0 : i32
    return %arg0, %c0_i32 : i32, i32
  }
  func.func @transform_15(%arg0: i32) -> (i32, i32) {
    %c0_i32 = arith.constant 0 : i32
    %c0_i32_0 = arith.constant 0 : i32
    return %arg0, %c0_i32 : i32, i32
  }
}

</mosaic_0001>

<bundles_post_ra>
// kernel: tpu_custom_call.1
= control target key start
LH: loop header
LB: loop body
LE: loop exit
PB: predicated region body
PF: predicated region fallthrough
CT: control target
= control target key end

     0   :  { %21 = vsyncpa [#allocation3], 0  ;;  %s6724_s0 = inlined_call_operand.vmem [shape: f32[16,128], index: 0, kind: input, shape index: {}]   ;;  %s6725_s1 = inlined_call_operand.vmem [shape: f32[16,208], index: 1, kind: input, shape index: {}]   ;;  %s6726_s2 = inlined_call_operand.hbm [shape: f32[16,128], index: 2, kind: input, shape index: {}, may-alias: {2,14}]   ;;  %s6727_s3 = inlined_call_operand.hbm [shape: f32[16,128], index: 3, kind: input, shape index: {}, may-alias: {3,15}]   ;;  %s6728_s4 = inlined_call_operand.hbm [shape: f32[336,128], index: 4, kind: input, shape index: {}]   ;;  %s6729_s5 = inlined_call_operand.hbm [shape: f32[640,384], index: 5, kind: input, shape index: {}]   ;;  %s6730_s6 = inlined_call_operand.hbm [shape: f32[128,640], index: 6, kind: input, shape index: {}]   ;;  %s6731_s7 = inlined_call_operand.hbm [shape: f32[128,640], index: 7, kind: input, shape index: {}]   ;;  %s6732_s8 = inlined_call_operand.hbm [shape: f32[128,896], index: 8, kind: input, shape index: {}]   ;;  %s6733_s9 = inlined_call_operand.hbm [shape: f32[896,256], index: 9, kind: input, shape index: {}]   ;;  %s6734_s10 = inlined_call_operand.hbm [shape: f32[25,640], index: 10, kind: input, shape index: {}]   ;;  %s6735_s11 = inlined_call_operand.hbm [shape: f32[16,128], index: 11, kind: output, shape index: {0}]   ;;  %s6736_s12 = inlined_call_operand.hbm [shape: f32[16,256], index: 12, kind: output, shape index: {1}]   ;;  %s6737_s13 = inlined_call_operand.hbm [shape: f32[16,128], index: 13, kind: output, shape index: {2}]   ;;  %s6738_s14 = inlined_call_operand.hbm [shape: f32[16,128], index: 14, kind: output, shape index: {3}, may-alias: {2,14}]   ;;  %s6739_s15 = inlined_call_operand.hbm [shape: f32[16,128], index: 15, kind: output, shape index: {4}, may-alias: {3,15}]  }
   0x1   :  { %22 = vsyncpa [#allocation6], 0 }
   0x2   :  { %23 = vsyncpa [#allocation9], 0 }
   0x3   :  { %24 = vsyncpa [#allocation12], 0 }
   0x4   :  { %25 = vsyncpa [#allocation15], 0 }
   0x5   :  { %26 = vsyncpa [#allocation4], 0 }
   0x6   :  { %27 = vsyncpa [#allocation19], 0 }
   0x7   :  { %28 = vsyncpa [#allocation22], 0  ;;  %s6137_s18 = smov [#allocation5]   ;;  %s6138_s20 = smov [#allocation8]  }
   0x8   :  { %s50_s19 = sshll.u32 %s6137_s18, 4  ;;  %s74_s21 = sshll.u32 %s6138_s20, 4  ;;  %s51_s19 = int_to_ptr.vmem [resolvable:$true] %s50_s19  ;;  %s6243_s21 = int_to_ptr.vmem [resolvable:$true] %s74_s21 }
   0x9   :  { %s5813_s24 = scalar_lea.hbm %s6727_s3, 256 }
   0xa   :  { %p5814_p0 = scmp.ne.s32.totalorder %s6727_s3, %s5813_s24  ;;  %p5817_p1 = scmp.lt.u32.totalorder %s5813_s24, %s6727_s3 }
   0xc   :  { %p5819_p2 = pnand %p5817_p1, %p5814_p0 }
   0xe   :  { %5822 = shalt.err (!%p5819_p2)
}
   0xf   :  { %s5823_s29 = scalar_lea.vmem %s51_s19, 256  ;;  %p5828_p4 = scmp.lt.s32.totalorder %s51_s19, %s51_s19 }
  0x10   :  { %p5824_p3 = scmp.ne.s32.totalorder %s51_s19, %s5823_s29  ;;  %p5829_p5 = scmp.lt.s32.totalorder %s5823_s29, %s5823_s29 }
  0x12   :  { %p5830_p6 = por %p5829_p5, %p5828_p4 }
  0x14   :  { %p5831_p7 = pnand %p5830_p6, %p5824_p3 }
  0x16   :  { %5834 = shalt.err (!%p5831_p7)
}
  0x17   :  { %s6740_s30 = smov 128   ;;  %s6742_s16 = smov 8  }
  0x18   :  { %56 = dma.hbm_to_vmem [thread:$0]  %s6727_s3, 256, %s51_s19, [#allocation6], %s6740_s30, %s6740_s30, %s6742_s16  }
  0x19   :  { %s5835_s23 = scalar_lea.hbm %s6729_s5, 30720 }
  0x1a   :  { %p5836_p8 = scmp.ne.s32.totalorder %s6729_s5, %s5835_s23  ;;  %p5839_p9 = scmp.lt.u32.totalorder %s5835_s23, %s6729_s5 }
  0x1c   :  { %p5841_p10 = pnand %p5839_p9, %p5836_p8 }
  0x1e   :  { %5844 = shalt.err (!%p5841_p10)
}
  0x1f   :  { %s5845_s28 = scalar_lea.vmem %s6243_s21, 30720  ;;  %p5850_p12 = scmp.lt.s32.totalorder %s6243_s21, %s6243_s21 }
  0x20   :  { %p5846_p11 = scmp.ne.s32.totalorder %s6243_s21, %s5845_s28  ;;  %p5851_p13 = scmp.lt.s32.totalorder %s5845_s28, %s5845_s28 }
  0x22   :  { %p5852_p0 = por %p5851_p13, %p5850_p12 }
  0x24   :  { %p5853_p1 = pnand %p5852_p0, %p5846_p11 }
  0x26   :  { %5856 = shalt.err (!%p5853_p1)
}
  0x27   :  { %s6141_s3 = smov 384   ;;  %s6142_s19 = smov 24  }
  0x28   :  { %80 = dma.hbm_to_vmem [thread:$0]  %s6729_s5, 30720, %s6243_s21, [#allocation9], %s6141_s3, %s6141_s3, %s6142_s19  }
  0x29   :  { %s6143_s18 = smov [#allocation11]   ;;  %s6144_s22 = smov [#allocation14]  }
  0x2a   :  { %s98_s20 = sshll.u32 %s6143_s18, 4  ;;  %s122_s23 = sshll.u32 %s6144_s22, 4  ;;  %s99_s20 = int_to_ptr.vmem [resolvable:$true] %s98_s20  ;;  %s6277_s23 = int_to_ptr.vmem [resolvable:$true] %s122_s23 }
  0x2b   :  { %s5857_s26 = scalar_lea.hbm %s6731_s7, 10240 }
  0x2c   :  { %p5858_p2 = scmp.ne.s32.totalorder %s6731_s7, %s5857_s26  ;;  %p5861_p3 = scmp.lt.u32.totalorder %s5857_s26, %s6731_s7 }
  0x2e   :  { %p5863_p4 = pnand %p5861_p3, %p5858_p2 }
  0x30   :  { %5866 = shalt.err (!%p5863_p4)
}
  0x31   :  { %s5867_s5 = scalar_lea.vmem %s99_s20, 10240  ;;  %p5872_p6 = scmp.lt.s32.totalorder %s99_s20, %s99_s20 }
  0x32   :  { %p5868_p5 = scmp.ne.s32.totalorder %s99_s20, %s5867_s5  ;;  %p5873_p7 = scmp.lt.s32.totalorder %s5867_s5, %s5867_s5 }
  0x34   :  { %p5874_p8 = por %p5873_p7, %p5872_p6 }
  0x36   :  { %p5875_p9 = pnand %p5874_p8, %p5868_p5 }
  0x38   :  { %5878 = shalt.err (!%p5875_p9)
}
  0x39   :  { %s6145_s21 = smov 640   ;;  %s6146_s3 = smov 40  }
  0x3a   :  { %104 = dma.hbm_to_vmem [thread:$0]  %s6731_s7, 10240, %s99_s20, [#allocation12], %s6145_s21, %s6145_s21, %s6146_s3  }
  0x3b   :  { %s5879_s17 = scalar_lea.hbm %s6733_s9, 28672 }
  0x3c   :  { %p5880_p10 = scmp.ne.s32.totalorder %s6733_s9, %s5879_s17  ;;  %p5883_p11 = scmp.lt.u32.totalorder %s5879_s17, %s6733_s9 }
  0x3e   :  { %p5885_p12 = pnand %p5883_p11, %p5880_p10 }
  0x40   :  { %5888 = shalt.err (!%p5885_p12)
}
  0x41   :  { %s5889_s26 = scalar_lea.vmem %s6277_s23, 28672  ;;  %p5894_p0 = scmp.lt.s32.totalorder %s6277_s23, %s6277_s23 }
  0x42   :  { %p5890_p13 = scmp.ne.s32.totalorder %s6277_s23, %s5889_s26  ;;  %p5895_p1 = scmp.lt.s32.totalorder %s5889_s26, %s5889_s26 }
  0x44   :  { %p5896_p2 = por %p5895_p1, %p5894_p0 }
  0x46   :  { %p5897_p3 = pnand %p5896_p2, %p5890_p13 }
  0x48   :  { %5900 = shalt.err (!%p5897_p3)
}
  0x49   :  { %s6147_s7 = smov 256   ;;  %s6148_s20 = smov 16  }
  0x4a   :  { %128 = dma.hbm_to_vmem [thread:$0]  %s6733_s9, 28672, %s6277_s23, [#allocation15], %s6147_s7, %s6147_s7, %s6148_s20  }
  0x4b   :  { %s6149_s5 = smov [#allocation2]   ;;  %s6150_s29 = smov [#allocation7]  }
  0x4c   :  { %s38_s19 = sshll.u32 %s6149_s5, 4  ;;  %s62_s30 = sshll.u32 %s6150_s29, 4  ;;  %s39_s19 = int_to_ptr.vmem [resolvable:$true] %s38_s19  ;;  %s6314_s30 = int_to_ptr.vmem [resolvable:$true] %s62_s30 }
  0x4d   :  { %s5901_s18 = scalar_lea.hbm %s6726_s2, 256 }
  0x4e   :  { %p5902_p4 = scmp.ne.s32.totalorder %s6726_s2, %s5901_s18  ;;  %p5905_p5 = scmp.lt.u32.totalorder %s5901_s18, %s6726_s2 }
  0x50   :  { %p5907_p6 = pnand %p5905_p5, %p5902_p4 }
  0x52   :  { %5910 = shalt.err (!%p5907_p6)
}
  0x53   :  { %s5911_s9 = scalar_lea.vmem %s39_s19, 256  ;;  %p5916_p8 = scmp.lt.s32.totalorder %s39_s19, %s39_s19 }
  0x54   :  { %p5912_p7 = scmp.ne.s32.totalorder %s39_s19, %s5911_s9  ;;  %p5917_p9 = scmp.lt.s32.totalorder %s5911_s9, %s5911_s9 }
  0x56   :  { %p5918_p10 = por %p5917_p9, %p5916_p8 }
  0x58   :  { %p5919_p11 = pnand %p5918_p10, %p5912_p7 }
  0x5a   :  { %5922 = shalt.err (!%p5919_p11)
}
  0x5b   :  { %s6744_s23 = smov 8   ;;  %s6745_s27 = smov 128  }
  0x5c   :  { %44 = dma.hbm_to_vmem [thread:$0]  %s6726_s2, 256, %s39_s19, [#allocation3], %s6745_s27, %s6745_s27, %s6744_s23  }
  0x5d   :  { %s5923_s17 = scalar_lea.hbm %s6728_s4, 5376 }
  0x5e   :  { %p5924_p12 = scmp.ne.s32.totalorder %s6728_s4, %s5923_s17  ;;  %p5927_p13 = scmp.lt.u32.totalorder %s5923_s17, %s6728_s4 }
  0x60   :  { %p5929_p0 = pnand %p5927_p13, %p5924_p12 }
  0x62   :  { %5932 = shalt.err (!%p5929_p0)
}
  0x63   :  { %s5933_s26 = scalar_lea.vmem %s6314_s30, 5376  ;;  %p5938_p2 = scmp.lt.s32.totalorder %s6314_s30, %s6314_s30 }
  0x64   :  { %p5934_p1 = scmp.ne.s32.totalorder %s6314_s30, %s5933_s26  ;;  %p5939_p3 = scmp.lt.s32.totalorder %s5933_s26, %s5933_s26 }
  0x66   :  { %p5940_p4 = por %p5939_p3, %p5938_p2 }
  0x68   :  { %p5941_p5 = pnand %p5940_p4, %p5934_p1 }
  0x6a   :  { %5944 = shalt.err (!%p5941_p5)
}
  0x6b   :  { %68 = dma.hbm_to_vmem [thread:$0]  %s6728_s4, 5376, %s6314_s30, [#allocation6], %s6745_s27, %s6745_s27, %s6744_s23  }
  0x6c   :  { %s6151_s9 = smov [#allocation10]   ;;  %s6152_s5 = smov [#allocation13]  }
  0x6d   :  { %s86_s28 = sshll.u32 %s6151_s9, 4  ;;  %s110_s29 = sshll.u32 %s6152_s5, 4  ;;  %s87_s28 = int_to_ptr.vmem [resolvable:$true] %s86_s28  ;;  %s6351_s29 = int_to_ptr.vmem [resolvable:$true] %s110_s29 }
  0x6e   :  { %s5945_s18 = scalar_lea.hbm %s6730_s6, 10240 }
  0x6f   :  { %p5946_p6 = scmp.ne.s32.totalorder %s6730_s6, %s5945_s18  ;;  %p5949_p7 = scmp.lt.u32.totalorder %s5945_s18, %s6730_s6 }
  0x71   :  { %p5951_p8 = pnand %p5949_p7, %p5946_p6 }
  0x73   :  { %5954 = shalt.err (!%p5951_p8)
}
  0x74   :  { %s5955_s4 = scalar_lea.vmem %s87_s28, 10240  ;;  %p5960_p10 = scmp.lt.s32.totalorder %s87_s28, %s87_s28 }
  0x75   :  { %p5956_p9 = scmp.ne.s32.totalorder %s87_s28, %s5955_s4  ;;  %p5961_p11 = scmp.lt.s32.totalorder %s5955_s4, %s5955_s4 }
  0x77   :  { %p5962_p12 = por %p5961_p11, %p5960_p10 }
  0x79   :  { %p5963_p13 = pnand %p5962_p12, %p5956_p9 }
  0x7b   :  { %5966 = shalt.err (!%p5963_p13)
}
  0x7c   :  { %92 = dma.hbm_to_vmem [thread:$0]  %s6730_s6, 10240, %s87_s28, [#allocation9], %s6145_s21, %s6145_s21, %s6146_s3  }
  0x7d   :  { %s5967_s5 = scalar_lea.hbm %s6732_s8, 14336 }
  0x7e   :  { %p5968_p0 = scmp.ne.s32.totalorder %s6732_s8, %s5967_s5  ;;  %p5971_p1 = scmp.lt.u32.totalorder %s5967_s5, %s6732_s8 }
  0x80   :  { %p5973_p2 = pnand %p5971_p1, %p5968_p0 }
  0x82   :  { %5976 = shalt.err (!%p5973_p2)
}
  0x83   :  { %s5977_s24 = scalar_lea.vmem %s6351_s29, 14336  ;;  %p5982_p4 = scmp.lt.s32.totalorder %s6351_s29, %s6351_s29 }
  0x84   :  { %p5978_p3 = scmp.ne.s32.totalorder %s6351_s29, %s5977_s24  ;;  %p5983_p5 = scmp.lt.s32.totalorder %s5977_s24, %s5977_s24 }
  0x86   :  { %p5984_p6 = por %p5983_p5, %p5982_p4 }
  0x88   :  { %p5985_p7 = pnand %p5984_p6, %p5978_p3 }
  0x8a   :  { %5988 = shalt.err (!%p5985_p7)
}
  0x8b   :  { %s6153_s6 = smov 896   ;;  %s6154_s28 = smov 56  }
  0x8c   :  { %116 = dma.hbm_to_vmem [thread:$0]  %s6732_s8, 14336, %s6351_s29, [#allocation12], %s6153_s6, %s6153_s6, %s6154_s28  }
  0x8d   :  { %s6155_s4 = smov [#allocation16]   ;;  %s5989_s9 = scalar_lea.hbm %s6734_s10, 2560 }
  0x8e   :  { %s134_s30 = sshll.u32 %s6155_s4, 4  ;;  %p5990_p8 = scmp.ne.s32.totalorder %s6734_s10, %s5989_s9  ;;  %s135_s30 = int_to_ptr.vmem [resolvable:$true] %s134_s30 }
  0x8f   :  { %p5993_p9 = scmp.lt.u32.totalorder %s5989_s9, %s6734_s10 }
  0x91   :  { %p5995_p10 = pnand %p5993_p9, %p5990_p8 }
  0x93   :  { %5998 = shalt.err (!%p5995_p10)
}
  0x94   :  { %s5999_s22 = scalar_lea.vmem %s135_s30, 2560  ;;  %p6004_p12 = scmp.lt.s32.totalorder %s135_s30, %s135_s30 }
  0x95   :  { %p6000_p11 = scmp.ne.s32.totalorder %s135_s30, %s5999_s22  ;;  %p6005_p13 = scmp.lt.s32.totalorder %s5999_s22, %s5999_s22 }
  0x97   :  { %p6006_p0 = por %p6005_p13, %p6004_p12 }
  0x99   :  { %p6007_p1 = pnand %p6006_p0, %p6000_p11 }
  0x9b   :  { %6010 = shalt.err (!%p6007_p1)
}
  0x9c   :  { %140 = dma.hbm_to_vmem [thread:$0]  %s6734_s10, 2560, %s135_s30, [#allocation15], %s6145_s21, %s6145_s21, %s6146_s3  }
  0x9d   :  { %6121 = dma.done.wait [#allocation3], 256  }
  0x9e   :  { %6122 = vsyncadd [#allocation3], 4294967040 }
  0x9f   :  { %6123 = dma.done.wait [#allocation6], 5632  }
  0xa0   :  { %6124 = vsyncadd [#allocation6], 4294961664 }
  0xa1   :  { %6125 = dma.done.wait [#allocation9], 40960  }
  0xa2   :  { %6126 = vsyncadd [#allocation9], 4294926336 }
  0xa3   :  { %6127 = dma.done.wait [#allocation12], 24576  }
  0xa4   :  { %6128 = vsyncadd [#allocation12], 4294942720 }
  0xa5   :  { %6129 = dma.done.wait [#allocation15], 31232  }
  0xa6   :  { %6130 = vsyncadd [#allocation15], 4294936064  ;;  %v6156_v0 = vmov 0.0|0.0   ;;  %v178_v1 = vld [vmem:[#allocation7] sm:$0xff]  ;;  %v179_v2 = vld [vmem:[#allocation7 + $0x8] sm:$0xff]  ;;  %vm205_vm0 = vcmask 654336  }
  0xa7   :  { %4636 = vmatprep.subr.bf16.mxu0 %v6156_v0  ;;  %v180_v3 = vld [vmem:[#allocation7 + $0x10] sm:$0xff]  ;;  %v4637_v4 = vpack.c.bf16 %v179_v2, %v178_v1  ;;  %v181_v5 = vld [vmem:[#allocation7 + $0x18] sm:$0xff]  ;;  %v182_v7 = vld [vmem:[#allocation7 + $0x20] sm:$0xff] }
  0xa8   :  { %v4640_v6 = vpack.c.bf16 %v181_v5, %v180_v3  ;;  %v183_v8 = vld [vmem:[#allocation7 + $0x28] sm:$0xff]  ;;  %v184_v10 = vld [vmem:[#allocation7 + $0x30] sm:$0xff]  ;;  %v185_v11 = vld [vmem:[#allocation7 + $0x38] sm:$0xff] }
  0xa9   :  { %4638 = vmatpush1.bf16.msra.mxu0 %v4637_v4  ;;  %v4643_v9 = vpack.c.bf16 %v183_v8, %v182_v7  ;;  %v171_v12 = vld [vmem:[%s6725_s1 + $0x8] sm:$0xff]  ;;  %v297_v13 = vld [vmem:[#allocation7 + $0xd0] sm:$0xff]  ;;  %v298_v14 = vld [vmem:[#allocation7 + $0xd8] sm:$0xff]  ;;  %v4646_v16 = vpack.c.bf16 %v185_v11, %v184_v10 }
  0xaa   :  { %4639 = vmatprep.subr.bf16.mxu0 %v6156_v0  ;;  %3702 = vmatprep.mubr.msk.f32.mxu0 %vm205_vm0, %v171_v12  ;;  %v299_v15 = vld [vmem:[#allocation7 + $0xe0] sm:$0xff]  ;;  %v4675_v18 = vpack.c.bf16 %v298_v14, %v297_v13  ;;  %v300_v19 = vld [vmem:[#allocation7 + $0xe8] sm:$0xff]  ;;  %v301_v22 = vld [vmem:[#allocation7 + $0xf0] sm:$0xff] }
  0xab   :  { %v186_v17 = vld [vmem:[#allocation7 + $0x40] sm:$0xff]  ;;  %v187_v20 = vld [vmem:[#allocation7 + $0x48] sm:$0xff]  ;;  %v4679_v21 = vpack.c.bf16 %v300_v19, %v299_v15  ;;  %v302_v23 = vld [vmem:[#allocation7 + $0xf8] sm:$0xff] }
  0xac   :  { %4676 = vmatprep.subr.bf16.mxu1 %v4675_v18  ;;  %v4649_v24 = vpack.c.bf16 %v187_v20, %v186_v17  ;;  %v4683_v25 = vpack.c.bf16 %v302_v23, %v301_v22  ;;  %v188_v26 = vld [vmem:[#allocation7 + $0x50] sm:$0xff]  ;;  %v189_v27 = vld [vmem:[#allocation7 + $0x58] sm:$0xff]  ;;  %v190_v29 = vld [vmem:[#allocation7 + $0x60] sm:$0xff] }
  0xad   :  { %4641 = vmatpush1.bf16.msra.mxu0 %v4640_v6  ;;  %4678 = vmatpush3.bf16.msra.mxu1 %v4675_v18  ;;  %v4652_v28 = vpack.c.bf16 %v189_v27, %v188_v26  ;;  %v191_v30 = vld [vmem:[#allocation7 + $0x68] sm:$0xff]  ;;  %v192_v32 = vld [vmem:[#allocation7 + $0x70] sm:$0xff]  ;;  %v193_v33 = vld [vmem:[#allocation7 + $0x78] sm:$0xff] }
  0xae   :  { %4642 = vmatprep.subr.bf16.mxu0 %v6156_v0  ;;  %4680 = vmatprep.subr.bf16.mxu1 %v4679_v21  ;;  %v4655_v31 = vpack.c.bf16 %v191_v30, %v190_v29  ;;  %v4658_v34 = vpack.c.bf16 %v193_v33, %v192_v32  ;;  %v194_v35 = vld [vmem:[#allocation7 + $0x80] sm:$0xff]  ;;  %v195_v36 = vld [vmem:[#allocation7 + $0x88] sm:$0xff]  ;;  %v196_v38 = vld [vmem:[#allocation7 + $0x90] sm:$0xff] }
  0xaf   :  { %v4661_v37 = vpack.c.bf16 %v195_v36, %v194_v35  ;;  %v197_v39 = vld [vmem:[#allocation7 + $0x98] sm:$0xff]  ;;  %v198_v41 = vld [vmem:[#allocation7 + $0xa0] sm:$0xff]  ;;  %v199_v42 = vld [vmem:[#allocation7 + $0xa8] sm:$0xff] }
  0xb0   :  { %v4664_v40 = vpack.c.bf16 %v197_v39, %v196_v38  ;;  %v4667_v43 = vpack.c.bf16 %v199_v42, %v198_v41  ;;  %v200_v44 = vld [vmem:[#allocation7 + $0xb0] sm:$0xff]  ;;  %v201_v45 = vld [vmem:[#allocation7 + $0xb8] sm:$0xff]  ;;  %v202_v47 = vld [vmem:[#allocation7 + $0xc0] sm:$0xff] }
  0xb1   :  { %4644 = vmatpush1.bf16.msra.mxu0 %v4643_v9  ;;  %4682 = vmatpush3.bf16.msra.mxu1 %v4679_v21  ;;  %v4670_v46 = vpack.c.bf16 %v201_v45, %v200_v44  ;;  %v203_v48 = vld [vmem:[#allocation7 + $0xc8] sm:$0xff]  ;;  %v170_v50 = vld [vmem:[%s6725_s1] sm:$0xff]  ;;  %v173_v51 = vld [vmem:[%s6725_s1 + $0x18] sm:$0xff] }
  0xb2   :  { %4645 = vmatprep.subr.bf16.mxu0 %v6156_v0  ;;  %4684 = vmatprep.subr.bf16.mxu1 %v4683_v25  ;;  %v4673_v49 = vpack.c.bf16 %v203_v48, %v202_v47  ;;  %v172_v52 = vld [vmem:[%s6725_s1 + $0x10] sm:$0xff]  ;;  %v303_v53 = vld [vmem:[#allocation7 + $0x100] sm:$0xff]  ;;  %v304_v54 = vld [vmem:[#allocation7 + $0x108] sm:$0xff] }
  0xb3   :  { %v4687_v55 = vpack.c.bf16 %v304_v54, %v303_v53  ;;  %v305_v56 = vld [vmem:[#allocation7 + $0x110] sm:$0xff]  ;;  %v306_v57 = vld [vmem:[#allocation7 + $0x118] sm:$0xff]  ;;  %v307_v59 = vld [vmem:[#allocation7 + $0x120] sm:$0xff] }
  0xb4   :  { %v4691_v58 = vpack.c.bf16 %v306_v57, %v305_v56  ;;  %v308_v60 = vld [vmem:[#allocation7 + $0x128] sm:$0xff]  ;;  %v309_v62 = vld [vmem:[#allocation7 + $0x130] sm:$0xff]  ;;  %v310_v63 = vld [vmem:[#allocation7 + $0x138] sm:$0xff] }
  0xb5   :  { %4647 = vmatpush1.bf16.msra.mxu0 %v4646_v16  ;;  %4686 = vmatpush3.bf16.msra.mxu1 %v4683_v25  ;;  %v4695_v61 = vpack.c.bf16 %v308_v60, %v307_v59  ;;  %v311_v1 = vld [vmem:[#allocation7 + $0x140] sm:$0xff]  ;;  %v312_v2 = vld [vmem:[#allocation7 + $0x148] sm:$0xff]  ;;  %v438_v4 = vld [vmem:[#allocation8 + $0x188] sm:$0xff] }
  0xb6   :  { %4648 = vmatprep.subr.bf16.mxu0 %v6156_v0  ;;  %4688 = vmatprep.subr.bf16.mxu1 %v4687_v55  ;;  %v4703_v3 = vpack.c.bf16 %v312_v2, %v311_v1  ;;  %v441_v5 = vld [vmem:[#allocation8 + $0x1a0] sm:$0xff]  ;;  %v439_v7 = vld [vmem:[#allocation8 + $0x190] sm:$0xff]  ;;  %v442_v8 = vld [vmem:[#allocation8 + $0x1a8] sm:$0xff] }
  0xb7   :  { %v4707_v6 = vpack.c.bf16 %v441_v5, %v438_v4  ;;  %v4739_v9 = vpack.c.bf16 %v442_v8, %v439_v7  ;;  %v445_v10 = vld [vmem:[#allocation8 + $0x1c0] sm:$0xff]  ;;  %v448_v11 = vld [vmem:[#allocation8 + $0x1d8] sm:$0xff]  ;;  %v451_v13 = vld [vmem:[#allocation8 + $0x1f0] sm:$0xff] }
  0xb8   :  { %v4743_v12 = vpack.c.bf16 %v448_v11, %v445_v10  ;;  %v454_v14 = vld [vmem:[#allocation8 + $0x208] sm:$0xff]  ;;  %v457_v16 = vld [vmem:[#allocation8 + $0x220] sm:$0xff]  ;;  %v460_v17 = vld [vmem:[#allocation8 + $0x238] sm:$0xff] }
  0xb9   :  { %4650 = vmatpush1.bf16.msra.mxu0 %v4649_v24  ;;  %4690 = vmatpush3.bf16.msra.mxu1 %v4687_v55  ;;  %v4747_v15 = vpack.c.bf16 %v454_v14, %v451_v13  ;;  %v4751_v18 = vpack.c.bf16 %v460_v17, %v457_v16  ;;  %v463_v19 = vld [vmem:[#allocation8 + $0x250] sm:$0xff]  ;;  %v466_v20 = vld [vmem:[#allocation8 + $0x268] sm:$0xff]  ;;  %v469_v22 = vld [vmem:[#allocation8 + $0x280] sm:$0xff] }
  0xba   :  { %4651 = vmatprep.subr.bf16.mxu0 %v6156_v0  ;;  %4692 = vmatprep.subr.bf16.mxu1 %v4691_v58  ;;  %v4755_v21 = vpack.c.bf16 %v466_v20, %v463_v19  ;;  %v472_v23 = vld [vmem:[#allocation8 + $0x298] sm:$0xff]  ;;  %v475_v25 = vld [vmem:[#allocation8 + $0x2b0] sm:$0xff]  ;;  %v478_v26 = vld [vmem:[#allocation8 + $0x2c8] sm:$0xff] }
  0xbb   :  { %v4759_v24 = vpack.c.bf16 %v472_v23, %v469_v22  ;;  %v4763_v27 = vpack.c.bf16 %v478_v26, %v475_v25  ;;  %v437_v39 = vld [vmem:[#allocation8 + $0x180] sm:$0xff]  ;;  %v444_v42 = vld [vmem:[#allocation8 + $0x1b8] sm:$0xff]  ;;  %v443_v48 = vld [vmem:[#allocation8 + $0x1b0] sm:$0xff] }
  0xbc   :  { %v449_v55 = vld [vmem:[#allocation8 + $0x1e0] sm:$0xff]  ;;  %v452_v56 = vld [vmem:[#allocation8 + $0x1f8] sm:$0xff]  ;;  %v470_v10 = vld [vmem:[#allocation8 + $0x288] sm:$0xff] }
  0xbd   :  { %4653 = vmatpush1.bf16.msra.mxu0 %v4652_v28  ;;  %4694 = vmatpush3.bf16.msra.mxu1 %v4691_v58  ;;  %v204_v28 = vld [vmem:[#allocation16] ss:$0 sm:$0xff]  ;;  %v456_v57 = vld [vmem:[#allocation8 + $0x218] sm:$0xff]  ;;  %v459_v58 = vld [vmem:[#allocation8 + $0x230] sm:$0xff]  ;;  %v4717_v59 = vpack.c.bf16 %v452_v56, %v449_v55 }
  0xbe   :  { %4654 = vmatprep.subr.bf16.mxu0 %v6156_v0  ;;  %4696 = vmatprep.subr.bf16.mxu1 %v4695_v61  ;;  %v4719_v60 = vpack.c.bf16 %v459_v58, %v456_v57  ;;  %v464_v4 = vld [vmem:[#allocation8 + $0x258] sm:$0xff]  ;;  %v474_v11 = vld [vmem:[#allocation8 + $0x2a8] sm:$0xff]  ;;  %v481_v23 = vld [vmem:[#allocation8 + $0x2e0] sm:$0xff] }
  0xbf   :  { %v468_v5 = vld [vmem:[#allocation8 + $0x278] sm:$0xff]  ;;  %v482_v22 = vld [vmem:[#allocation8 + $0x2e8] sm:$0xff]  ;;  %v6438_v55 = vld [vmem:[%s6724_s0] sm:$0xff] }
  0xc0   :  { %v476_v16 = vld [vmem:[#allocation8 + $0x2b8] sm:$0xff]  ;;  %v401_v57 = vld [vmem:[#allocation8 + $0x60] sm:$0xff] }
  0xc1   :  { %4656 = vmatpush1.bf16.msra.mxu0 %v4655_v31  ;;  %4698 = vmatpush3.bf16.msra.mxu1 %v4695_v61  ;;  %v455_v61 = vld [vmem:[#allocation8 + $0x210] sm:$0xff]  ;;  %v480_v17 = vld [vmem:[#allocation8 + $0x2d8] sm:$0xff] }
  0xc2   :  { %4657 = vmatprep.subr.bf16.mxu0 %v6156_v0  ;;  %v484_v25 = vld [vmem:[#allocation8 + $0x2f8] sm:$0xff] }
  0xc3   :  { %v4767_v26 = vpack.c.bf16 %v484_v25, %v481_v23  ;;  %v404_v58 = vld [vmem:[#allocation8 + $0x78] sm:$0xff]  ;;  %v426_v23 = vld [vmem:[#allocation8 + $0x128] sm:$0xff]  ;;  %v427_v25 = vld [vmem:[#allocation8 + $0x130] sm:$0xff] }
  0xc5   :  { %4659 = vmatpush1.bf16.msra.mxu0 %v4658_v34 }
  0xc6   :  { %4660 = vmatprep.subr.bf16.mxu0 %v6156_v0 }
  0xc9   :  { %4662 = vmatpush1.bf16.msra.mxu0 %v4661_v37 }
  0xca   :  { %4663 = vmatprep.subr.bf16.mxu0 %v6156_v0 }
  0xcd   :  { %4665 = vmatpush1.bf16.msra.mxu0 %v4664_v40  ;;  %v440_v40 = vld [vmem:[#allocation8 + $0x198] sm:$0xff] }
  0xce   :  { %4666 = vmatprep.subr.bf16.mxu0 %v6156_v0 }
  0xd1   :  { %4668 = vmatpush1.bf16.msra.mxu0 %v4667_v43  ;;  %v447_v43 = vld [vmem:[#allocation8 + $0x1d0] sm:$0xff] }
  0xd2   :  { %4669 = vmatprep.subr.bf16.mxu0 %v6156_v0  ;;  %v4711_v47 = vpack.c.bf16 %v447_v43, %v444_v42 }
  0xd5   :  { %4671 = vmatpush1.bf16.msra.mxu0 %v4670_v46  ;;  %v4709_v46 = vpack.c.bf16 %v440_v40, %v437_v39  ;;  %v399_v39 = vld [vmem:[#allocation8 + $0x50] sm:$0xff]  ;;  %v397_v40 = vld [vmem:[#allocation8 + $0x40] sm:$0xff] }
  0xd6   :  { %4672 = vmatprep.subr.bf16.mxu0 %v6156_v0  ;;  %v4699_v0 = vpack.c.bf16 %v310_v63, %v309_v62  ;;  %v458_v62 = vld [vmem:[#allocation8 + $0x228] sm:$0xff] }
  0xd7   :  { %v462_v63 = vld [vmem:[#allocation8 + $0x248] sm:$0xff]  ;;  %v4721_v1 = vpack.c.bf16 %v458_v62, %v455_v61  ;;  %v411_v61 = vld [vmem:[#allocation8 + $0xb0] sm:$0xff]  ;;  %v409_v62 = vld [vmem:[#allocation8 + $0xa0] sm:$0xff] }
  0xd8   :  { %4700 = vmatprep.subr.bf16.mxu1 %v4699_v0 }
  0xd9   :  { %4674 = vmatpush1.bf16.msra.mxu0 %v4673_v49  ;;  %4702 = vmatpush3.bf16.msra.mxu1 %v4699_v0  ;;  %v446_v49 = vld [vmem:[#allocation8 + $0x1c8] sm:$0xff]  ;;  %v465_v0 = vld [vmem:[#allocation8 + $0x260] sm:$0xff] }
  0xda   :  { %4704 = vmatprep.subr.bf16.mxu1 %v4703_v3  ;;  %4740 = vmatprep.subr.bf16.mxu0 %v4739_v9  ;;  %v4713_v53 = vpack.c.bf16 %v446_v49, %v443_v48  ;;  %v4723_v2 = vpack.c.bf16 %v465_v0, %v462_v63  ;;  %v412_v63 = vld [vmem:[#allocation8 + $0xb8] sm:$0xff]  ;;  %v4781_v0 = vpack.c.bf16 %v404_v58, %v401_v57 }
  0xdb   :  { %v800_v57 = vld [vmem:[#allocation8 + $0x358] sm:$0xff] }
  0xdc   :  { %277 = vmatmul.mubr.f32.vlgmr.msra.gmra.mrb[0].mxu0 %v170_v50 }
  0xdd   :  { %3703 = vmatprep.mubr.msk.f32.mxu0 %vm205_vm0, %v173_v51  ;;  %4706 = vmatpush3.bf16.msra.mxu1 %v4703_v3  ;;  %v450_v51 = vld [vmem:[#allocation8 + $0x1e8] sm:$0xff]  ;;  %v461_v3 = vld [vmem:[#allocation8 + $0x240] sm:$0xff] }
  0xde   :  { %4708 = vmatprep.subr.bf16.mxu1 %v4707_v6  ;;  %4742 = vmatpush3.bf16.msra.mxu0 %v4739_v9  ;;  %v471_v6 = vld [vmem:[#allocation8 + $0x290] sm:$0xff]  ;;  %v4725_v7 = vpack.c.bf16 %v464_v4, %v461_v3  ;;  %v410_v3 = vld [vmem:[#allocation8 + $0xa8] sm:$0xff]  ;;  %v4815_v4 = vpack.c.bf16 %v412_v63, %v409_v62 }
  0xdf   :  { %4744 = vmatprep.subr.bf16.mxu0 %v4743_v12  ;;  %v4727_v8 = vpack.c.bf16 %v471_v6, %v468_v5  ;;  %v467_v9 = vld [vmem:[#allocation8 + $0x270] sm:$0xff]  ;;  %v414_v5 = vld [vmem:[#allocation8 + $0xc8] sm:$0xff]  ;;  %v417_v6 = vld [vmem:[#allocation8 + $0xe0] sm:$0xff] }
  0xe0   :  { %282 = vmatmul.mubr.f32.gmra.mrb[2].mxu0 %v172_v52  ;;  %v453_v52 = vld [vmem:[#allocation8 + $0x200] sm:$0xff]  ;;  %v4729_v13 = vpack.c.bf16 %v470_v10, %v467_v9  ;;  %v4787_v10 = vpack.c.bf16 %v417_v6, %v414_v5  ;;  %v798_v62 = vld [vmem:[#allocation8 + $0x348] sm:$0xff] }
  0xe1   :  { %v4715_v54 = vpack.c.bf16 %v453_v52, %v450_v51  ;;  %v405_v51 = vld [vmem:[#allocation8 + $0x80] sm:$0xff]  ;;  %v403_v52 = vld [vmem:[#allocation8 + $0x70] sm:$0xff]  ;;  %v802_v63 = vld [vmem:[#allocation8 + $0x368] sm:$0xff] }
  0xe2   :  { %4746 = vmatpush3.bf16.msra.mxu0 %v4743_v12  ;;  %v477_v12 = vld [vmem:[#allocation8 + $0x2c0] sm:$0xff] }
  0xe3   :  { %4748 = vmatprep.subr.bf16.mxu0 %v4747_v15  ;;  %v4731_v14 = vpack.c.bf16 %v477_v12, %v474_v11  ;;  %v413_v11 = vld [vmem:[#allocation8 + $0xc0] sm:$0xff]  ;;  %v416_v12 = vld [vmem:[#allocation8 + $0xd8] sm:$0xff] }
  0xe4   :  { %v801_v6 = vld [vmem:[#allocation8 + $0x360] sm:$0xff] }
  0xe6   :  { %4750 = vmatpush3.bf16.msra.mxu0 %v4747_v15  ;;  %v473_v15 = vld [vmem:[#allocation8 + $0x2a0] sm:$0xff] }
  0xe7   :  { %4752 = vmatprep.subr.bf16.mxu0 %v4751_v18  ;;  %v4733_v19 = vpack.c.bf16 %v476_v16, %v473_v15  ;;  %v423_v15 = vld [vmem:[#allocation8 + $0x110] sm:$0xff]  ;;  %v421_v16 = vld [vmem:[#allocation8 + $0x100] sm:$0xff] }
  0xea   :  { %4754 = vmatpush3.bf16.msra.mxu0 %v4751_v18  ;;  %v483_v18 = vld [vmem:[#allocation8 + $0x2f0] sm:$0xff] }
  0xeb   :  { %4756 = vmatprep.subr.bf16.mxu0 %v4755_v21  ;;  %v4735_v20 = vpack.c.bf16 %v483_v18, %v480_v17  ;;  %v424_v17 = vld [vmem:[#allocation8 + $0x118] sm:$0xff]  ;;  %v4789_v18 = vpack.c.bf16 %v416_v12, %v413_v11 }
  0xec   :  { %v812_v12 = vld [vmem:[#allocation8 + $0x3b8] sm:$0xff] }
  0xee   :  { %4758 = vmatpush3.bf16.msra.mxu0 %v4755_v21  ;;  %v479_v21 = vld [vmem:[#allocation8 + $0x2d0] sm:$0xff] }
  0xef   :  { %4760 = vmatprep.subr.bf16.mxu0 %v4759_v24 }
  0xf2   :  { %4762 = vmatpush3.bf16.msra.mxu0 %v4759_v24  ;;  %v4737_v24 = vpack.c.bf16 %v482_v22, %v479_v21  ;;  %v422_v21 = vld [vmem:[#allocation8 + $0x108] sm:$0xff]  ;;  %v4823_v22 = vpack.c.bf16 %v424_v17, %v421_v16 }
  0xf3   :  { %4764 = vmatprep.subr.bf16.mxu0 %v4763_v27  ;;  %v810_v16 = vld [vmem:[#allocation8 + $0x3a8] sm:$0xff] }
  0xf4   :  { %v814_v17 = vld [vmem:[#allocation8 + $0x3c8] sm:$0xff] }
  0xf6   :  { %4766 = vmatpush3.bf16.msra.mxu0 %v4763_v27  ;;  %v390_v27 = vld [vmem:[#allocation8 + $0x8] sm:$0xff] }
  0xf7   :  { %4768 = vmatprep.subr.bf16.mxu0 %v4767_v26 }
  0xfa   :  { %4770 = vmatpush3.bf16.msra.mxu0 %v4767_v26  ;;  %v430_v26 = vld [vmem:[#allocation8 + $0x148] sm:$0xff] }
 0x1af   :  { %v278_v29 = vpop.f32.mrb[0].mxu0 }
 0x1b0   :  { %v279_v30 = vadd.f32 %v278_v29, %v204_v28  ;;  %v280_v31 = vpop.f32.mrb[1].mxu0 }
 0x1b1   :  { %v394_v31 = vld [vmem:[#allocation8 + $0x28] sm:$0xff] }
 0x1b2   :  { %v289_v32 = vmul.f32 1.442695, %v279_v30  ;;  %vm287_vm1 = vcmp.gt.f32.partialorder %v279_v30, 0.0 }
 0x1b3   :  { %v283_v33 = vpop.f32.mrb[2].mxu0 }
 0x1b4   :  { %5679 = vpow2.f32 %v289_v32  ;;  %v284_v34 = vadd.f32 %v283_v33, %v204_v28  ;;  %v285_v35 = vpop.f32.mrb[3].mxu0  ;;  %v393_v28 = vld [vmem:[#allocation8 + $0x20] sm:$0xff]  ;;  %v6157_v32 = vmov 0.0  }
 0x1b5   :  { %v4771_v29 = vpack.c.bf16 %v393_v28, %v390_v27  ;;  %v392_v35 = vld [vmem:[#allocation8 + $0x18] sm:$0xff] }
 0x1b6   :  { %v291_v36 = vmul.f32 1.442695, %v284_v34  ;;  %vm288_vm2 = vcmp.gt.f32.partialorder %v284_v34, 0.0 }
 0x1b8   :  { %5681 = vpow2.f32 %v291_v36  ;;  %v313_v36 = vld [vmem:[#allocation16 + $0x1] ss:$0 sm:$0xff] }
 0x1be   :  { %v5680_v37 = vpop.eup %5679 }
 0x1bf   :  { %v3704_v38 = vadd.f32 -1.0, %v5680_v37  ;;  %v396_v37 = vld [vmem:[#allocation8 + $0x38] sm:$0xff] }
 0x1c0   :  { %v4775_v48 = vpack.c.bf16 %v399_v39, %v396_v37  ;;  %v431_v39 = vld [vmem:[#allocation8 + $0x150] sm:$0xff] }
 0x1c1   :  { %v295_v41 = vsel %vm287_vm1, %v279_v30, %v3704_v38  ;;  %v391_v30 = vld [vmem:[#allocation8 + $0x10] sm:$0xff] }
 0x1c2   :  { %v5682_v44 = vpop.eup %5681  ;;  %4108 = vmatprep.mubr.f32.mxu1 %v295_v41  ;;  %v4803_v33 = vpack.c.bf16 %v394_v31, %v391_v30  ;;  %v400_v41 = vld [vmem:[#allocation8 + $0x58] sm:$0xff]  ;;  %v4827_v31 = vpack.c.bf16 %v430_v26, %v427_v25 }
 0x1c3   :  { %v3705_v45 = vadd.f32 -1.0, %v5682_v44  ;;  %v4807_v49 = vpack.c.bf16 %v400_v41, %v397_v40  ;;  %v428_v30 = vld [vmem:[#allocation8 + $0x138] sm:$0xff]  ;;  %v434_v40 = vld [vmem:[#allocation8 + $0x168] sm:$0xff] }
 0x1c4   :  { %4804 = vmatprep.subr.bf16.mxu0 %v4803_v33  ;;  %v816_v25 = vld [vmem:[#allocation8 + $0x3d8] sm:$0xff] }
 0x1c5   :  { %v296_v50 = vsel %vm288_vm2, %v284_v34, %v3705_v45  ;;  %v389_v34 = vld [vmem:[#allocation8] sm:$0xff]  ;;  %v395_v45 = vld [vmem:[#allocation8 + $0x30] sm:$0xff]  ;;  %v820_v26 = vld [vmem:[#allocation8 + $0x3f8] sm:$0xff] }
 0x1c6   :  { %4109 = vmatmul.mubr.f32.vlgmr.msra.gmra.mrb[0].mxu1 %v296_v50  ;;  %v4773_v43 = vpack.c.bf16 %v392_v35, %v389_v34  ;;  %v402_v50 = vld [vmem:[#allocation8 + $0x68] sm:$0xff]  ;;  %v435_v34 = vld [vmem:[#allocation8 + $0x170] sm:$0xff]  ;;  %v433_v35 = vld [vmem:[#allocation8 + $0x160] sm:$0xff] }
 0x1c7   :  { %4710 = vmatpush1.bf16.msra.mxu1 %v4709_v46  ;;  %549 = vmatprep.mubr.f32.mxu1 %v6157_v32  ;;  %v398_v46 = vld [vmem:[#allocation8 + $0x48] sm:$0xff]  ;;  %v4779_v56 = vpack.c.bf16 %v405_v51, %v402_v50  ;;  %v789_v50 = vld [vmem:[#allocation8 + $0x300] sm:$0xff]  ;;  %v792_v51 = vld [vmem:[#allocation8 + $0x318] sm:$0xff] }
 0x1c8   :  { %4712 = vmatprep.subr.bf16.mxu1 %v4711_v47  ;;  %v4837_v58 = vpack.c.bf16 %v792_v51, %v789_v50  ;;  %v833_v50 = vld [vmem:[#allocation8 + $0x460] sm:$0xff]  ;;  %v836_v51 = vld [vmem:[#allocation8 + $0x478] sm:$0xff] }
 0x1cb   :  { %4714 = vmatpush1.bf16.msra.mxu1 %v4713_v53  ;;  %v406_v53 = vld [vmem:[#allocation8 + $0x88] sm:$0xff] }
 0x1cc   :  { %4716 = vmatprep.subr.bf16.mxu1 %v4715_v54  ;;  %v4777_v54 = vpack.c.bf16 %v398_v46, %v395_v45  ;;  %v791_v45 = vld [vmem:[#allocation8 + $0x310] sm:$0xff]  ;;  %v794_v46 = vld [vmem:[#allocation8 + $0x328] sm:$0xff] }
 0x1cf   :  { %4718 = vmatpush1.bf16.msra.mxu1 %v4717_v59  ;;  %v4811_v59 = vpack.c.bf16 %v406_v53, %v403_v52  ;;  %v796_v52 = vld [vmem:[#allocation8 + $0x338] sm:$0xff]  ;;  %v799_v53 = vld [vmem:[#allocation8 + $0x350] sm:$0xff] }
 0x1d0   :  { %4720 = vmatprep.subr.bf16.mxu1 %v4719_v60  ;;  %v408_v60 = vld [vmem:[#allocation8 + $0x98] sm:$0xff] }
 0x1d3   :  { %4722 = vmatpush1.bf16.msra.mxu1 %v4721_v1  ;;  %v4783_v1 = vpack.c.bf16 %v411_v61, %v408_v60  ;;  %v4839_v60 = vpack.c.bf16 %v799_v53, %v796_v52  ;;  %v795_v61 = vld [vmem:[#allocation8 + $0x330] sm:$0xff] }
 0x1d4   :  { %4724 = vmatprep.subr.bf16.mxu1 %v4723_v2  ;;  %v407_v2 = vld [vmem:[#allocation8 + $0x90] sm:$0xff] }
 0x1d5   :  { %v4785_v9 = vpack.c.bf16 %v410_v3, %v407_v2  ;;  %v803_v2 = vld [vmem:[#allocation8 + $0x370] sm:$0xff]  ;;  %v806_v3 = vld [vmem:[#allocation8 + $0x388] sm:$0xff] }
 0x1d6   :  { %v4875_v11 = vpack.c.bf16 %v806_v3, %v803_v2  ;;  %v1050_v2 = vld [vmem:[#allocation8 + $0x4b8] sm:$0xff]  ;;  %v1053_v3 = vld [vmem:[#allocation8 + $0x4d0] sm:$0xff] }
 0x1d7   :  { %4726 = vmatpush1.bf16.msra.mxu1 %v4725_v7  ;;  %v415_v7 = vld [vmem:[#allocation8 + $0xd0] sm:$0xff] }
 0x1d8   :  { %4728 = vmatprep.subr.bf16.mxu1 %v4727_v8  ;;  %v418_v8 = vld [vmem:[#allocation8 + $0xe8] sm:$0xff] }
 0x1db   :  { %4730 = vmatpush1.bf16.msra.mxu1 %v4729_v13  ;;  %v4819_v13 = vpack.c.bf16 %v418_v8, %v415_v7  ;;  %v804_v7 = vld [vmem:[#allocation8 + $0x378] sm:$0xff] }
 0x1dc   :  { %4732 = vmatprep.subr.bf16.mxu1 %v4731_v14  ;;  %v420_v14 = vld [vmem:[#allocation8 + $0xf8] sm:$0xff] }
 0x1dd   :  { %v808_v8 = vld [vmem:[#allocation8 + $0x398] sm:$0xff] }
 0x1df   :  { %4734 = vmatpush1.bf16.msra.mxu1 %v4733_v19  ;;  %v4791_v19 = vpack.c.bf16 %v423_v15, %v420_v14  ;;  %v807_v15 = vld [vmem:[#allocation8 + $0x390] sm:$0xff] }
 0x1e0   :  { %4736 = vmatprep.subr.bf16.mxu1 %v4735_v20  ;;  %v419_v20 = vld [vmem:[#allocation8 + $0xf0] sm:$0xff] }
 0x1e1   :  { %v4793_v27 = vpack.c.bf16 %v422_v21, %v419_v20  ;;  %v815_v20 = vld [vmem:[#allocation8 + $0x3d0] sm:$0xff]  ;;  %v818_v21 = vld [vmem:[#allocation8 + $0x3e8] sm:$0xff] }
 0x1e3   :  { %4738 = vmatpush1.bf16.msra.mxu1 %v4737_v24  ;;  %v429_v24 = vld [vmem:[#allocation8 + $0x140] sm:$0xff] }
 0x1e4   :  { %4772 = vmatprep.subr.bf16.mxu1 %v4771_v29  ;;  %v4795_v28 = vpack.c.bf16 %v429_v24, %v426_v23  ;;  %v425_v29 = vld [vmem:[#allocation8 + $0x120] sm:$0xff] }
 0x1e5   :  { %v4797_v37 = vpack.c.bf16 %v428_v30, %v425_v29  ;;  %v813_v24 = vld [vmem:[#allocation8 + $0x3c0] sm:$0xff]  ;;  %v824_v30 = vld [vmem:[#allocation8 + $0x418] sm:$0xff] }
 0x1e6   :  { %v821_v29 = vld [vmem:[#allocation8 + $0x400] sm:$0xff] }
 0x299   :  { %v4110_v38 = vpop.f32.mrb[0].mxu1 }
 0x29a   :  { %v380_v42 = vpop.f32.mrb[1].mxu1  ;;  %v6430_v47 = vadd.f32 %v4110_v38, %v313_v36 }
 0x29b   :  { %v6428_v44 = vadd.f32 %v380_v42, %v313_v36  ;;  %v436_v36 = vld [vmem:[#allocation8 + $0x178] sm:$0xff]  ;;  %v790_v42 = vld [vmem:[#allocation8 + $0x308] sm:$0xff] }
 0x29c   :  { %v4831_v41 = vpack.c.bf16 %v436_v36, %v433_v35  ;;  %v822_v35 = vld [vmem:[#allocation8 + $0x408] sm:$0xff] }
 0x29d   :  { %550 = vmatmul.mubr.f32.vlgmr.msra.gmra.mrb[2].mxu1 %v6428_v44  ;;  %4143 = vmatprep.mubr.f32.mxu0 %v6428_v44  ;;  %v826_v36 = vld [vmem:[#allocation8 + $0x428] sm:$0xff] }
 0x29e   :  { %4774 = vmatpush1.bf16.msra.mxu1 %v4773_v43  ;;  %4144 = vmatmul.mubr.f32.vlgmr.msra.gmra.mrb[4].mxu0 %v6430_v47  ;;  %v793_v43 = vld [vmem:[#allocation8 + $0x320] sm:$0xff] }
 0x29f   :  { %4806 = vmatpush3.bf16.msra.mxu0 %v4803_v33  ;;  %555 = vmatprep.mubr.f32.mxu1 %v6157_v32  ;;  %v432_v33 = vld [vmem:[#allocation8 + $0x158] sm:$0xff] }
 0x2a0   :  { %4776 = vmatprep.subr.bf16.mxu1 %v4775_v48  ;;  %4808 = vmatprep.subr.bf16.mxu0 %v4807_v49  ;;  %v4799_v38 = vpack.c.bf16 %v435_v34, %v432_v33  ;;  %v4801_v48 = vpack.c.bf16 %v434_v40, %v431_v39  ;;  %v819_v34 = vld [vmem:[#allocation8 + $0x3f0] sm:$0xff]  ;;  %v830_v40 = vld [vmem:[#allocation8 + $0x448] sm:$0xff] }
 0x2a1   :  { %556 = vmatmul.mubr.f32.gmra.mrb[4].mxu1 %v6430_v47  ;;  %4178 = vmatprep.mubr.f32.mxu0 %v6438_v55  ;;  %v827_v39 = vld [vmem:[#allocation8 + $0x430] sm:$0xff] }
 0x2a2   :  { %4778 = vmatpush1.bf16.msra.mxu1 %v4777_v54  ;;  %701 = vmatprep.mubr.f32.mxu1 %v6157_v32  ;;  %v4867_v54 = vpack.c.bf16 %v794_v46, %v791_v45  ;;  %v828_v45 = vld [vmem:[#allocation8 + $0x438] sm:$0xff] }
 0x2a3   :  { %4810 = vmatpush3.bf16.msra.mxu0 %v4807_v49  ;;  %4780 = vmatprep.subr.bf16.mxu1 %v4779_v56  ;;  %v4835_v49 = vpack.c.bf16 %v793_v43, %v790_v42  ;;  %v797_v56 = vld [vmem:[#allocation8 + $0x340] sm:$0xff]  ;;  %v832_v46 = vld [vmem:[#allocation8 + $0x458] sm:$0xff] }
 0x2a4   :  { %4812 = vmatprep.subr.bf16.mxu0 %v4811_v59  ;;  %v825_v43 = vld [vmem:[#allocation8 + $0x420] sm:$0xff] }
 0x2a5   :  { %v4861_v52 = vpack.c.bf16 %v828_v45, %v825_v43  ;;  %v1076_v43 = vld [vmem:[#allocation8 + $0x588] sm:$0xff]  ;;  %v1069_v45 = vld [vmem:[#allocation8 + $0x550] sm:$0xff] }
 0x2a6   :  { %4782 = vmatpush1.bf16.msra.mxu1 %v4781_v0  ;;  %v805_v0 = vld [vmem:[#allocation8 + $0x380] sm:$0xff] }
 0x2a7   :  { %4814 = vmatpush3.bf16.msra.mxu0 %v4811_v59  ;;  %4784 = vmatprep.subr.bf16.mxu1 %v4783_v1  ;;  %v169_v59 = vld [vmem:[%s6724_s0 + $0x8] sm:$0xff]  ;;  %v4871_v1 = vpack.c.bf16 %v800_v57, %v797_v56  ;;  %v4843_v5 = vpack.c.bf16 %v805_v0, %v802_v63  ;;  %v834_v56 = vld [vmem:[#allocation8 + $0x468] sm:$0xff]  ;;  %v4895_v57 = vpack.c.bf16 %v836_v51, %v833_v50  ;;  %v1043_v63 = vld [vmem:[#allocation8 + $0x480] sm:$0xff] }
 0x2a8   :  { %4816 = vmatprep.subr.bf16.mxu0 %v4815_v4  ;;  %v1046_v0 = vld [vmem:[#allocation8 + $0x498] sm:$0xff]  ;;  %v1080_v50 = vld [vmem:[#allocation8 + $0x5a8] sm:$0xff]  ;;  %v1083_v51 = vld [vmem:[#allocation8 + $0x5c0] sm:$0xff] }
 0x2aa   :  { %4786 = vmatpush1.bf16.msra.mxu1 %v4785_v9  ;;  %v811_v9 = vld [vmem:[#allocation8 + $0x3b0] sm:$0xff] }
 0x2ab   :  { %4818 = vmatpush3.bf16.msra.mxu0 %v4815_v4  ;;  %4788 = vmatprep.subr.bf16.mxu1 %v4787_v10  ;;  %v4841_v4 = vpack.c.bf16 %v798_v62, %v795_v61  ;;  %v6449_v10 = vld [vmem:[#allocation2] sm:$0xff]  ;;  %v4847_v14 = vpack.c.bf16 %v811_v9, %v808_v8  ;;  %v1047_v61 = vld [vmem:[#allocation8 + $0x4a0] sm:$0xff]  ;;  %v1048_v9 = vld [vmem:[#allocation8 + $0x4a8] sm:$0xff] }
 0x2ac   :  { %4820 = vmatprep.subr.bf16.mxu0 %v4819_v13 }
 0x2ae   :  { %4790 = vmatpush1.bf16.msra.mxu1 %v4789_v18  ;;  %v817_v18 = vld [vmem:[#allocation8 + $0x3e0] sm:$0xff] }
 0x2af   :  { %4822 = vmatpush3.bf16.msra.mxu0 %v4819_v13  ;;  %4792 = vmatprep.subr.bf16.mxu1 %v4791_v19  ;;  %v4845_v13 = vpack.c.bf16 %v804_v7, %v801_v6  ;;  %v4851_v23 = vpack.c.bf16 %v817_v18, %v814_v17  ;;  %v1052_v6 = vld [vmem:[#allocation8 + $0x4c8] sm:$0xff]  ;;  %v1045_v7 = vld [vmem:[#allocation8 + $0x490] sm:$0xff]  ;;  %v1054_v18 = vld [vmem:[#allocation8 + $0x4d8] sm:$0xff] }
 0x2b0   :  { %4824 = vmatprep.subr.bf16.mxu0 %v4823_v22 }
 0x2b2   :  { %4794 = vmatpush1.bf16.msra.mxu1 %v4793_v27  ;;  %v823_v27 = vld [vmem:[#allocation8 + $0x410] sm:$0xff] }
 0x2b3   :  { %4826 = vmatpush3.bf16.msra.mxu0 %v4823_v22  ;;  %4796 = vmatprep.subr.bf16.mxu1 %v4795_v28  ;;  %v4849_v22 = vpack.c.bf16 %v810_v16, %v807_v15  ;;  %v4883_v28 = vpack.c.bf16 %v818_v21, %v815_v20  ;;  %v4855_v33 = vpack.c.bf16 %v823_v27, %v820_v26  ;;  %v1058_v15 = vld [vmem:[#allocation8 + $0x4f8] sm:$0xff]  ;;  %v1051_v16 = vld [vmem:[#allocation8 + $0x4c0] sm:$0xff]  ;;  %v1065_v21 = vld [vmem:[#allocation8 + $0x530] sm:$0xff] }
 0x2b4   :  { %4828 = vmatprep.subr.bf16.mxu0 %v4827_v31  ;;  %v1062_v20 = vld [vmem:[#allocation8 + $0x518] sm:$0xff]  ;;  %v1057_v26 = vld [vmem:[#allocation8 + $0x4f0] sm:$0xff]  ;;  %v1060_v27 = vld [vmem:[#allocation8 + $0x508] sm:$0xff] }
 0x2b6   :  { %4798 = vmatpush1.bf16.msra.mxu1 %v4797_v37  ;;  %v829_v37 = vld [vmem:[#allocation8 + $0x440] sm:$0xff] }
 0x2b7   :  { %4830 = vmatpush3.bf16.msra.mxu0 %v4827_v31  ;;  %4800 = vmatprep.subr.bf16.mxu1 %v4799_v38  ;;  %v4853_v31 = vpack.c.bf16 %v816_v25, %v813_v24  ;;  %v4887_v38 = vpack.c.bf16 %v824_v30, %v821_v29  ;;  %v4859_v42 = vpack.c.bf16 %v829_v37, %v826_v36  ;;  %v1064_v24 = vld [vmem:[#allocation8 + $0x528] sm:$0xff]  ;;  %v1071_v30 = vld [vmem:[#allocation8 + $0x560] sm:$0xff]  ;;  %v1066_v37 = vld [vmem:[#allocation8 + $0x538] sm:$0xff] }
 0x2b8   :  { %4832 = vmatprep.subr.bf16.mxu0 %v4831_v41  ;;  %v1068_v29 = vld [vmem:[#allocation8 + $0x548] sm:$0xff] }
 0x2ba   :  { %4802 = vmatpush1.bf16.msra.mxu1 %v4801_v48  ;;  %v835_v48 = vld [vmem:[#allocation8 + $0x470] sm:$0xff] }
 0x2bb   :  { %4834 = vmatpush3.bf16.msra.mxu0 %v4831_v41  ;;  %4836 = vmatprep.subr.bf16.mxu1 %v4835_v49  ;;  %v4857_v41 = vpack.c.bf16 %v822_v35, %v819_v34  ;;  %v4891_v49 = vpack.c.bf16 %v830_v40, %v827_v39  ;;  %v4863_v53 = vpack.c.bf16 %v835_v48, %v832_v46  ;;  %v1070_v34 = vld [vmem:[#allocation8 + $0x558] sm:$0xff]  ;;  %v1063_v35 = vld [vmem:[#allocation8 + $0x520] sm:$0xff]  ;;  %v1077_v40 = vld [vmem:[#allocation8 + $0x590] sm:$0xff] }
 0x2bc   :  { %4868 = vmatprep.subr.bf16.mxu0 %v4867_v54  ;;  %v1074_v39 = vld [vmem:[#allocation8 + $0x578] sm:$0xff]  ;;  %v1072_v48 = vld [vmem:[#allocation8 + $0x568] sm:$0xff] }
 0x2bd   :  { %702 = vmatmul.mubr.f32.vlgmr.msra.gmra.mrb[2].mxu1 %v6438_v55  ;;  %v809_v55 = vld [vmem:[#allocation8 + $0x3a0] sm:$0xff] }
 0x2be   :  { %4179 = vmatmul.mubr.f32.vlgmr.msra.gmra.mrb[4].mxu0 %v169_v59  ;;  %4838 = vmatpush1.bf16.msra.mxu1 %v4837_v58  ;;  %v4879_v19 = vpack.c.bf16 %v812_v12, %v809_v55  ;;  %v1056_v55 = vld [vmem:[#allocation8 + $0x4e8] sm:$0xff]  ;;  %v1059_v12 = vld [vmem:[#allocation8 + $0x500] sm:$0xff] }
 0x2bf   :  { %4840 = vmatprep.subr.bf16.mxu1 %v4839_v60  ;;  %4870 = vmatpush3.bf16.msra.mxu0 %v4867_v54  ;;  %v831_v54 = vld [vmem:[#allocation8 + $0x450] sm:$0xff]  ;;  %v1044_v60 = vld [vmem:[#allocation8 + $0x488] sm:$0xff] }
 0x2c0   :  { %707 = vmatprep.mubr.f32.mxu1 %v6157_v32  ;;  %4872 = vmatprep.subr.bf16.mxu0 %v4871_v1  ;;  %v4865_v58 = vpack.c.bf16 %v834_v56, %v831_v54  ;;  %v4899_v62 = vpack.c.bf16 %v1047_v61, %v1044_v60  ;;  %v1082_v54 = vld [vmem:[#allocation8 + $0x5b8] sm:$0xff]  ;;  %v1075_v56 = vld [vmem:[#allocation8 + $0x580] sm:$0xff]  ;;  %v1089_v61 = vld [vmem:[#allocation8 + $0x5f0] sm:$0xff] }
 0x2c1   :  { %708 = vmatmul.mubr.f32.gmra.mrb[4].mxu1 %v169_v59  ;;  %4213 = vmatprep.mubr.f32.mxu0 %v6449_v10  ;;  %v6454_v59 = vld [vmem:[#allocation2 + $0x8] sm:$0xff] }
 0x2c2   :  { %4842 = vmatpush1.bf16.msra.mxu1 %v4841_v4  ;;  %901 = vmatprep.mubr.f32.mxu1 %v6157_v32  ;;  %v4903_v4 = vpack.c.bf16 %v1053_v3, %v1050_v2  ;;  %v1086_v60 = vld [vmem:[#allocation8 + $0x5d8] sm:$0xff]  ;;  %v1081_v2 = vld [vmem:[#allocation8 + $0x5b0] sm:$0xff] }
 0x2c3   :  { %4844 = vmatprep.subr.bf16.mxu1 %v4843_v5  ;;  %4874 = vmatpush3.bf16.msra.mxu0 %v4871_v1  ;;  %v4901_v1 = vpack.c.bf16 %v1046_v0, %v1043_v63  ;;  %v1049_v5 = vld [vmem:[#allocation8 + $0x4b0] sm:$0xff]  ;;  %v4927_v63 = vpack.c.bf16 %v1089_v61, %v1086_v60  ;;  %v1243_v61 = vld [vmem:[#allocation8 + $0x600] sm:$0xff] }
 0x2c4   :  { %4876 = vmatprep.subr.bf16.mxu0 %v4875_v11  ;;  %v4905_v8 = vpack.c.bf16 %v1052_v6, %v1049_v5  ;;  %v1085_v0 = vld [vmem:[#allocation8 + $0x5d0] sm:$0xff]  ;;  %v1244_v5 = vld [vmem:[#allocation8 + $0x608] sm:$0xff]  ;;  %v1247_v6 = vld [vmem:[#allocation8 + $0x620] sm:$0xff] }
 0x2c6   :  { %4846 = vmatpush1.bf16.msra.mxu1 %v4845_v13  ;;  %v4907_v13 = vpack.c.bf16 %v1059_v12, %v1056_v55  ;;  %v1245_v12 = vld [vmem:[#allocation8 + $0x610] sm:$0xff] }
 0x2c7   :  { %4848 = vmatprep.subr.bf16.mxu1 %v4847_v14  ;;  %4878 = vmatpush3.bf16.msra.mxu0 %v4875_v11  ;;  %v4931_v11 = vpack.c.bf16 %v1048_v9, %v1045_v7  ;;  %v1055_v14 = vld [vmem:[#allocation8 + $0x4e0] sm:$0xff] }
 0x2c8   :  { %4880 = vmatprep.subr.bf16.mxu0 %v4879_v19  ;;  %v4909_v17 = vpack.c.bf16 %v1058_v15, %v1055_v14  ;;  %v1087_v9 = vld [vmem:[#allocation8 + $0x5e0] sm:$0xff] }
 0x2ca   :  { %4850 = vmatpush1.bf16.msra.mxu1 %v4849_v22  ;;  %v4911_v22 = vpack.c.bf16 %v1065_v21, %v1062_v20  ;;  %v1008_v21 = vld [vmem:[#allocation16 + $0x3] ss:$0 sm:$0xff] }
 0x2cb   :  { %4852 = vmatprep.subr.bf16.mxu1 %v4851_v23  ;;  %4882 = vmatpush3.bf16.msra.mxu0 %v4879_v19  ;;  %v4935_v19 = vpack.c.bf16 %v1054_v18, %v1051_v16  ;;  %v1061_v23 = vld [vmem:[#allocation8 + $0x510] sm:$0xff] }
 0x2cc   :  { %4884 = vmatprep.subr.bf16.mxu0 %v4883_v28  ;;  %v4913_v25 = vpack.c.bf16 %v1064_v24, %v1061_v23 }
 0x2ce   :  { %4854 = vmatpush1.bf16.msra.mxu1 %v4853_v31  ;;  %v4915_v31 = vpack.c.bf16 %v1071_v30, %v1068_v29 }
 0x2cf   :  { %4856 = vmatprep.subr.bf16.mxu1 %v4855_v33  ;;  %4886 = vmatpush3.bf16.msra.mxu0 %v4883_v28  ;;  %v4939_v28 = vpack.c.bf16 %v1060_v27, %v1057_v26  ;;  %v1067_v33 = vld [vmem:[#allocation8 + $0x540] sm:$0xff] }
 0x2d0   :  { %4888 = vmatprep.subr.bf16.mxu0 %v4887_v38  ;;  %v4917_v36 = vpack.c.bf16 %v1070_v34, %v1067_v33 }
 0x2d2   :  { %4858 = vmatpush1.bf16.msra.mxu1 %v4857_v41  ;;  %v4919_v41 = vpack.c.bf16 %v1077_v40, %v1074_v39  ;;  %v1026_v39 = vld [vmem:[#allocation16 + $0x5] ss:$0 sm:$0xff] }
 0x2d3   :  { %4860 = vmatprep.subr.bf16.mxu1 %v4859_v42  ;;  %4890 = vmatpush3.bf16.msra.mxu0 %v4887_v38  ;;  %v4943_v38 = vpack.c.bf16 %v1066_v37, %v1063_v35  ;;  %v1073_v42 = vld [vmem:[#allocation8 + $0x570] sm:$0xff] }
 0x2d4   :  { %4892 = vmatprep.subr.bf16.mxu0 %v4891_v49  ;;  %v4921_v46 = vpack.c.bf16 %v1076_v43, %v1073_v42  ;;  %v1023_v43 = vld [vmem:[#allocation16 + $0x4] ss:$0 sm:$0xff] }
 0x2d6   :  { %4862 = vmatpush1.bf16.msra.mxu1 %v4861_v52  ;;  %v4923_v52 = vpack.c.bf16 %v1083_v51, %v1080_v50 }
 0x2d7   :  { %4864 = vmatprep.subr.bf16.mxu1 %v4863_v53  ;;  %4894 = vmatpush3.bf16.msra.mxu0 %v4891_v49  ;;  %v4947_v49 = vpack.c.bf16 %v1072_v48, %v1069_v45  ;;  %v1079_v53 = vld [vmem:[#allocation8 + $0x5a0] sm:$0xff] }
 0x2d8   :  { %4896 = vmatprep.subr.bf16.mxu0 %v4895_v57 }
 0x2da   :  { %4866 = vmatpush1.bf16.msra.mxu1 %v4865_v58  ;;  %v1078_v58 = vld [vmem:[#allocation8 + $0x598] sm:$0xff] }
 0x2db   :  { %4898 = vmatpush3.bf16.msra.mxu0 %v4895_v57  ;;  %4900 = vmatprep.subr.bf16.mxu1 %v4899_v62  ;;  %v4925_v57 = vpack.c.bf16 %v1082_v54, %v1079_v53  ;;  %v4951_v62 = vpack.c.bf16 %v1078_v58, %v1075_v56 }
 0x2dc   :  { %4932 = vmatprep.subr.bf16.mxu0 %v4931_v11 }
 0x2dd   :  { %902 = vmatmul.mubr.f32.vlgmr.msra.gmra.mrb[2].mxu1 %v6449_v10 }
 0x2de   :  { %907 = vmatprep.mubr.f32.mxu1 %v6157_v32  ;;  %4214 = vmatmul.mubr.f32.vlgmr.msra.gmra.mrb[6].mxu0 %v6454_v59 }
 0x2df   :  { %4902 = vmatpush1.bf16.msra.mxu1 %v4901_v1  ;;  %4934 = vmatpush3.bf16.msra.mxu0 %v4931_v11  ;;  %v1088_v1 = vld [vmem:[#allocation8 + $0x5e8] sm:$0xff]  ;;  %v1090_v11 = vld [vmem:[#allocation8 + $0x5f8] sm:$0xff] }
 0x2e0   :  { %4904 = vmatprep.subr.bf16.mxu1 %v4903_v4  ;;  %4936 = vmatprep.subr.bf16.mxu0 %v4935_v19  ;;  %v4929_v3 = vpack.c.bf16 %v1088_v1, %v1085_v0  ;;  %v1084_v4 = vld [vmem:[#allocation8 + $0x5c8] sm:$0xff]  ;;  %v4959_v55 = vpack.c.bf16 %v1090_v11, %v1087_v9  ;;  %v1250_v0 = vld [vmem:[#allocation8 + $0x638] sm:$0xff]  ;;  %v1253_v1 = vld [vmem:[#allocation8 + $0x650] sm:$0xff] }
 0x2e1   :  { %908 = vmatmul.mubr.f32.gmra.mrb[4].mxu1 %v6454_v59  ;;  %v4955_v7 = vpack.c.bf16 %v1084_v4, %v1081_v2  ;;  %v1252_v9 = vld [vmem:[#allocation8 + $0x648] sm:$0xff] }
 0x2e2   :  { %1155 = vmatprep.mubr.f32.mxu1 %v6157_v32  ;;  %v1256_v11 = vld [vmem:[#allocation8 + $0x668] sm:$0xff] }
 0x2e3   :  { %4906 = vmatpush1.bf16.msra.mxu1 %v4905_v8  ;;  %4938 = vmatpush3.bf16.msra.mxu0 %v4935_v19  ;;  %v4963_v8 = vpack.c.bf16 %v1247_v6, %v1244_v5  ;;  %v4967_v6 = vpack.c.bf16 %v1253_v1, %v1250_v0  ;;  %v1289_v0 = vld [vmem:[#allocation8 + $0x770] sm:$0xff] }
 0x2e4   :  { %4908 = vmatprep.subr.bf16.mxu1 %v4907_v13  ;;  %4940 = vmatprep.subr.bf16.mxu0 %v4939_v28  ;;  %v1248_v13 = vld [vmem:[#allocation8 + $0x628] sm:$0xff]  ;;  %v1281_v1 = vld [vmem:[#allocation8 + $0x730] sm:$0xff] }
 0x2e5   :  { %v6460_v14 = vpack.c.bf16 %v1248_v13, %v1245_v12  ;;  %v1259_v12 = vld [vmem:[#allocation8 + $0x680] sm:$0xff] }
 0x2e6   :  { %v1251_v13 = vld [vmem:[#allocation8 + $0x640] sm:$0xff] }
 0x2e7   :  { %4910 = vmatpush1.bf16.msra.mxu1 %v4909_v17  ;;  %4942 = vmatpush3.bf16.msra.mxu0 %v4939_v28  ;;  %v991_v17 = vld [vmem:[#allocation16 + $0x2] ss:$0 sm:$0xff] }
 0x2e8   :  { %4912 = vmatprep.subr.bf16.mxu1 %v4911_v22  ;;  %4944 = vmatprep.subr.bf16.mxu0 %v4943_v38 }
 0x2eb   :  { %4914 = vmatpush1.bf16.msra.mxu1 %v4913_v25  ;;  %4946 = vmatpush3.bf16.msra.mxu0 %v4943_v38 }
 0x2ec   :  { %4916 = vmatprep.subr.bf16.mxu1 %v4915_v31  ;;  %4948 = vmatprep.subr.bf16.mxu0 %v4947_v49 }
 0x2ef   :  { %4918 = vmatpush1.bf16.msra.mxu1 %v4917_v36  ;;  %4950 = vmatpush3.bf16.msra.mxu0 %v4947_v49 }
 0x2f0   :  { %4920 = vmatprep.subr.bf16.mxu1 %v4919_v41  ;;  %4952 = vmatprep.subr.bf16.mxu0 %v4951_v62 }
 0x2f3   :  { %4922 = vmatpush1.bf16.msra.mxu1 %v4921_v46  ;;  %4954 = vmatpush3.bf16.msra.mxu0 %v4951_v62  ;;  %v1246_v62 = vld [vmem:[#allocation8 + $0x618] sm:$0xff] }
 0x2f4   :  { %4924 = vmatprep.subr.bf16.mxu1 %v4923_v52  ;;  %4956 = vmatprep.subr.bf16.mxu0 %v4955_v7  ;;  %v4965_v4 = vpack.c.bf16 %v1246_v62, %v1243_v61  ;;  %v1282_v61 = vld [vmem:[#allocation8 + $0x738] sm:$0xff] }
 0x2f5   :  { %v1286_v62 = vld [vmem:[#allocation8 + $0x758] sm:$0xff] }
 0x2f7   :  { %4926 = vmatpush1.bf16.msra.mxu1 %v4925_v57  ;;  %4958 = vmatpush3.bf16.msra.mxu0 %v4955_v7 }
 0x2f8   :  { %4928 = vmatprep.subr.bf16.mxu1 %v4927_v63  ;;  %4960 = vmatprep.subr.bf16.mxu0 %v4959_v55 }
 0x2fb   :  { %4930 = vmatpush1.bf16.msra.mxu1 %v4929_v3  ;;  %4962 = vmatpush3.bf16.msra.mxu0 %v4959_v55 }
 0x2fc   :  { %4964 = vmatprep.subr.bf16.mxu1 %v4963_v8  ;;  %4996 = vmatprep.subr.bf16.mxu0 %v6460_v14  ;;  %v1249_v8 = vld [vmem:[#allocation8 + $0x630] sm:$0xff] }
 0x391   :  { %v4180_v15 = vpop.f32.mrb[4].mxu0 }
 0x392   :  { %v780_v16 = vpop.f32.mrb[5].mxu0  ;;  %v1025_v53 = vadd.f32 %v4180_v15, %v1023_v43  ;;  %v1254_v15 = vld [vmem:[#allocation8 + $0x658] sm:$0xff] }
 0x393   :  { %v1024_v48 = vadd.f32 %v1023_v43, %v780_v16  ;;  %v1269_v43 = vld [vmem:[#allocation8 + $0x6d0] sm:$0xff] }
 0x3b0   :  { %v903_v18 = vpop.f32.mrb[2].mxu1 }
 0x3b1   :  { %v992_v19 = vadd.f32 %v991_v17, %v903_v18  ;;  %v905_v20 = vpop.f32.mrb[3].mxu1  ;;  %v4215_v22 = vpop.f32.mrb[6].mxu0 }
 0x3b2   :  { %v980_v23 = vpop.f32.mrb[7].mxu0  ;;  %v1009_v25 = vadd.f32 %v1008_v21, %v905_v20  ;;  %v1028_v50 = vadd.f32 %v4215_v22, %v1026_v39  ;;  %v1255_v20 = vld [vmem:[#allocation8 + $0x660] sm:$0xff]  ;;  %v1262_v22 = vld [vmem:[#allocation8 + $0x698] sm:$0xff] }
 0x3b3   :  { %v3706_v24 = vmul.f32 -1.442695, %v992_v19  ;;  %v1027_v42 = vadd.f32 %v1026_v39, %v980_v23  ;;  %v4971_v19 = vpack.c.bf16 %v1259_v12, %v1256_v11  ;;  %v4999_v23 = vpack.c.bf16 %v1254_v15, %v1251_v13  ;;  %v1270_v39 = vld [vmem:[#allocation8 + $0x6d8] sm:$0xff]  ;;  %v6473_v12 = vld [vmem:[#allocation5 + $0x8] sm:$0xff]  ;;  %v1503_v15 = vld [vmem:[#allocation10 + $0x30] sm:$0xff] }
 0x3b4   :  { %v909_v26 = vpop.f32.mrb[4].mxu1  ;;  %v3708_v31 = vmul.f32 -1.442695, %v1009_v25  ;;  %v1257_v25 = vld [vmem:[#allocation8 + $0x670] sm:$0xff]  ;;  %v1498_v13 = vld [vmem:[#allocation10 + $0x8] sm:$0xff] }
 0x3b5   :  { %5683 = vpow2.f32 %v3706_v24  ;;  %v993_v27 = vadd.f32 %v991_v17, %v909_v26  ;;  %v911_v28 = vpop.f32.mrb[5].mxu1  ;;  %v1265_v24 = vld [vmem:[#allocation8 + $0x6b0] sm:$0xff]  ;;  %v1260_v26 = vld [vmem:[#allocation8 + $0x688] sm:$0xff] }
 0x3b6   :  { %v1010_v30 = vadd.f32 %v1008_v21, %v911_v28  ;;  %v1258_v21 = vld [vmem:[#allocation8 + $0x678] sm:$0xff]  ;;  %v4975_v28 = vpack.c.bf16 %v1265_v24, %v1262_v22 }
 0x3b7   :  { %v3707_v29 = vmul.f32 -1.442695, %v993_v27  ;;  %v4973_v27 = vpack.c.bf16 %v1258_v21, %v1255_v20  ;;  %v1505_v20 = vld [vmem:[#allocation10 + $0x40] sm:$0xff]  ;;  %v1499_v21 = vld [vmem:[#allocation10 + $0x10] sm:$0xff]  ;;  %v1504_v22 = vld [vmem:[#allocation10 + $0x38] sm:$0xff] }
 0x3b8   :  { %v3709_v33 = vmul.f32 -1.442695, %v1010_v30  ;;  %v1268_v30 = vld [vmem:[#allocation8 + $0x6c8] sm:$0xff]  ;;  %v5061_v24 = vpack.c.bf16 %v1504_v22, %v1499_v21  ;;  %v1555_v21 = vld [vmem:[#allocation10 + $0x1d0] sm:$0xff]  ;;  %v1549_v22 = vld [vmem:[#allocation10 + $0x1a0] sm:$0xff] }
 0x3b9   :  { %5685 = vpow2.f32 %v3707_v29  ;;  %v1264_v29 = vld [vmem:[#allocation8 + $0x6a8] sm:$0xff] }
 0x3ba   :  { %5687 = vpow2.f32 %v3708_v31  ;;  %v6467_v31 = vld [vmem:[#allocation5] sm:$0xff] }
 0x3bb   :  { %5689 = vpow2.f32 %v3709_v33  ;;  %v5003_v33 = vpack.c.bf16 %v1260_v26, %v1257_v25  ;;  %v1508_v25 = vld [vmem:[#allocation10 + $0x58] sm:$0xff]  ;;  %v1513_v26 = vld [vmem:[#allocation10 + $0x80] sm:$0xff] }
 0x3bf   :  { %v5684_v34 = vpop.eup %5683 }
 0x3c0   :  { %v1000_v35 = vadd.f32 1.0, %v5684_v34  ;;  %v1271_v34 = vld [vmem:[#allocation8 + $0x6e0] sm:$0xff] }
 0x3c2   :  { %5691 = vrcp.f32 %v1000_v35  ;;  %v1263_v35 = vld [vmem:[#allocation8 + $0x6a0] sm:$0xff] }
 0x3c3   :  { %v5686_v36 = vpop.eup %5685 }
 0x3c4   :  { %v1001_v37 = vadd.f32 1.0, %v5686_v36  ;;  %v5688_v38 = vpop.eup %5687  ;;  %v1266_v36 = vld [vmem:[#allocation8 + $0x6b8] sm:$0xff] }
 0x3c5   :  { %v5690_v40 = vpop.eup %5689  ;;  %v1017_v41 = vadd.f32 1.0, %v5688_v38  ;;  %v1267_v38 = vld [vmem:[#allocation8 + $0x6c0] sm:$0xff] }
 0x3c6   :  { %5693 = vrcp.f32 %v1001_v37  ;;  %v1018_v46 = vadd.f32 1.0, %v5690_v40  ;;  %v1274_v40 = vld [vmem:[#allocation8 + $0x6f8] sm:$0xff] }
 0x3c7   :  { %5695 = vrcp.f32 %v1017_v41  ;;  %v5007_v41 = vpack.c.bf16 %v1266_v36, %v1263_v35  ;;  %v1514_v35 = vld [vmem:[#allocation10 + $0x88] sm:$0xff] }
 0x3c8   :  { %5697 = vrcp.f32 %v1018_v46  ;;  %v4981_v46 = vpack.c.bf16 %v1270_v39, %v1267_v38  ;;  %v1523_v38 = vld [vmem:[#allocation10 + $0xd0] sm:$0xff] }
 0x3cc   :  { %v5692_v45 = vpop.eup %5691 }
 0x3cd   :  { %v1029_v49 = vmul.f32 %v5692_v45, %v1027_v42  ;;  %v1277_v42 = vld [vmem:[#allocation8 + $0x710] sm:$0xff]  ;;  %v1272_v45 = vld [vmem:[#allocation8 + $0x6e8] sm:$0xff] }
 0x3cf   :  { %v1031_v51 = vadd.f32 %v1029_v49, %v1024_v48  ;;  %v4983_v48 = vpack.c.bf16 %v1277_v42, %v1274_v40  ;;  %v1273_v49 = vld [vmem:[#allocation8 + $0x6f0] sm:$0xff]  ;;  %v1517_v40 = vld [vmem:[#allocation10 + $0xa0] sm:$0xff]  ;;  %v1520_v42 = vld [vmem:[#allocation10 + $0xb8] sm:$0xff] }
 0x3d0   :  { %v5694_v52 = vpop.eup %5693 }
 0x3d1   :  { %v1030_v54 = vmul.f32 %v5694_v52, %v1028_v50  ;;  %5699 = vtanh.f32 %v1031_v51  ;;  %v5696_v57 = vpop.eup %5695  ;;  %v1276_v50 = vld [vmem:[#allocation8 + $0x708] sm:$0xff]  ;;  %v5011_v52 = vpack.c.bf16 %v1272_v45, %v1269_v43  ;;  %v1525_v45 = vld [vmem:[#allocation10 + $0xe0] sm:$0xff] }
 0x3d2   :  { %v5698_v58 = vpop.eup %5697  ;;  %v1035_v60 = vsub.f32 1.0, %v5696_v57  ;;  %v1039_v3 = vmul.f32 %v5696_v57, %v6449_v10  ;;  %v4969_v10 = vpack.c.bf16 %v1252_v9, %v1249_v8  ;;  %v1280_v51 = vld [vmem:[#allocation8 + $0x728] sm:$0xff]  ;;  %v4985_v57 = vpack.c.bf16 %v1276_v50, %v1273_v49  ;;  %v1287_v8 = vld [vmem:[#allocation8 + $0x760] sm:$0xff]  ;;  %v1290_v9 = vld [vmem:[#allocation8 + $0x778] sm:$0xff] }
 0x3d3   :  { %v1032_v56 = vadd.f32 %v1030_v54, %v1025_v53  ;;  %v1036_v7 = vsub.f32 1.0, %v5698_v58  ;;  %v1040_v17 = vmul.f32 %v5698_v58, %v6454_v59  ;;  %v1261_v59 = vld [vmem:[#allocation8 + $0x690] sm:$0xff]  ;;  %v1283_v53 = vld [vmem:[#allocation8 + $0x740] sm:$0xff]  ;;  %v5067_v49 = vpack.c.bf16 %v1525_v45, %v1520_v42  ;;  %v1572_v42 = vld [vmem:[#allocation10 + $0x258] sm:$0xff] }
 0x3d4   :  { %v4977_v37 = vpack.c.bf16 %v1264_v29, %v1261_v59  ;;  %v1275_v54 = vld [vmem:[#allocation8 + $0x700] sm:$0xff]  ;;  %v4987_v58 = vpack.c.bf16 %v1283_v53, %v1280_v51  ;;  %v1507_v59 = vld [vmem:[#allocation10 + $0x50] sm:$0xff]  ;;  %v1510_v29 = vld [vmem:[#allocation10 + $0x68] sm:$0xff] }
 0x3d5   :  { %5701 = vtanh.f32 %v1032_v56  ;;  %v1278_v56 = vld [vmem:[#allocation8 + $0x718] sm:$0xff]  ;;  %v1575_v45 = vld [vmem:[#allocation10 + $0x270] sm:$0xff] }
 0x3d6   :  { %v1528_v51 = vld [vmem:[#allocation10 + $0xf8] sm:$0xff] }
 0x3db   :  { %v5700_v63 = vpop.eup %5699 }
 0x3dc   :  { %v1037_v2 = vmul.f32 %v5700_v63, %v1035_v60  ;;  %v1279_v60 = vld [vmem:[#allocation8 + $0x720] sm:$0xff]  ;;  %v5015_v63 = vpack.c.bf16 %v1278_v56, %v1275_v54  ;;  %v1527_v54 = vld [vmem:[#allocation10 + $0xf0] sm:$0xff]  ;;  %v1532_v56 = vld [vmem:[#allocation10 + $0x118] sm:$0xff] }
 0x3de   :  { %v1041_v5 = vadd.f32 %v1039_v3, %v1037_v2  ;;  %v1284_v2 = vld [vmem:[#allocation8 + $0x748] sm:$0xff]  ;;  %v4989_v3 = vpack.c.bf16 %v1282_v61, %v1279_v60  ;;  %v1535_v60 = vld [vmem:[#allocation10 + $0x130] sm:$0xff]  ;;  %v1529_v61 = vld [vmem:[#allocation10 + $0x100] sm:$0xff] }
 0x3df   :  { %v5702_v55 = vpop.eup %5701 }
 0x3e0   :  { %1156 = vmatmul.mubr.f32.vlgmr.msra.gmra.mrb[6].mxu1 %v1041_v5  ;;  %3599 = vst [vmem:[#allocation21] sm:$0xff] %v1041_v5  ;;  %4248 = vmatprep.mubr.f32.mxu0 %v1041_v5  ;;  %v1038_v16 = vmul.f32 %v5702_v55, %v1036_v7  ;;  %v1285_v5 = vld [vmem:[#allocation8 + $0x750] sm:$0xff]  ;;  %v5019_v7 = vpack.c.bf16 %v1284_v2, %v1281_v1  ;;  %v1538_v1 = vld [vmem:[#allocation10 + $0x148] sm:$0xff] }
 0x3e1   :  { %4966 = vmatpush1.bf16.msra.mxu1 %v4965_v4  ;;  %1161 = vmatprep.mubr.f32.mxu1 %v6157_v32  ;;  %v4991_v4 = vpack.c.bf16 %v1289_v0, %v1286_v62  ;;  %v5023_v55 = vpack.c.bf16 %v1290_v9, %v1287_v8  ;;  %v1543_v2 = vld [vmem:[#allocation10 + $0x170] sm:$0xff]  ;;  %v1545_v8 = vld [vmem:[#allocation10 + $0x180] sm:$0xff] }
 0x3e2   :  { %4968 = vmatprep.subr.bf16.mxu1 %v4967_v6  ;;  %v1042_v18 = vadd.f32 %v1040_v17, %v1038_v16  ;;  %v1288_v6 = vld [vmem:[#allocation8 + $0x768] sm:$0xff]  ;;  %v5027_v16 = vpack.c.bf16 %v1503_v15, %v1498_v13  ;;  %v1497_v17 = vld [vmem:[#allocation10] sm:$0xff]  ;;  %v1539_v9 = vld [vmem:[#allocation10 + $0x150] sm:$0xff] }
 0x3e3   :  { %v4993_v11 = vpack.c.bf16 %v1288_v6, %v1285_v5  ;;  %v1542_v5 = vld [vmem:[#allocation10 + $0x168] sm:$0xff]  ;;  %v1540_v6 = vld [vmem:[#allocation10 + $0x158] sm:$0xff] }
 0x3e4   :  { %1162 = vmatmul.mubr.f32.gmra.mrb[8].mxu1 %v1042_v18  ;;  %3600 = vst [vmem:[#allocation21 + $0x8] sm:$0xff] %v1042_v18  ;;  %4249 = vmatmul.mubr.f32.vlgmr.msra.gmra.mrb[8].mxu0 %v1042_v18  ;;  %v1500_v18 = vld [vmem:[#allocation10 + $0x18] sm:$0xff] }
 0x3e5   :  { %4970 = vmatpush1.bf16.msra.mxu1 %v4969_v10  ;;  %4998 = vmatpush3.bf16.msra.mxu0 %v6460_v14  ;;  %v4979_v14 = vpack.c.bf16 %v1271_v34, %v1268_v30  ;;  %v1502_v10 = vld [vmem:[#allocation10 + $0x28] sm:$0xff]  ;;  %v1509_v34 = vld [vmem:[#allocation10 + $0x60] sm:$0xff]  ;;  %v1548_v15 = vld [vmem:[#allocation10 + $0x198] sm:$0xff] }
 0x3e6   :  { %4972 = vmatprep.subr.bf16.mxu1 %v4971_v19  ;;  %5000 = vmatprep.subr.bf16.mxu0 %v4999_v23  ;;  %v5029_v19 = vpack.c.bf16 %v1502_v10, %v1497_v17  ;;  %v1547_v10 = vld [vmem:[#allocation10 + $0x190] sm:$0xff] }
 0x3e7   :  { %1355 = vmatprep.mubr.f32.mxu1 %v6157_v32  ;;  %4283 = vmatprep.mubr.f32.mxu0 %v6467_v31 }
 0x3e9   :  { %4974 = vmatpush1.bf16.msra.mxu1 %v4973_v27  ;;  %5002 = vmatpush3.bf16.msra.mxu0 %v4999_v23  ;;  %v5059_v23 = vpack.c.bf16 %v1505_v20, %v1500_v18  ;;  %v5031_v27 = vpack.c.bf16 %v1513_v26, %v1508_v25  ;;  %v1552_v18 = vld [vmem:[#allocation10 + $0x1b8] sm:$0xff]  ;;  %v1558_v26 = vld [vmem:[#allocation10 + $0x1e8] sm:$0xff] }
 0x3ea   :  { %4976 = vmatprep.subr.bf16.mxu1 %v4975_v28  ;;  %5004 = vmatprep.subr.bf16.mxu0 %v5003_v33  ;;  %v1512_v28 = vld [vmem:[#allocation10 + $0x78] sm:$0xff]  ;;  %v5049_v20 = vpack.c.bf16 %v1552_v18, %v1547_v10 }
 0x3eb   :  { %v5033_v30 = vpack.c.bf16 %v1512_v28, %v1507_v59  ;;  %v1557_v28 = vld [vmem:[#allocation10 + $0x1e0] sm:$0xff] }
 0x3ed   :  { %4978 = vmatpush1.bf16.msra.mxu1 %v4977_v37  ;;  %5006 = vmatpush3.bf16.msra.mxu0 %v5003_v33  ;;  %v1515_v33 = vld [vmem:[#allocation10 + $0x90] sm:$0xff]  ;;  %v5065_v37 = vpack.c.bf16 %v1514_v35, %v1509_v34  ;;  %v1565_v34 = vld [vmem:[#allocation10 + $0x220] sm:$0xff] }
 0x3ee   :  { %4980 = vmatprep.subr.bf16.mxu1 %v4979_v14  ;;  %5008 = vmatprep.subr.bf16.mxu0 %v5007_v41  ;;  %v5063_v36 = vpack.c.bf16 %v1515_v33, %v1510_v29  ;;  %v1518_v14 = vld [vmem:[#allocation10 + $0xa8] sm:$0xff]  ;;  %v1559_v35 = vld [vmem:[#allocation10 + $0x1f0] sm:$0xff] }
 0x3ef   :  { %v5035_v39 = vpack.c.bf16 %v1523_v38, %v1518_v14  ;;  %v1562_v29 = vld [vmem:[#allocation10 + $0x208] sm:$0xff]  ;;  %v1568_v38 = vld [vmem:[#allocation10 + $0x238] sm:$0xff] }
 0x3f0   :  { %v5053_v33 = vpack.c.bf16 %v1562_v29, %v1557_v28 }
 0x3f1   :  { %4982 = vmatpush1.bf16.msra.mxu1 %v4981_v46  ;;  %5010 = vmatpush3.bf16.msra.mxu0 %v5007_v41  ;;  %v1522_v41 = vld [vmem:[#allocation10 + $0xc8] sm:$0xff]  ;;  %v1519_v46 = vld [vmem:[#allocation10 + $0xb0] sm:$0xff] }
 0x3f2   :  { %4984 = vmatprep.subr.bf16.mxu1 %v4983_v48  ;;  %5012 = vmatprep.subr.bf16.mxu0 %v5011_v52  ;;  %v5037_v43 = vpack.c.bf16 %v1522_v41, %v1517_v40  ;;  %v1524_v48 = vld [vmem:[#allocation10 + $0xd8] sm:$0xff]  ;;  %v1567_v40 = vld [vmem:[#allocation10 + $0x230] sm:$0xff] }
 0x3f3   :  { %v5069_v50 = vpack.c.bf16 %v1524_v48, %v1519_v46  ;;  %v5057_v46 = vpack.c.bf16 %v1572_v42, %v1567_v40  ;;  %v1516_v40 = vld [vmem:[#allocation10 + $0x98] sm:$0xff] }
 0x3f5   :  { %4986 = vmatpush1.bf16.msra.mxu1 %v4985_v57  ;;  %5014 = vmatpush3.bf16.msra.mxu0 %v5011_v52  ;;  %v1533_v52 = vld [vmem:[#allocation10 + $0x120] sm:$0xff]  ;;  %v5041_v57 = vpack.c.bf16 %v1532_v56, %v1527_v54 }
 0x3f6   :  { %4988 = vmatprep.subr.bf16.mxu1 %v4987_v58  ;;  %5016 = vmatprep.subr.bf16.mxu0 %v5015_v63  ;;  %v5039_v53 = vpack.c.bf16 %v1533_v52, %v1528_v51  ;;  %v1530_v58 = vld [vmem:[#allocation10 + $0x108] sm:$0xff]  ;;  %v1501_v51 = vld [vmem:[#allocation10 + $0x20] sm:$0xff] }
 0x3f7   :  { %v5071_v62 = vpack.c.bf16 %v1535_v60, %v1530_v58  ;;  %v1886_v56 = vld [vmem:[#allocation11] sm:$0xff] }
 0x3f9   :  { %4990 = vmatpush1.bf16.msra.mxu1 %v4989_v3  ;;  %5018 = vmatpush3.bf16.msra.mxu0 %v5015_v63  ;;  %v1534_v63 = vld [vmem:[#allocation10 + $0x128] sm:$0xff]  ;;  %v5043_v3 = vpack.c.bf16 %v1543_v2, %v1538_v1  ;;  %v1462_v2 = vld [vmem:[#allocation16 + $0x7] ss:$0 sm:$0xff] }
 0x3fa   :  { %4992 = vmatprep.subr.bf16.mxu1 %v4991_v4  ;;  %5020 = vmatprep.subr.bf16.mxu0 %v5019_v7  ;;  %v5073_v0 = vpack.c.bf16 %v1534_v63, %v1529_v61  ;;  %v1537_v4 = vld [vmem:[#allocation10 + $0x140] sm:$0xff] }
 0x3fd   :  { %4994 = vmatpush1.bf16.msra.mxu1 %v4993_v11  ;;  %5022 = vmatpush3.bf16.msra.mxu0 %v5019_v7  ;;  %v5045_v7 = vpack.c.bf16 %v1542_v5, %v1537_v4  ;;  %v1544_v11 = vld [vmem:[#allocation10 + $0x178] sm:$0xff] }
 0x3fe   :  { %5024 = vmatprep.subr.bf16.mxu0 %v5023_v55  ;;  %5028 = vmatprep.subr.bf16.mxu1 %v5027_v16  ;;  %v5077_v13 = vpack.c.bf16 %v1544_v11, %v1539_v9  ;;  %v1553_v16 = vld [vmem:[#allocation10 + $0x1c0] sm:$0xff] }
 0x3ff   :  { %v5047_v17 = vpack.c.bf16 %v1553_v16, %v1548_v15 }
 0x400   :  { %1356 = vmatmul.mubr.f32.vlgmr.msra.gmra.mrb[6].mxu1 %v6467_v31 }
 0x401   :  { %1361 = vmatprep.mubr.f32.mxu1 %v6157_v32  ;;  %5026 = vmatpush3.bf16.msra.mxu0 %v5023_v55  ;;  %v5075_v55 = vpack.c.bf16 %v1545_v8, %v1540_v6 }
 0x402   :  { %5030 = vmatpush1.bf16.msra.mxu1 %v5029_v19  ;;  %5060 = vmatprep.subr.bf16.mxu0 %v5059_v23  ;;  %v1550_v19 = vld [vmem:[#allocation10 + $0x1a8] sm:$0xff] }
 0x403   :  { %5032 = vmatprep.subr.bf16.mxu1 %v5031_v27  ;;  %v1554_v23 = vld [vmem:[#allocation10 + $0x1c8] sm:$0xff]  ;;  %v1563_v27 = vld [vmem:[#allocation10 + $0x210] sm:$0xff] }
 0x404   :  { %1362 = vmatmul.mubr.f32.gmra.mrb[8].mxu1 %v6473_v12  ;;  %4284 = vmatmul.mubr.f32.vlgmr.msra.gmra.mrb[10].mxu0 %v6473_v12  ;;  %v5081_v25 = vpack.c.bf16 %v1554_v23, %v1549_v22  ;;  %v5051_v59 = vpack.c.bf16 %v1563_v27, %v1558_v26 }
 0x405   :  { %1671 = vmatprep.mubr.f32.mxu1 %v6157_v32  ;;  %1748 = vmatprep.mubr.f32.mxu0 %v6157_v32 }
 0x406   :  { %5062 = vmatpush1.bf16.msra.mxu0 %v5061_v24  ;;  %5034 = vmatpush1.bf16.msra.mxu1 %v5033_v30  ;;  %v5079_v24 = vpack.c.bf16 %v1555_v21, %v1550_v19  ;;  %v1560_v30 = vld [vmem:[#allocation10 + $0x1f8] sm:$0xff] }
 0x407   :  { %5064 = vmatprep.subr.bf16.mxu0 %v5063_v36  ;;  %5036 = vmatprep.subr.bf16.mxu1 %v5035_v39  ;;  %v1564_v36 = vld [vmem:[#allocation10 + $0x218] sm:$0xff]  ;;  %v1573_v39 = vld [vmem:[#allocation10 + $0x260] sm:$0xff] }
 0x408   :  { %v5085_v14 = vpack.c.bf16 %v1564_v36, %v1559_v35  ;;  %v5055_v41 = vpack.c.bf16 %v1573_v39, %v1568_v38  ;;  %v1511_v39 = vld [vmem:[#allocation10 + $0x70] sm:$0xff] }
 0x40a   :  { %5066 = vmatpush1.bf16.msra.mxu0 %v5065_v37  ;;  %5038 = vmatpush1.bf16.msra.mxu1 %v5037_v43  ;;  %v5083_v37 = vpack.c.bf16 %v1565_v34, %v1560_v30  ;;  %v1570_v43 = vld [vmem:[#allocation10 + $0x248] sm:$0xff] }
 0x40b   :  { %5068 = vmatprep.subr.bf16.mxu0 %v5067_v49  ;;  %5040 = vmatprep.subr.bf16.mxu1 %v5039_v53  ;;  %v5087_v48 = vpack.c.bf16 %v1575_v45, %v1570_v43  ;;  %v1569_v49 = vld [vmem:[#allocation10 + $0x240] sm:$0xff]  ;;  %v1506_v53 = vld [vmem:[#allocation10 + $0x48] sm:$0xff]  ;;  %v5095_v45 = vpack.c.bf16 %v1516_v40, %v1511_v39 }
 0x40c   :  { %v6479_v54 = vpack.c.bf16 %v1506_v53, %v1501_v51  ;;  %v1888_v51 = vld [vmem:[#allocation11 + $0x50] sm:$0xff]  ;;  %v1898_v40 = vld [vmem:[#allocation11 + $0x1e0] sm:$0xff] }
 0x40e   :  { %5070 = vmatpush1.bf16.msra.mxu0 %v5069_v50  ;;  %5042 = vmatpush1.bf16.msra.mxu1 %v5041_v57  ;;  %v1574_v50 = vld [vmem:[#allocation10 + $0x268] sm:$0xff] }
 0x40f   :  { %5072 = vmatprep.subr.bf16.mxu0 %v5071_v62  ;;  %5044 = vmatprep.subr.bf16.mxu1 %v5043_v3  ;;  %v5089_v52 = vpack.c.bf16 %v1574_v50, %v1569_v49  ;;  %v1887_v57 = vld [vmem:[#allocation11 + $0x28] sm:$0xff]  ;;  %v1445_v62 = vld [vmem:[#allocation16 + $0x6] ss:$0 sm:$0xff] }
 0x410   :  { %v6482_v58 = vpack.c.bf16 %v1887_v57, %v1886_v56  ;;  %v1526_v50 = vld [vmem:[#allocation10 + $0xe8] sm:$0xff]  ;;  %v1890_v57 = vld [vmem:[#allocation11 + $0xa0] sm:$0xff] }
 0x412   :  { %5074 = vmatpush1.bf16.msra.mxu0 %v5073_v0  ;;  %5046 = vmatpush1.bf16.msra.mxu1 %v5045_v7 }
 0x413   :  { %5076 = vmatprep.subr.bf16.mxu0 %v5075_v55  ;;  %5048 = vmatprep.subr.bf16.mxu1 %v5047_v17 }
 0x416   :  { %5078 = vmatpush1.bf16.msra.mxu0 %v5077_v13  ;;  %5050 = vmatpush1.bf16.msra.mxu1 %v5049_v20  ;;  %v1480_v20 = vld [vmem:[#allocation16 + $0x29] ss:$0 sm:$0xff] }
 0x417   :  { %5080 = vmatprep.subr.bf16.mxu0 %v5079_v24  ;;  %5052 = vmatprep.subr.bf16.mxu1 %v5051_v59  ;;  %v1477_v24 = vld [vmem:[#allocation16 + $0x28] ss:$0 sm:$0xff] }
 0x41a   :  { %5082 = vmatpush1.bf16.msra.mxu0 %v5081_v25  ;;  %5054 = vmatpush1.bf16.msra.mxu1 %v5053_v33 }
 0x41b   :  { %5084 = vmatprep.subr.bf16.mxu0 %v5083_v37  ;;  %5056 = vmatprep.subr.bf16.mxu1 %v5055_v41 }
 0x41e   :  { %5086 = vmatpush1.bf16.msra.mxu0 %v5085_v14  ;;  %5058 = vmatpush1.bf16.msra.mxu1 %v5057_v46 }
 0x41f   :  { %5088 = vmatprep.subr.bf16.mxu0 %v5087_v48  ;;  %5092 = vmatprep.subr.bf16.mxu1 %v6479_v54  ;;  %v1521_v48 = vld [vmem:[#allocation10 + $0xc0] sm:$0xff] }
 0x422   :  { %5090 = vmatpush1.bf16.msra.mxu0 %v5089_v52  ;;  %v1889_v52 = vld [vmem:[#allocation11 + $0x78] sm:$0xff] }
 0x423   :  { %5124 = vmatprep.subr.bf16.mxu0 %v6482_v58 }
 0x4b7   :  { %v4250_v60 = vpop.f32.mrb[8].mxu0 }
 0x4b8   :  { %v1234_v61 = vpop.f32.mrb[9].mxu0  ;;  %v1479_v33 = vadd.f32 %v4250_v60, %v1477_v24 }
 0x4b9   :  { %v1478_v27 = vadd.f32 %v1477_v24, %v1234_v61  ;;  %v5099_v61 = vpack.c.bf16 %v1526_v50, %v1521_v48  ;;  %v1900_v48 = vld [vmem:[#allocation11 + $0x230] sm:$0xff] }
 0x4d3   :  { %v1357_v63 = vpop.f32.mrb[6].mxu1 }
 0x4d4   :  { %v1446_v0 = vadd.f32 %v1445_v62, %v1357_v63  ;;  %v1359_v1 = vpop.f32.mrb[7].mxu1  ;;  %v1531_v63 = vld [vmem:[#allocation10 + $0x110] sm:$0xff] }
 0x4d5   :  { %v1463_v4 = vadd.f32 %v1462_v2, %v1359_v1  ;;  %v1541_v1 = vld [vmem:[#allocation10 + $0x160] sm:$0xff] }
 0x4d6   :  { %v3710_v3 = vmul.f32 -1.442695, %v1446_v0  ;;  %v1536_v0 = vld [vmem:[#allocation10 + $0x138] sm:$0xff] }
 0x4d7   :  { %v1363_v5 = vpop.f32.mrb[8].mxu1  ;;  %v4285_v6 = vpop.f32.mrb[10].mxu0  ;;  %v3712_v13 = vmul.f32 -1.442695, %v1463_v4  ;;  %v1551_v4 = vld [vmem:[#allocation10 + $0x1b0] sm:$0xff] }
 0x4d8   :  { %5703 = vpow2.f32 %v3710_v3  ;;  %v1447_v7 = vadd.f32 %v1445_v62, %v1363_v5  ;;  %v1365_v8 = vpop.f32.mrb[9].mxu1  ;;  %v1434_v9 = vpop.f32.mrb[11].mxu0  ;;  %v1482_v28 = vadd.f32 %v4285_v6, %v1480_v20  ;;  %v5127_v62 = vpack.c.bf16 %v1889_v52, %v1888_v51  ;;  %v1556_v5 = vld [vmem:[#allocation10 + $0x1d8] sm:$0xff]  ;;  %v1561_v6 = vld [vmem:[#allocation10 + $0x200] sm:$0xff] }
 0x4d9   :  { %v1464_v55 = vadd.f32 %v1462_v2, %v1365_v8  ;;  %v1481_v23 = vadd.f32 %v1480_v20, %v1434_v9  ;;  %v1546_v2 = vld [vmem:[#allocation10 + $0x188] sm:$0xff]  ;;  %v1571_v9 = vld [vmem:[#allocation10 + $0x250] sm:$0xff]  ;;  %v2002_v51 = vld [vmem:[#allocation11 + $0x238] sm:$0xff] }
 0x4da   :  { %v3711_v11 = vmul.f32 -1.442695, %v1447_v7  ;;  %v5107_v3 = vpack.c.bf16 %v1546_v2, %v1541_v1  ;;  %v1566_v7 = vld [vmem:[#allocation10 + $0x228] sm:$0xff]  ;;  %v1993_v20 = vld [vmem:[#allocation11 + $0xd0] sm:$0xff]  ;;  %v2003_v52 = vld [vmem:[#allocation11 + $0x260] sm:$0xff] }
 0x4db   :  { %v3713_v15 = vmul.f32 -1.442695, %v1464_v55  ;;  %v5115_v8 = vpack.c.bf16 %v1566_v7, %v1561_v6 }
 0x4dc   :  { %5705 = vpow2.f32 %v3711_v11  ;;  %v1576_v11 = vld [vmem:[#allocation10 + $0x278] sm:$0xff] }
 0x4dd   :  { %5707 = vpow2.f32 %v3712_v13  ;;  %v5119_v55 = vpack.c.bf16 %v1576_v11, %v1571_v9  ;;  %v1988_v13 = vld [vmem:[#allocation11 + $0x8] sm:$0xff] }
 0x4de   :  { %5709 = vpow2.f32 %v3713_v15  ;;  %v1989_v15 = vld [vmem:[#allocation11 + $0x30] sm:$0xff] }
 0x4e2   :  { %v5704_v16 = vpop.eup %5703 }
 0x4e3   :  { %v1454_v17 = vadd.f32 1.0, %v5704_v16  ;;  %v5155_v16 = vpack.c.bf16 %v1989_v15, %v1988_v13 }
 0x4e5   :  { %5711 = vrcp.f32 %v1454_v17  ;;  %v1990_v17 = vld [vmem:[#allocation11 + $0x58] sm:$0xff] }
 0x4e6   :  { %v5706_v10 = vpop.eup %5705 }
 0x4e7   :  { %v1455_v18 = vadd.f32 1.0, %v5706_v10  ;;  %v5708_v19 = vpop.eup %5707  ;;  %v1991_v10 = vld [vmem:[#allocation11 + $0x80] sm:$0xff] }
 0x4e8   :  { %v5710_v21 = vpop.eup %5709  ;;  %v1471_v22 = vadd.f32 1.0, %v5708_v19  ;;  %v1992_v19 = vld [vmem:[#allocation11 + $0xa8] sm:$0xff] }
 0x4e9   :  { %5713 = vrcp.f32 %v1455_v18  ;;  %v1472_v26 = vadd.f32 1.0, %v5710_v21  ;;  %v5159_v18 = vpack.c.bf16 %v1991_v10, %v1990_v17  ;;  %v5163_v21 = vpack.c.bf16 %v1993_v20, %v1992_v19 }
 0x4ea   :  { %5715 = vrcp.f32 %v1471_v22  ;;  %v1892_v22 = vld [vmem:[#allocation11 + $0xf0] sm:$0xff] }
 0x4eb   :  { %5717 = vrcp.f32 %v1472_v26  ;;  %v1995_v26 = vld [vmem:[#allocation11 + $0x120] sm:$0xff] }
 0x4ef   :  { %v5712_v25 = vpop.eup %5711 }
 0x4f0   :  { %v1483_v59 = vmul.f32 %v5712_v25, %v1481_v23  ;;  %v1893_v23 = vld [vmem:[#allocation11 + $0x118] sm:$0xff] }
 0x4f1   :  { %v5135_v24 = vpack.c.bf16 %v1893_v23, %v1892_v22  ;;  %v1994_v25 = vld [vmem:[#allocation11 + $0xf8] sm:$0xff] }
 0x4f2   :  { %v1485_v29 = vadd.f32 %v1483_v59, %v1478_v27  ;;  %v5167_v27 = vpack.c.bf16 %v1995_v26, %v1994_v25  ;;  %v1894_v59 = vld [vmem:[#allocation11 + $0x140] sm:$0xff] }
 0x4f3   :  { %v5714_v30 = vpop.eup %5713 }
 0x4f4   :  { %v1484_v34 = vmul.f32 %v5714_v30, %v1482_v28  ;;  %5719 = vtanh.f32 %v1485_v29  ;;  %v5716_v36 = vpop.eup %5715  ;;  %v1895_v28 = vld [vmem:[#allocation11 + $0x168] sm:$0xff] }
 0x4f5   :  { %v5718_v37 = vpop.eup %5717  ;;  %v1489_v14 = vsub.f32 1.0, %v5716_v36  ;;  %v1493_v42 = vmul.f32 %v5716_v36, %v6467_v31  ;;  %v1891_v31 = vld [vmem:[#allocation11 + $0xc8] sm:$0xff]  ;;  %v5139_v29 = vpack.c.bf16 %v1895_v28, %v1894_v59  ;;  %v1897_v36 = vld [vmem:[#allocation11 + $0x1b8] sm:$0xff] }
 0x4f6   :  { %v1486_v35 = vadd.f32 %v1484_v34, %v1479_v33  ;;  %v1490_v46 = vsub.f32 1.0, %v5718_v37  ;;  %v1494_v56 = vmul.f32 %v5718_v37, %v6473_v12  ;;  %v5131_v12 = vpack.c.bf16 %v1891_v31, %v1890_v57  ;;  %v1996_v30 = vld [vmem:[#allocation11 + $0x148] sm:$0xff]  ;;  %v1997_v33 = vld [vmem:[#allocation11 + $0x170] sm:$0xff]  ;;  %v2091_v57 = vld [vmem:[#allocation11 + $0x38] sm:$0xff] }
 0x4f7   :  { %v5171_v34 = vpack.c.bf16 %v1997_v33, %v1996_v30 }
 0x4f8   :  { %5721 = vtanh.f32 %v1486_v35  ;;  %v1896_v35 = vld [vmem:[#allocation11 + $0x190] sm:$0xff] }
 0x4f9   :  { %v5143_v37 = vpack.c.bf16 %v1897_v36, %v1896_v35 }
 0x4fe   :  { %v5720_v38 = vpop.eup %5719 }
 0x4ff   :  { %v1491_v41 = vmul.f32 %v5720_v38, %v1489_v14  ;;  %v1998_v14 = vld [vmem:[#allocation11 + $0x198] sm:$0xff]  ;;  %v1999_v38 = vld [vmem:[#allocation11 + $0x1c0] sm:$0xff] }
 0x500   :  { %v5175_v39 = vpack.c.bf16 %v1999_v38, %v1998_v14  ;;  %v2092_v14 = vld [vmem:[#allocation11 + $0x60] sm:$0xff]  ;;  %v2093_v38 = vld [vmem:[#allocation11 + $0x88] sm:$0xff] }
 0x501   :  { %v1495_v43 = vadd.f32 %v1493_v42, %v1491_v41  ;;  %v1899_v41 = vld [vmem:[#allocation11 + $0x208] sm:$0xff] }
 0x502   :  { %v5722_v49 = vpop.eup %5721  ;;  %v5147_v42 = vpack.c.bf16 %v1899_v41, %v1898_v40 }
 0x503   :  { %1672 = vmatmul.mubr.f32.vlgmr.msra.gmra.mrb[10].mxu1 %v1495_v43  ;;  %3601 = vst [vmem:[#allocation23] sm:$0xff] %v1495_v43  ;;  %1749 = vmatmul.mubr.f32.vlgmr.msra.gmra.mrb[12].mxu0 %v1495_v43  ;;  %v1492_v53 = vmul.f32 %v5722_v49, %v1490_v46  ;;  %v1901_v49 = vld [vmem:[#allocation11 + $0x258] sm:$0xff] }
 0x504   :  { %5094 = vmatpush3.bf16.msra.mxu1 %v6479_v54  ;;  %1677 = vmatprep.mubr.f32.mxu1 %v6157_v32  ;;  %v5103_v54 = vpack.c.bf16 %v1536_v0, %v1531_v63  ;;  %v5151_v50 = vpack.c.bf16 %v1901_v49, %v1900_v48  ;;  %v1582_v63 = vlaneseq  ;;  %v5191_v49 = vpack.c.bf16 %v2093_v38, %v2092_v14  ;;  %v2206_v14 = vld [vmem:[#allocation11 + $0x248] sm:$0xff]  ;;  %v2207_v38 = vld [vmem:[#allocation11 + $0x270] sm:$0xff] }
 0x505   :  { %1754 = vmatprep.mubr.f32.mxu0 %v6157_v32  ;;  %5096 = vmatprep.subr.bf16.mxu1 %v5095_v45  ;;  %v1496_v60 = vadd.f32 %v1494_v56, %v1492_v53  ;;  %v5183_v53 = vpack.c.bf16 %v2003_v52, %v2002_v51  ;;  %v2090_v56 = vld [vmem:[#allocation11 + $0x10] sm:$0xff] }
 0x506   :  { %5126 = vmatpush3.bf16.msra.mxu0 %v6482_v58  ;;  %v5111_v58 = vpack.c.bf16 %v1556_v5, %v1551_v4  ;;  %v6491_v31 = vpack.c.bf16 %v2091_v57, %v2090_v56  ;;  %v6497_v0 = vshrl.u32 %v1582_v63, 7  ;;  %v2094_v52 = vld [vmem:[#allocation11 + $0xb0] sm:$0xff]  ;;  %v2197_v63 = vld [vmem:[#allocation11 + $0xe0] sm:$0xff] }
 0x507   :  { %1678 = vmatmul.mubr.f32.gmra.mrb[12].mxu1 %v1496_v60  ;;  %3602 = vst [vmem:[#allocation23 + $0x8] sm:$0xff] %v1496_v60  ;;  %1755 = vmatmul.mubr.f32.gmra.mrb[14].mxu0 %v1496_v60 }
 0x508   :  { %5098 = vmatpush3.bf16.msra.mxu1 %v5095_v45  ;;  %4318 = vmatprep.mubr.f32.mxu1 %v1495_v43  ;;  %v2000_v43 = vld [vmem:[#allocation11 + $0x1e8] sm:$0xff]  ;;  %v2001_v45 = vld [vmem:[#allocation11 + $0x210] sm:$0xff]  ;;  %v6502_v2 = vsub.s32 0, %v6497_v0  ;;  %v6506_v4 = vsub.s32 1, %v6497_v0  ;;  %v1596_v5 = vsub.s32 3, %v6497_v0 }
 0x509   :  { %5100 = vmatprep.subr.bf16.mxu1 %v5099_v61  ;;  %5128 = vmatprep.subr.bf16.mxu0 %v5127_v62  ;;  %v5179_v46 = vpack.c.bf16 %v2001_v45, %v2000_v43  ;;  %v2194_v43 = vld [vmem:[#allocation11 + $0x68] sm:$0xff]  ;;  %v2195_v45 = vld [vmem:[#allocation11 + $0x90] sm:$0xff] }
 0x50a   :  { %5130 = vmatpush3.bf16.msra.mxu0 %v5127_v62  ;;  %v5223_v57 = vpack.c.bf16 %v2195_v45, %v2194_v43  ;;  %v5247_v43 = vpack.c.bf16 %v2207_v38, %v2206_v14  ;;  %v2402_v38 = vld [vmem:[#allocation13 + $0x150] sm:$0xff] }
 0x50b   :  { %5132 = vmatprep.subr.bf16.mxu0 %v5131_v12 }
 0x50c   :  { %5102 = vmatpush3.bf16.msra.mxu1 %v5099_v61  ;;  %v2193_v61 = vld [vmem:[#allocation11 + $0x40] sm:$0xff] }
 0x50d   :  { %5104 = vmatprep.subr.bf16.mxu1 %v5103_v54 }
 0x50e   :  { %5134 = vmatpush3.bf16.msra.mxu0 %v5131_v12  ;;  %v1578_v12 = vld [vmem:[#allocation16 + $0x2a] ss:$8 sm:$0xf] }
 0x50f   :  { %5136 = vmatprep.subr.bf16.mxu0 %v5135_v24 }
 0x510   :  { %5106 = vmatpush3.bf16.msra.mxu1 %v5103_v54  ;;  %v1579_v54 = vld [vmem:[#allocation16 + $0x2a] ss:$8 sm:$0x10] }
 0x511   :  { %5108 = vmatprep.subr.bf16.mxu1 %v5107_v3  ;;  %v6499_v1 = vor.u32 %v1579_v54, %v1578_v12 }
 0x512   :  { %5138 = vmatpush3.bf16.msra.mxu0 %v5135_v24 }
 0x513   :  { %5140 = vmatprep.subr.bf16.mxu0 %v5139_v29  ;;  %v1589_v7 = vrot.slane %v6499_v1, %v6506_v4 }
 0x514   :  { %5110 = vmatpush3.bf16.msra.mxu1 %v5107_v3  ;;  %v1592_v3 = vsub.s32 2, %v6497_v0 }
 0x515   :  { %5112 = vmatprep.subr.bf16.mxu1 %v5111_v58 }
 0x516   :  { %5142 = vmatpush3.bf16.msra.mxu0 %v5139_v29  ;;  %v6512_v6 = vrot.slane %v6499_v1, %v1592_v3  ;;  %v1600_v3 = vsub.s32 4, %v6497_v0 }
 0x517   :  { %5144 = vmatprep.subr.bf16.mxu0 %v5143_v37 }
 0x518   :  { %5114 = vmatpush3.bf16.msra.mxu1 %v5111_v58  ;;  %v1585_v58 = vrot.slane %v6499_v1, %v6502_v2 }
 0x519   :  { %5116 = vmatprep.subr.bf16.mxu1 %v5115_v8 }
 0x51a   :  { %5146 = vmatpush3.bf16.msra.mxu0 %v5143_v37 }
 0x51b   :  { %5148 = vmatprep.subr.bf16.mxu0 %v5147_v42 }
 0x51c   :  { %5118 = vmatpush3.bf16.msra.mxu1 %v5115_v8  ;;  %v6517_v8 = vrot.slane %v6499_v1, %v1596_v5  ;;  %v2096_v5 = vld [vmem:[#allocation11 + $0x100] sm:$0xff] }
 0x51d   :  { %5120 = vmatprep.subr.bf16.mxu1 %v5119_v55 }
 0x51e   :  { %5150 = vmatpush3.bf16.msra.mxu0 %v5147_v42 }
 0x51f   :  { %5152 = vmatprep.subr.bf16.mxu0 %v5151_v50 }
 0x520   :  { %5122 = vmatpush3.bf16.msra.mxu1 %v5119_v55 }
 0x521   :  { %5156 = vmatprep.subr.bf16.mxu1 %v5155_v16 }
 0x522   :  { %5154 = vmatpush3.bf16.msra.mxu0 %v5151_v50 }
 0x523   :  { %4319 = vmatmul.mubr.f32.vlgmr.msra.gmra.mrb[14].mxu1 %v1496_v60  ;;  %v2192_v60 = vld [vmem:[#allocation11 + $0x18] sm:$0xff]  ;;  %5188 = vmatprep.subr.bf16.mxu0 %v6491_v31 }
 0x524   :  { %5158 = vmatpush3.bf16.msra.mxu1 %v5155_v16  ;;  %v6493_v62 = vpack.c.bf16 %v2193_v61, %v2192_v60  ;;  %v2196_v61 = vld [vmem:[#allocation11 + $0xb8] sm:$0xff] }
 0x525   :  { %5160 = vmatprep.subr.bf16.mxu1 %v5159_v18 }
 0x528   :  { %5162 = vmatpush3.bf16.msra.mxu1 %v5159_v18 }
 0x529   :  { %5164 = vmatprep.subr.bf16.mxu1 %v5163_v21 }
 0x52c   :  { %5166 = vmatpush3.bf16.msra.mxu1 %v5163_v21 }
 0x52d   :  { %5168 = vmatprep.subr.bf16.mxu1 %v5167_v27 }
 0x530   :  { %5170 = vmatpush3.bf16.msra.mxu1 %v5167_v27 }
 0x531   :  { %5172 = vmatprep.subr.bf16.mxu1 %v5171_v34 }
 0x534   :  { %5174 = vmatpush3.bf16.msra.mxu1 %v5171_v34 }
 0x535   :  { %5176 = vmatprep.subr.bf16.mxu1 %v5175_v39 }
 0x538   :  { %5178 = vmatpush3.bf16.msra.mxu1 %v5175_v39 }
 0x539   :  { %5180 = vmatprep.subr.bf16.mxu1 %v5179_v46 }
 0x53c   :  { %5182 = vmatpush3.bf16.msra.mxu1 %v5179_v46 }
 0x53d   :  { %5184 = vmatprep.subr.bf16.mxu1 %v5183_v53 }
 0x540   :  { %5186 = vmatpush3.bf16.msra.mxu1 %v5183_v53  ;;  %v2095_v53 = vld [vmem:[#allocation11 + $0xd8] sm:$0xff] }
 0x541   :  { %5220 = vmatprep.subr.bf16.mxu1 %v6493_v62  ;;  %v5195_v54 = vpack.c.bf16 %v2095_v53, %v2094_v52  ;;  %v2296_v52 = vld [vmem:[#allocation11 + $0x70] sm:$0xff]  ;;  %v2297_v53 = vld [vmem:[#allocation11 + $0x98] sm:$0xff] }
 0x5d6   :  { %v1673_v9 = vpop.f32.mrb[10].mxu1  ;;  %v1750_v11 = vpop.f32.mrb[12].mxu0 }
 0x5d7   :  { %v1674_v55 = vadd.f32 %v1673_v9, %v1585_v58  ;;  %v1751_v13 = vadd.f32 %v1750_v11, %v6512_v6  ;;  %v1675_v15 = vpop.f32.mrb[11].mxu1  ;;  %v1752_v16 = vpop.f32.mrb[13].mxu0  ;;  %v2199_v9 = vld [vmem:[#allocation11 + $0x130] sm:$0xff] }
 0x5d8   :  { %v1676_v17 = vadd.f32 %v1675_v15, %v1589_v7  ;;  %v1753_v10 = vadd.f32 %v1752_v16, %v6517_v8  ;;  %v2099_v15 = vld [vmem:[#allocation11 + $0x178] sm:$0xff] }
 0x5d9   :  { %v1846_v18 = vmul.f32 1.442695, %v1674_v55  ;;  %v1850_v19 = vmul.f32 1.442695, %v1751_v13  ;;  %vm1836_vm3 = vcmp.gt.f32.partialorder %v1674_v55, 0.0  ;;  %vm1838_vm6 = vcmp.gt.f32.partialorder %v1751_v13, 0.0 }
 0x5da   :  { %v1848_v20 = vmul.f32 1.442695, %v1676_v17  ;;  %v1852_v21 = vmul.f32 1.442695, %v1753_v10  ;;  %v1679_v22 = vpop.f32.mrb[12].mxu1  ;;  %v6521_v23 = vpop.f32.mrb[14].mxu0 }
 0x5db   :  { %5723 = vpow2.f32 %v1846_v18  ;;  %v1680_v24 = vadd.f32 %v1679_v22, %v1585_v58  ;;  %v1681_v25 = vpop.f32.mrb[13].mxu1  ;;  %v6523_v26 = vpop.f32.mrb[15].mxu0  ;;  %vm1837_vm4 = vcmp.gt.f32.partialorder %v1676_v17, 0.0  ;;  %vm1839_vm8 = vcmp.gt.f32.partialorder %v1753_v10, 0.0  ;;  %v2097_v58 = vld [vmem:[#allocation11 + $0x128] sm:$0xff] }
 0x5dc   :  { %5725 = vpow2.f32 %v1850_v19  ;;  %v1682_v27 = vadd.f32 %v1681_v25, %v1589_v7  ;;  %v5227_v7 = vpack.c.bf16 %v2197_v63, %v2196_v61  ;;  %v6530_v11 = vadd.f32 %v6521_v23, %v6512_v6  ;;  %v2201_v6 = vld [vmem:[#allocation11 + $0x180] sm:$0xff]  ;;  %v2101_v22 = vld [vmem:[#allocation11 + $0x1c8] sm:$0xff]  ;;  %v2398_v61 = vld [vmem:[#allocation13 + $0x70] sm:$0xff] }
 0x5dd   :  { %5727 = vpow2.f32 %v1848_v20  ;;  %v1856_v59 = vmul.f32 1.442695, %v1680_v24  ;;  %vm1841_vm5 = vcmp.gt.f32.partialorder %v1680_v24, 0.0  ;;  %v6537_v0 = vadd.f32 %v6523_v26, %v6517_v8  ;;  %v2202_v25 = vld [vmem:[#allocation11 + $0x1a8] sm:$0xff]  ;;  %v2203_v26 = vld [vmem:[#allocation11 + $0x1d0] sm:$0xff] }
 0x5de   :  { %5729 = vpow2.f32 %v1852_v21  ;;  %v1858_v28 = vmul.f32 1.442695, %v1682_v27  ;;  %vm1842_vm7 = vcmp.gt.f32.partialorder %v1682_v27, 0.0  ;;  %v1860_v18 = vmul.f32 1.442695, %v6530_v11  ;;  %v2100_v21 = vld [vmem:[#allocation11 + $0x1a0] sm:$0xff] }
 0x5df   :  { %5731 = vpow2.f32 %v1856_v59  ;;  %v1862_v8 = vmul.f32 1.442695, %v6537_v0  ;;  %v2102_v59 = vld [vmem:[#allocation11 + $0x1f0] sm:$0xff]  ;;  %v2399_v63 = vld [vmem:[#allocation13 + $0xa8] sm:$0xff]  ;;  %vm1843_vm9 = vcmp.gt.f32.partialorder %v6530_v11, 0.0  ;;  %vm1844_vm11 = vcmp.gt.f32.partialorder %v6537_v0, 0.0 }
 0x5e0   :  { %5733 = vpow2.f32 %v1858_v28  ;;  %v2103_v28 = vld [vmem:[#allocation11 + $0x218] sm:$0xff] }
 0x5e1   :  { %5735 = vpow2.f32 %v1860_v18  ;;  %v2302_v18 = vld [vmem:[#allocation11 + $0x160] sm:$0xff] }
 0x5e5   :  { %v5724_v29 = vpop.eup %5723 }
 0x5e6   :  { %v5726_v30 = vpop.eup %5725  ;;  %v3714_v33 = vadd.f32 -1.0, %v5724_v29  ;;  %v5239_v29 = vpack.c.bf16 %v2203_v26, %v2202_v25  ;;  %v2502_v26 = vld [vmem:[#allocation13 + $0x8] sm:$0xff] }
 0x5e7   :  { %v5728_v34 = vpop.eup %5727  ;;  %v3716_v40 = vadd.f32 -1.0, %v5726_v30  ;;  %v2204_v30 = vld [vmem:[#allocation11 + $0x1f8] sm:$0xff] }
 0x5e8   :  { %v5730_v35 = vpop.eup %5729  ;;  %v1876_v36 = vsel %vm1836_vm3, %v1674_v55, %v3714_v33  ;;  %v3715_v37 = vadd.f32 -1.0, %v5728_v34  ;;  %v5199_v55 = vpack.c.bf16 %v2097_v58, %v2096_v5  ;;  %v2205_v33 = vld [vmem:[#allocation11 + $0x220] sm:$0xff]  ;;  %v5211_v34 = vpack.c.bf16 %v2103_v28, %v2102_v59  ;;  %v2299_v5 = vld [vmem:[#allocation11 + $0xe8] sm:$0xff] }
 0x5e9   :  { %v5732_v39 = vpop.eup %5731  ;;  %4353 = vmatprep.mubr.f32.mxu0 %v1876_v36  ;;  %v3717_v48 = vadd.f32 -1.0, %v5730_v35  ;;  %v1878_v56 = vsel %vm1838_vm6, %v1751_v13, %v3716_v40  ;;  %v6533_v13 = vrot.slane %v6499_v1, %v1600_v3  ;;  %v2104_v35 = vld [vmem:[#allocation11 + $0x240] sm:$0xff]  ;;  %v2105_v36 = vld [vmem:[#allocation11 + $0x268] sm:$0xff] }
 0x5ea   :  { %v3719_v41 = vadd.f32 -1.0, %v5732_v39  ;;  %v1877_v42 = vsel %vm1837_vm4, %v1676_v17, %v3715_v37  ;;  %v5734_v46 = vpop.eup %5733  ;;  %v5243_v37 = vpack.c.bf16 %v2205_v33, %v2204_v30  ;;  %v5215_v39 = vpack.c.bf16 %v2105_v36, %v2104_v35  ;;  %v2294_v40 = vld [vmem:[#allocation11 + $0x20] sm:$0xff]  ;;  %v2504_v30 = vld [vmem:[#allocation13 + $0x78] sm:$0xff]  ;;  %v2505_v33 = vld [vmem:[#allocation13 + $0xb0] sm:$0xff] }
 0x5eb   :  { %4388 = vmatprep.mubr.f32.mxu1 %v1877_v42  ;;  %v3720_v51 = vadd.f32 -1.0, %v5734_v46  ;;  %v1879_v12 = vsel %vm1839_vm8, %v1753_v10, %v3717_v48  ;;  %v2200_v10 = vld [vmem:[#allocation11 + $0x158] sm:$0xff]  ;;  %v5736_v42 = vpop.eup %5735  ;;  %v2396_v46 = vld [vmem:[#allocation13] sm:$0xff]  ;;  %v2506_v36 = vld [vmem:[#allocation13 + $0xe8] sm:$0xff] }
 0x5ec   :  { %v1881_v50 = vsel %vm1841_vm5, %v1680_v24, %v3719_v41  ;;  %v5235_v23 = vpack.c.bf16 %v2201_v6, %v2200_v10  ;;  %v2295_v41 = vld [vmem:[#allocation11 + $0x48] sm:$0xff]  ;;  %v2397_v48 = vld [vmem:[#allocation13 + $0x38] sm:$0xff]  ;;  %v2298_v3 = vld [vmem:[#allocation11 + $0xc0] sm:$0xff] }
 0x5ed   :  { %4354 = vmatmul.mubr.f32.vlgmr.msra.gmra.mrb[16].mxu0 %v1881_v50  ;;  %v1882_v60 = vsel %vm1842_vm7, %v1682_v27, %v3720_v51  ;;  %v5207_v27 = vpack.c.bf16 %v2101_v22, %v2100_v21  ;;  %v5251_v50 = vpack.c.bf16 %v2295_v41, %v2294_v40  ;;  %v3721_v51 = vadd.f32 -1.0, %v5736_v42  ;;  %v2305_v21 = vld [vmem:[#allocation11 + $0x1d8] sm:$0xff]  ;;  %v2509_v42 = vld [vmem:[#allocation13 + $0x190] sm:$0xff] }
 0x5ee   :  { %5190 = vmatpush3.bf16.msra.mxu0 %v6491_v31  ;;  %4423 = vmatprep.mubr.f32.mxu0 %v1878_v56  ;;  %v2198_v31 = vld [vmem:[#allocation11 + $0x108] sm:$0xff]  ;;  %v2508_v41 = vld [vmem:[#allocation13 + $0x158] sm:$0xff] }
 0x5ef   :  { %4389 = vmatmul.mubr.f32.vlgmr.msra.gmra.mrb[16].mxu1 %v1882_v60  ;;  %5192 = vmatprep.subr.bf16.mxu0 %v5191_v49  ;;  %v5231_v16 = vpack.c.bf16 %v2199_v9, %v2198_v31  ;;  %v2400_v9 = vld [vmem:[#allocation13 + $0xe0] sm:$0xff] }
 0x5f0   :  { %5222 = vmatpush3.bf16.msra.mxu1 %v6493_v62  ;;  %4458 = vmatprep.mubr.f32.mxu1 %v1879_v12  ;;  %v2098_v62 = vld [vmem:[#allocation11 + $0x150] sm:$0xff]  ;;  %v5255_v12 = vpack.c.bf16 %v2297_v53, %v2296_v52  ;;  %v2407_v53 = vld [vmem:[#allocation13 + $0x268] sm:$0xff] }
 0x5f1   :  { %5224 = vmatprep.subr.bf16.mxu1 %v5223_v57  ;;  %v5203_v20 = vpack.c.bf16 %v2099_v15, %v2098_v62  ;;  %v2300_v62 = vld [vmem:[#allocation11 + $0x110] sm:$0xff]  ;;  %v2301_v15 = vld [vmem:[#allocation11 + $0x138] sm:$0xff] }
 0x5f2   :  { %5194 = vmatpush3.bf16.msra.mxu0 %v5191_v49  ;;  %v5263_v6 = vpack.c.bf16 %v2301_v15, %v2300_v62  ;;  %v2406_v52 = vld [vmem:[#allocation13 + $0x230] sm:$0xff]  ;;  %v1902_v15 = vld [vmem:[#allocation16 + $0x2b] ss:$0 sm:$0xff] }
 0x5f3   :  { %5196 = vmatprep.subr.bf16.mxu0 %v5195_v54 }
 0x5f4   :  { %5226 = vmatpush3.bf16.msra.mxu1 %v5223_v57  ;;  %v5283_v57 = vpack.c.bf16 %v2397_v48, %v2396_v46  ;;  %v2405_v46 = vld [vmem:[#allocation13 + $0x1f8] sm:$0xff] }
 0x5f5   :  { %5228 = vmatprep.subr.bf16.mxu1 %v5227_v7 }
 0x5f6   :  { %v6539_v17 = vpop.f32.mrb[14].mxu1  ;;  %5198 = vmatpush3.bf16.msra.mxu0 %v5195_v54  ;;  %v1883_v54 = vsel %vm1843_vm9, %v6530_v11, %v3721_v51  ;;  %v5259_v11 = vpack.c.bf16 %v2299_v5, %v2298_v3  ;;  %v2514_v3 = vld [vmem:[#allocation13 + $0x2a8] sm:$0xff]  ;;  %v2515_v5 = vld [vmem:[#allocation13 + $0x2e0] sm:$0xff] }
 0x5f7   :  { %v1827_v19 = vpop.f32.mrb[15].mxu1  ;;  %5200 = vmatprep.subr.bf16.mxu0 %v5199_v55  ;;  %v1833_v10 = vadd.f32 %v6539_v17, %v6533_v13  ;;  %v2308_v17 = vld [vmem:[#allocation11 + $0x250] sm:$0xff] }
 0x5f8   :  { %v6543_v1 = vadd.f32 %v1827_v19, %v6533_v13  ;;  %5230 = vmatpush3.bf16.msra.mxu1 %v5227_v7  ;;  %v5287_v7 = vpack.c.bf16 %v2399_v63, %v2398_v61  ;;  %v2408_v61 = vld [vmem:[#allocation13 + $0x2a0] sm:$0xff]  ;;  %v2409_v63 = vld [vmem:[#allocation13 + $0x2d8] sm:$0xff] }
 0x5f9   :  { %5232 = vmatprep.subr.bf16.mxu1 %v5231_v16  ;;  %v1864_v19 = vmul.f32 1.442695, %v1833_v10  ;;  %vm1845_vm12 = vcmp.gt.f32.partialorder %v1833_v10, 0.0 }
 0x5fa   :  { %v1854_v24 = vmul.f32 1.442695, %v6543_v1  ;;  %5202 = vmatpush3.bf16.msra.mxu0 %v5199_v55  ;;  %vm1840_vm10 = vcmp.gt.f32.partialorder %v6543_v1, 0.0  ;;  %v2401_v55 = vld [vmem:[#allocation13 + $0x118] sm:$0xff] }
 0x5fb   :  { %5204 = vmatprep.subr.bf16.mxu0 %v5203_v20 }
 0x5fc   :  { %5737 = vpow2.f32 %v1854_v24  ;;  %5234 = vmatpush3.bf16.msra.mxu1 %v5231_v16  ;;  %v5291_v16 = vpack.c.bf16 %v2401_v55, %v2400_v9  ;;  %v2309_v24 = vld [vmem:[#allocation11 + $0x278] sm:$0xff]  ;;  %v2517_v55 = vld [vmem:[#allocation13 + $0x350] sm:$0xff] }
 0x5fd   :  { %5739 = vpow2.f32 %v1862_v8  ;;  %5236 = vmatprep.subr.bf16.mxu1 %v5235_v23  ;;  %v2306_v8 = vld [vmem:[#allocation11 + $0x200] sm:$0xff]  ;;  %v5279_v25 = vpack.c.bf16 %v2309_v24, %v2308_v17  ;;  %v2516_v9 = vld [vmem:[#allocation13 + $0x318] sm:$0xff] }
 0x5fe   :  { %5206 = vmatpush3.bf16.msra.mxu0 %v5203_v20  ;;  %5741 = vpow2.f32 %v1864_v19  ;;  %v5343_v62 = vpack.c.bf16 %v2517_v55, %v2516_v9  ;;  %v2645_v55 = vld [vmem:[#allocation14 + $0x188] sm:$0xff] }
 0x5ff   :  { %5208 = vmatprep.subr.bf16.mxu0 %v5207_v27 }
 0x600   :  { %5238 = vmatpush3.bf16.msra.mxu1 %v5235_v23  ;;  %v2307_v23 = vld [vmem:[#allocation11 + $0x228] sm:$0xff] }
 0x601   :  { %5240 = vmatprep.subr.bf16.mxu1 %v5239_v29  ;;  %v5275_v13 = vpack.c.bf16 %v2307_v23, %v2306_v8 }
 0x602   :  { %5210 = vmatpush3.bf16.msra.mxu0 %v5207_v27  ;;  %v2503_v27 = vld [vmem:[#allocation13 + $0x40] sm:$0xff] }
 0x603   :  { %5212 = vmatprep.subr.bf16.mxu0 %v5211_v34  ;;  %v5315_v28 = vpack.c.bf16 %v2503_v27, %v2502_v26 }
 0x604   :  { %5242 = vmatpush3.bf16.msra.mxu1 %v5239_v29 }
 0x605   :  { %5244 = vmatprep.subr.bf16.mxu1 %v5243_v37 }
 0x606   :  { %v5738_v45 = vpop.eup %5737  ;;  %5214 = vmatpush3.bf16.msra.mxu0 %v5211_v34  ;;  %v5319_v34 = vpack.c.bf16 %v2505_v33, %v2504_v30 }
 0x607   :  { %v5740_v49 = vpop.eup %5739  ;;  %5216 = vmatprep.subr.bf16.mxu0 %v5215_v39  ;;  %v3718_v56 = vadd.f32 -1.0, %v5738_v45  ;;  %v2404_v45 = vld [vmem:[#allocation13 + $0x1c0] sm:$0xff] }
 0x608   :  { %5246 = vmatpush3.bf16.msra.mxu1 %v5243_v37  ;;  %v3722_v60 = vadd.f32 -1.0, %v5740_v49  ;;  %v5742_v59 = vpop.eup %5741  ;;  %v2507_v37 = vld [vmem:[#allocation13 + $0x120] sm:$0xff]  ;;  %v5299_v48 = vpack.c.bf16 %v2405_v46, %v2404_v45  ;;  %v2510_v49 = vld [vmem:[#allocation13 + $0x1c8] sm:$0xff]  ;;  %v2630_v46 = vld [vmem:[#allocation14 + $0x110] sm:$0xff] }
 0x609   :  { %5248 = vmatprep.subr.bf16.mxu1 %v5247_v43  ;;  %v1880_v58 = vsel %vm1840_vm10, %v6543_v1, %v3718_v56  ;;  %v2304_v1 = vld [vmem:[#allocation11 + $0x1b0] sm:$0xff]  ;;  %v3723_v29 = vadd.f32 -1.0, %v5742_v59  ;;  %v5323_v14 = vpack.c.bf16 %v2507_v37, %v2506_v36  ;;  %v2512_v56 = vld [vmem:[#allocation13 + $0x238] sm:$0xff]  ;;  %v2628_v45 = vld [vmem:[#allocation14 + $0x100] sm:$0xff] }
 0x60a   :  { %5218 = vmatpush3.bf16.msra.mxu0 %v5215_v39  ;;  %v1884_v31 = vsel %vm1844_vm11, %v6537_v0, %v3722_v60  ;;  %v2303_v0 = vld [vmem:[#allocation11 + $0x188] sm:$0xff]  ;;  %v5271_v22 = vpack.c.bf16 %v2305_v21, %v2304_v1  ;;  %v2513_v60 = vld [vmem:[#allocation13 + $0x270] sm:$0xff] }
 0x60b   :  { %5252 = vmatprep.subr.bf16.mxu0 %v5251_v50  ;;  %v5267_v20 = vpack.c.bf16 %v2303_v0, %v2302_v18  ;;  %v1885_v35 = vsel %vm1845_vm12, %v1833_v10, %v3723_v29  ;;  %v2403_v39 = vld [vmem:[#allocation13 + $0x188] sm:$0xff] }
 0x60c   :  { %5250 = vmatpush3.bf16.msra.mxu1 %v5247_v43  ;;  %v5295_v40 = vpack.c.bf16 %v2403_v39, %v2402_v38  ;;  %v5327_v43 = vpack.c.bf16 %v2509_v42, %v2508_v41  ;;  %v2004_v10 = vld [vmem:[#allocation16 + $0x2c] ss:$0 sm:$0xff]  ;;  %v2631_v42 = vld [vmem:[#allocation14 + $0x118] sm:$0xff] }
 0x60d   :  { %4424 = vmatmul.mubr.f32.vlgmr.msra.gmra.mrb[18].mxu0 %v1883_v54  ;;  %5284 = vmatprep.subr.bf16.mxu1 %v5283_v57  ;;  %v5307_v54 = vpack.c.bf16 %v2409_v63, %v2408_v61  ;;  %v2629_v41 = vld [vmem:[#allocation14 + $0x108] sm:$0xff]  ;;  %v2636_v63 = vld [vmem:[#allocation14 + $0x140] sm:$0xff] }
 0x60e   :  { %5254 = vmatpush3.bf16.msra.mxu0 %v5251_v50  ;;  %4493 = vmatprep.mubr.f32.mxu0 %v1880_v58  ;;  %v2511_v50 = vld [vmem:[#allocation13 + $0x200] sm:$0xff]  ;;  %v2410_v58 = vld [vmem:[#allocation13 + $0x310] sm:$0xff] }
 0x60f   :  { %4459 = vmatmul.mubr.f32.vlgmr.msra.gmra.mrb[18].mxu1 %v1884_v31  ;;  %5256 = vmatprep.subr.bf16.mxu0 %v5255_v12  ;;  %v5331_v51 = vpack.c.bf16 %v2511_v50, %v2510_v49  ;;  %v2411_v31 = vld [vmem:[#allocation13 + $0x348] sm:$0xff]  ;;  %v2635_v50 = vld [vmem:[#allocation14 + $0x138] sm:$0xff] }
 0x610   :  { %5286 = vmatpush3.bf16.msra.mxu1 %v5283_v57  ;;  %v5303_v57 = vpack.c.bf16 %v2407_v53, %v2406_v52  ;;  %v2633_v49 = vld [vmem:[#allocation14 + $0x128] sm:$0xff]  ;;  %v2632_v52 = vld [vmem:[#allocation14 + $0x120] sm:$0xff]  ;;  %v2634_v53 = vld [vmem:[#allocation14 + $0x130] sm:$0xff] }
 0x611   :  { %5288 = vmatprep.subr.bf16.mxu1 %v5287_v7 }
 0x612   :  { %5258 = vmatpush3.bf16.msra.mxu0 %v5255_v12  ;;  %v5335_v12 = vpack.c.bf16 %v2513_v60, %v2512_v56  ;;  %v5353_v56 = vpack.c.bf16 %v2634_v53, %v2632_v52  ;;  %v2639_v60 = vld [vmem:[#allocation14 + $0x158] sm:$0xff]  ;;  %v2860_v52 = vld [vmem:[#allocation14 + $0x248] sm:$0xff] }
 0x613   :  { %5260 = vmatprep.subr.bf16.mxu0 %v5259_v11  ;;  %v2862_v53 = vld [vmem:[#allocation14 + $0x258] sm:$0xff] }
 0x614   :  { %5290 = vmatpush3.bf16.msra.mxu1 %v5287_v7  ;;  %v5339_v7 = vpack.c.bf16 %v2515_v5, %v2514_v3  ;;  %v2641_v3 = vld [vmem:[#allocation14 + $0x168] sm:$0xff]  ;;  %v2643_v5 = vld [vmem:[#allocation14 + $0x178] sm:$0xff] }
 0x615   :  { %5292 = vmatprep.subr.bf16.mxu1 %v5291_v16 }
 0x616   :  { %5262 = vmatpush3.bf16.msra.mxu0 %v5259_v11  ;;  %v5311_v11 = vpack.c.bf16 %v2411_v31, %v2410_v58  ;;  %v5359_v58 = vpack.c.bf16 %v2643_v5, %v2641_v3  ;;  %v2642_v31 = vld [vmem:[#allocation14 + $0x170] sm:$0xff]  ;;  %v2863_v5 = vld [vmem:[#allocation14 + $0x260] sm:$0xff] }
 0x617   :  { %5264 = vmatprep.subr.bf16.mxu0 %v5263_v6 }
 0x618   :  { %5294 = vmatpush3.bf16.msra.mxu1 %v5291_v16 }
 0x619   :  { %5296 = vmatprep.subr.bf16.mxu1 %v5295_v40 }
 0x61a   :  { %5266 = vmatpush3.bf16.msra.mxu0 %v5263_v6 }
 0x61b   :  { %5268 = vmatprep.subr.bf16.mxu0 %v5267_v20 }
 0x61c   :  { %5298 = vmatpush3.bf16.msra.mxu1 %v5295_v40 }
 0x61d   :  { %5300 = vmatprep.subr.bf16.mxu1 %v5299_v48 }
 0x61e   :  { %5270 = vmatpush3.bf16.msra.mxu0 %v5267_v20 }
 0x61f   :  { %5272 = vmatprep.subr.bf16.mxu0 %v5271_v22 }
 0x620   :  { %5302 = vmatpush3.bf16.msra.mxu1 %v5299_v48  ;;  %v5349_v48 = vpack.c.bf16 %v2630_v46, %v2628_v45  ;;  %v2856_v45 = vld [vmem:[#allocation14 + $0x228] sm:$0xff]  ;;  %v2858_v46 = vld [vmem:[#allocation14 + $0x238] sm:$0xff] }
 0x621   :  { %5304 = vmatprep.subr.bf16.mxu1 %v5303_v57 }
 0x622   :  { %5274 = vmatpush3.bf16.msra.mxu0 %v5271_v22 }
 0x623   :  { %5276 = vmatprep.subr.bf16.mxu0 %v5275_v13 }
 0x624   :  { %5306 = vmatpush3.bf16.msra.mxu1 %v5303_v57  ;;  %v2637_v57 = vld [vmem:[#allocation14 + $0x148] sm:$0xff] }
 0x625   :  { %5308 = vmatprep.subr.bf16.mxu1 %v5307_v54  ;;  %v5355_v61 = vpack.c.bf16 %v2639_v60, %v2637_v57  ;;  %v5419_v57 = vpack.c.bf16 %v2862_v53, %v2860_v52  ;;  %v2859_v60 = vld [vmem:[#allocation14 + $0x240] sm:$0xff]  ;;  %v2893_v52 = vld [vmem:[#allocation14 + $0x350] sm:$0xff] }
 0x626   :  { %5278 = vmatpush3.bf16.msra.mxu0 %v5275_v13 }
 0x627   :  { %5280 = vmatprep.subr.bf16.mxu0 %v5279_v25 }
 0x628   :  { %5310 = vmatpush3.bf16.msra.mxu1 %v5307_v54 }
 0x629   :  { %5312 = vmatprep.subr.bf16.mxu1 %v5311_v11 }
 0x62a   :  { %5282 = vmatpush3.bf16.msra.mxu0 %v5279_v25 }
 0x62b   :  { %5316 = vmatprep.subr.bf16.mxu0 %v5315_v28 }
 0x62c   :  { %5314 = vmatpush3.bf16.msra.mxu1 %v5311_v11  ;;  %v2647_v11 = vld [vmem:[#allocation14 + $0x198] sm:$0xff] }
 0x62d   :  { %4494 = vmatmul.mubr.f32.vlgmr.msra.gmra.mrb[20].mxu0 %v1885_v35 }
 0x62e   :  { %5318 = vmatpush3.bf16.msra.mxu0 %v5315_v28 }
 0x62f   :  { %5320 = vmatprep.subr.bf16.mxu0 %v5319_v34 }
 0x632   :  { %5322 = vmatpush3.bf16.msra.mxu0 %v5319_v34 }
 0x633   :  { %5324 = vmatprep.subr.bf16.mxu0 %v5323_v14 }
 0x636   :  { %5326 = vmatpush3.bf16.msra.mxu0 %v5323_v14 }
 0x637   :  { %5328 = vmatprep.subr.bf16.mxu0 %v5327_v43 }
 0x63a   :  { %5330 = vmatpush3.bf16.msra.mxu0 %v5327_v43  ;;  %v5347_v43 = vpack.c.bf16 %v2631_v42, %v2629_v41  ;;  %v2851_v41 = vld [vmem:[#allocation14 + $0x200] sm:$0xff] }
 0x63b   :  { %5332 = vmatprep.subr.bf16.mxu0 %v5331_v51 }
 0x63c   :  { %5348 = vmatprep.subr.bf16.mxu1 %v5347_v43  ;;  %v2853_v43 = vld [vmem:[#allocation14 + $0x210] sm:$0xff] }
 0x63e   :  { %5334 = vmatpush3.bf16.msra.mxu0 %v5331_v51  ;;  %v5351_v51 = vpack.c.bf16 %v2635_v50, %v2633_v49  ;;  %v5415_v49 = vpack.c.bf16 %v2858_v46, %v2856_v45  ;;  %v2855_v50 = vld [vmem:[#allocation14 + $0x220] sm:$0xff]  ;;  %v2889_v45 = vld [vmem:[#allocation14 + $0x330] sm:$0xff]  ;;  %v2892_v46 = vld [vmem:[#allocation14 + $0x348] sm:$0xff] }
 0x63f   :  { %5336 = vmatprep.subr.bf16.mxu0 %v5335_v12 }
 0x642   :  { %5338 = vmatpush3.bf16.msra.mxu0 %v5335_v12  ;;  %v2638_v12 = vld [vmem:[#allocation14 + $0x150] sm:$0xff] }
 0x643   :  { %5340 = vmatprep.subr.bf16.mxu0 %v5339_v7  ;;  %v5357_v54 = vpack.c.bf16 %v2638_v12, %v2636_v63  ;;  %v2864_v63 = vld [vmem:[#allocation14 + $0x268] sm:$0xff]  ;;  %v2866_v12 = vld [vmem:[#allocation14 + $0x278] sm:$0xff] }
 0x644   :  { %v5423_v3 = vpack.c.bf16 %v2866_v12, %v2864_v63 }
 0x646   :  { %5342 = vmatpush3.bf16.msra.mxu0 %v5339_v7  ;;  %v2640_v7 = vld [vmem:[#allocation14 + $0x160] sm:$0xff] }
 0x647   :  { %5344 = vmatprep.subr.bf16.mxu0 %v5343_v62  ;;  %v5361_v9 = vpack.c.bf16 %v2642_v31, %v2640_v7  ;;  %v2868_v7 = vld [vmem:[#allocation14 + $0x288] sm:$0xff]  ;;  %v2870_v31 = vld [vmem:[#allocation14 + $0x298] sm:$0xff] }
 0x64a   :  { %5346 = vmatpush3.bf16.msra.mxu0 %v5343_v62  ;;  %v5363_v62 = vpack.c.bf16 %v2647_v11, %v2645_v55  ;;  %v5427_v55 = vpack.c.bf16 %v2870_v31, %v2868_v7  ;;  %v2867_v11 = vld [vmem:[#allocation14 + $0x280] sm:$0xff] }
 0x6c0   :  { %v4355_v16 = vpop.f32.mrb[16].mxu0 }
 0x6c1   :  { %v1975_v6 = vadd.f32 %v4355_v16, %v1902_v15  ;;  %v1969_v18 = vpop.f32.mrb[17].mxu0  ;;  %v2646_v16 = vld [vmem:[#allocation14 + $0x190] sm:$0xff] }
 0x6c2   :  { %v1970_v0 = vadd.f32 %v1969_v18, %v1902_v15  ;;  %v4390_v19 = vpop.f32.mrb[16].mxu1  ;;  %v2644_v15 = vld [vmem:[#allocation14 + $0x180] sm:$0xff]  ;;  %v2651_v18 = vld [vmem:[#allocation14 + $0x1b8] sm:$0xff] }
 0x6c3   :  { %v1982_v20 = vmul.f32 1.442695, %v1975_v6  ;;  %v2077_v1 = vadd.f32 %v4390_v19, %v2004_v10  ;;  %v2071_v21 = vpop.f32.mrb[17].mxu1  ;;  %vm1979_vm14 = vcmp.gt.f32.partialorder %v1975_v6, 0.0  ;;  %v2648_v19 = vld [vmem:[#allocation14 + $0x1a0] sm:$0xff] }
 0x6c4   :  { %v1980_v22 = vmul.f32 1.442695, %v1970_v0  ;;  %v2072_v8 = vadd.f32 %v2071_v21, %v2004_v10  ;;  %vm1978_vm13 = vcmp.gt.f32.partialorder %v1970_v0, 0.0  ;;  %v5365_v10 = vpack.c.bf16 %v2646_v16, %v2644_v15  ;;  %v2653_v21 = vld [vmem:[#allocation14 + $0x1c8] sm:$0xff]  ;;  %v2874_v16 = vld [vmem:[#allocation14 + $0x2b8] sm:$0xff] }
 0x6c5   :  { %5743 = vpow2.f32 %v1982_v20  ;;  %v2084_v23 = vmul.f32 1.442695, %v2077_v1  ;;  %vm2081_vm1 = vcmp.gt.f32.partialorder %v2077_v1, 0.0  ;;  %v2650_v20 = vld [vmem:[#allocation14 + $0x1b0] sm:$0xff]  ;;  %v2872_v15 = vld [vmem:[#allocation14 + $0x2a8] sm:$0xff] }
 0x6c6   :  { %5745 = vpow2.f32 %v1980_v22  ;;  %v2082_v13 = vmul.f32 1.442695, %v2072_v8  ;;  %vm2080_vm15 = vcmp.gt.f32.partialorder %v2072_v8, 0.0  ;;  %v2655_v22 = vld [vmem:[#allocation14 + $0x1d8] sm:$0xff] }
 0x6c7   :  { %5747 = vpow2.f32 %v2084_v23  ;;  %v2652_v23 = vld [vmem:[#allocation14 + $0x1c0] sm:$0xff] }
 0x6c8   :  { %5749 = vpow2.f32 %v2082_v13  ;;  %v2654_v13 = vld [vmem:[#allocation14 + $0x1d0] sm:$0xff] }
 0x6cf   :  { %v5744_v17 = vpop.eup %5743 }
 0x6d0   :  { %v5746_v24 = vpop.eup %5745  ;;  %v3725_v25 = vadd.f32 -1.0, %v5744_v17  ;;  %v5373_v17 = vpack.c.bf16 %v2654_v13, %v2652_v23  ;;  %v2880_v23 = vld [vmem:[#allocation14 + $0x2e8] sm:$0xff]  ;;  %v2882_v13 = vld [vmem:[#allocation14 + $0x2f8] sm:$0xff] }
 0x6d1   :  { %v5748_v26 = vpop.eup %5747  ;;  %v3724_v27 = vadd.f32 -1.0, %v5746_v24  ;;  %v2657_v24 = vld [vmem:[#allocation14 + $0x1e8] sm:$0xff] }
 0x6d2   :  { %v5750_v59 = vpop.eup %5749  ;;  %v3727_v28 = vadd.f32 -1.0, %v5748_v26  ;;  %v1987_v33 = vsel %vm1979_vm14, %v1975_v6, %v3725_v25  ;;  %v2649_v6 = vld [vmem:[#allocation14 + $0x1a8] sm:$0xff]  ;;  %v2659_v25 = vld [vmem:[#allocation14 + $0x1f8] sm:$0xff] }
 0x6d3   :  { %v1986_v29 = vsel %vm1978_vm13, %v1970_v0, %v3724_v27  ;;  %v3726_v30 = vadd.f32 -1.0, %v5750_v59  ;;  %v5367_v0 = vpack.c.bf16 %v2651_v18, %v2649_v6  ;;  %v5375_v26 = vpack.c.bf16 %v2659_v25, %v2657_v24  ;;  %v2656_v27 = vld [vmem:[#allocation14 + $0x1e0] sm:$0xff]  ;;  %v2658_v59 = vld [vmem:[#allocation14 + $0x1f0] sm:$0xff] }
 0x6d4   :  { %4528 = vmatprep.mubr.f32.mxu1 %v1986_v29  ;;  %v2089_v35 = vsel %vm2081_vm1, %v2077_v1, %v3727_v28  ;;  %v5369_v1 = vpack.c.bf16 %v2650_v20, %v2648_v19  ;;  %v5377_v28 = vpack.c.bf16 %v2658_v59, %v2656_v27  ;;  %v2597_v29 = vld [vmem:[#allocation14 + $0x8] sm:$0xff]  ;;  %v5431_v6 = vpack.c.bf16 %v2874_v16, %v2872_v15  ;;  %v2871_v18 = vld [vmem:[#allocation14 + $0x2a0] sm:$0xff]  ;;  %v2878_v20 = vld [vmem:[#allocation14 + $0x2d8] sm:$0xff] }
 0x6d5   :  { %4529 = vmatmul.mubr.f32.vlgmr.msra.gmra.mrb[20].mxu1 %v1987_v33  ;;  %v2088_v34 = vsel %vm2080_vm15, %v2072_v8, %v3726_v30  ;;  %v5371_v8 = vpack.c.bf16 %v2655_v22, %v2653_v21  ;;  %v2599_v30 = vld [vmem:[#allocation14 + $0x18] sm:$0xff]  ;;  %v2876_v19 = vld [vmem:[#allocation14 + $0x2c8] sm:$0xff]  ;;  %v2875_v22 = vld [vmem:[#allocation14 + $0x2c0] sm:$0xff]  ;;  %v5439_v24 = vpack.c.bf16 %v2882_v13, %v2880_v23 }
 0x6d6   :  { %4563 = vmatprep.mubr.f32.mxu0 %v2088_v34  ;;  %2724 = vmatprep.mubr.f32.mxu1 %v6157_v32  ;;  %v5379_v33 = vpack.c.bf16 %v2599_v30, %v2597_v29  ;;  %v2852_v34 = vld [vmem:[#allocation14 + $0x208] sm:$0xff]  ;;  %v5435_v21 = vpack.c.bf16 %v2878_v20, %v2876_v19  ;;  %v2879_v25 = vld [vmem:[#allocation14 + $0x2e0] sm:$0xff]  ;;  %v2886_v59 = vld [vmem:[#allocation14 + $0x318] sm:$0xff] }
 0x6d7   :  { %4564 = vmatmul.mubr.f32.vlgmr.msra.gmra.mrb[22].mxu0 %v2089_v35  ;;  %5350 = vmatpush1.bf16.msra.mxu1 %v5349_v48  ;;  %v2854_v35 = vld [vmem:[#allocation14 + $0x218] sm:$0xff]  ;;  %v5413_v48 = vpack.c.bf16 %v2853_v43, %v2851_v41  ;;  %v2884_v27 = vld [vmem:[#allocation14 + $0x308] sm:$0xff]  ;;  %v2883_v30 = vld [vmem:[#allocation14 + $0x300] sm:$0xff] }
 0x6d8   :  { %5352 = vmatprep.subr.bf16.mxu1 %v5351_v51  ;;  %v5411_v42 = vpack.c.bf16 %v2854_v35, %v2852_v34  ;;  %v2857_v51 = vld [vmem:[#allocation14 + $0x230] sm:$0xff]  ;;  %v5443_v29 = vpack.c.bf16 %v2886_v59, %v2884_v27  ;;  %v2888_v34 = vld [vmem:[#allocation14 + $0x328] sm:$0xff]  ;;  %v2890_v35 = vld [vmem:[#allocation14 + $0x338] sm:$0xff] }
 0x6d9   :  { %v2887_v43 = vld [vmem:[#allocation14 + $0x320] sm:$0xff]  ;;  %v2598_v15 = vld [vmem:[#allocation14 + $0x10] sm:$0xff]  ;;  %v2609_v59 = vld [vmem:[#allocation14 + $0x68] sm:$0xff] }
 0x6da   :  { %5412 = vmatprep.subr.bf16.mxu0 %v5411_v42  ;;  %v5447_v42 = vpack.c.bf16 %v2890_v35, %v2888_v34  ;;  %v2600_v23 = vld [vmem:[#allocation14 + $0x20] sm:$0xff]  ;;  %v2602_v13 = vld [vmem:[#allocation14 + $0x30] sm:$0xff]  ;;  %v2613_v34 = vld [vmem:[#allocation14 + $0x88] sm:$0xff] }
 0x6db   :  { %5354 = vmatpush1.bf16.msra.mxu1 %v5353_v56  ;;  %5414 = vmatpush1.bf16.msra.mxu0 %v5413_v48  ;;  %v5417_v56 = vpack.c.bf16 %v2857_v51, %v2855_v50  ;;  %v2894_v48 = vld [vmem:[#allocation14 + $0x358] sm:$0xff]  ;;  %v2891_v51 = vld [vmem:[#allocation14 + $0x340] sm:$0xff]  ;;  %v2606_v27 = vld [vmem:[#allocation14 + $0x50] sm:$0xff] }
 0x6dc   :  { %5356 = vmatprep.subr.bf16.mxu1 %v5355_v61  ;;  %5416 = vmatprep.subr.bf16.mxu0 %v5415_v49  ;;  %v2861_v61 = vld [vmem:[#allocation14 + $0x250] sm:$0xff]  ;;  %v5449_v49 = vpack.c.bf16 %v2889_v45, %v2887_v43  ;;  %v5451_v50 = vpack.c.bf16 %v2894_v48, %v2892_v46  ;;  %v5453_v53 = vpack.c.bf16 %v2893_v52, %v2891_v51  ;;  %v2615_v35 = vld [vmem:[#allocation14 + $0x98] sm:$0xff]  ;;  %v2612_v43 = vld [vmem:[#allocation14 + $0x80] sm:$0xff] }
 0x6dd   :  { %v2614_v45 = vld [vmem:[#allocation14 + $0x90] sm:$0xff]  ;;  %v2617_v46 = vld [vmem:[#allocation14 + $0xa8] sm:$0xff]  ;;  %v2619_v48 = vld [vmem:[#allocation14 + $0xb8] sm:$0xff] }
 0x6de   :  { %v2616_v51 = vld [vmem:[#allocation14 + $0xa0] sm:$0xff]  ;;  %v2618_v52 = vld [vmem:[#allocation14 + $0xb0] sm:$0xff] }
 0x6df   :  { %5358 = vmatpush1.bf16.msra.mxu1 %v5357_v54  ;;  %5418 = vmatpush1.bf16.msra.mxu0 %v5417_v56  ;;  %v5421_v54 = vpack.c.bf16 %v2861_v61, %v2859_v60  ;;  %v2412_v56 = vld [vmem:[#allocation16 + $0x50] ss:$0 sm:$0xff] }
 0x6e0   :  { %v6556_v36 = vpop.f32.mrb[18].mxu0  ;;  %5360 = vmatprep.subr.bf16.mxu1 %v5359_v58  ;;  %5420 = vmatprep.subr.bf16.mxu0 %v5419_v57  ;;  %v2865_v58 = vld [vmem:[#allocation14 + $0x270] sm:$0xff] }
 0x6e1   :  { %v6558_v37 = vpop.f32.mrb[19].mxu0 }
 0x6e2   :  { %v6560_v14 = vpop.f32.mrb[18].mxu1 }
 0x6e3   :  { %v6562_v38 = vpop.f32.mrb[19].mxu1  ;;  %5362 = vmatpush1.bf16.msra.mxu1 %v5361_v9  ;;  %5422 = vmatpush1.bf16.msra.mxu0 %v5421_v54  ;;  %v5425_v9 = vpack.c.bf16 %v2865_v58, %v2863_v5 }
 0x6e4   :  { %5364 = vmatprep.subr.bf16.mxu1 %v5363_v62  ;;  %5424 = vmatprep.subr.bf16.mxu0 %v5423_v3  ;;  %v2869_v62 = vld [vmem:[#allocation14 + $0x290] sm:$0xff] }
 0x6e7   :  { %5366 = vmatpush1.bf16.msra.mxu1 %v5365_v10  ;;  %5426 = vmatpush1.bf16.msra.mxu0 %v5425_v9  ;;  %v5429_v10 = vpack.c.bf16 %v2869_v62, %v2867_v11  ;;  %v2596_v62 = vld [vmem:[#allocation14] sm:$0xff] }
 0x6e8   :  { %5368 = vmatprep.subr.bf16.mxu1 %v5367_v0  ;;  %5428 = vmatprep.subr.bf16.mxu0 %v5427_v55  ;;  %v2873_v0 = vld [vmem:[#allocation14 + $0x2b0] sm:$0xff] }
 0x6e9   :  { %v2518_v55 = vld [vmem:[#allocation16 + $0x51] ss:$0 sm:$0xff] }
 0x6eb   :  { %5370 = vmatpush1.bf16.msra.mxu1 %v5369_v1  ;;  %5430 = vmatpush1.bf16.msra.mxu0 %v5429_v10  ;;  %v5433_v1 = vpack.c.bf16 %v2873_v0, %v2871_v18  ;;  %v2601_v18 = vld [vmem:[#allocation14 + $0x28] sm:$0xff]  ;;  %v2603_v0 = vld [vmem:[#allocation14 + $0x38] sm:$0xff] }
 0x6ec   :  { %5372 = vmatprep.subr.bf16.mxu1 %v5371_v8  ;;  %5432 = vmatprep.subr.bf16.mxu0 %v5431_v6  ;;  %v2877_v8 = vld [vmem:[#allocation14 + $0x2d0] sm:$0xff] }
 0x6ef   :  { %5374 = vmatpush1.bf16.msra.mxu1 %v5373_v17  ;;  %5434 = vmatpush1.bf16.msra.mxu0 %v5433_v1  ;;  %v5437_v17 = vpack.c.bf16 %v2877_v8, %v2875_v22  ;;  %v5383_v8 = vpack.c.bf16 %v2603_v0, %v2601_v18  ;;  %v2900_v18 = vld [vmem:[#allocation14 + $0x388] sm:$0xff]  ;;  %v2902_v0 = vld [vmem:[#allocation14 + $0x398] sm:$0xff] }
 0x6f0   :  { %5376 = vmatprep.subr.bf16.mxu1 %v5375_v26  ;;  %5436 = vmatprep.subr.bf16.mxu0 %v5435_v21  ;;  %v2881_v26 = vld [vmem:[#allocation14 + $0x2f0] sm:$0xff]  ;;  %v5381_v21 = vpack.c.bf16 %v2598_v15, %v2596_v62  ;;  %v2898_v62 = vld [vmem:[#allocation14 + $0x378] sm:$0xff] }
 0x6f3   :  { %5378 = vmatpush1.bf16.msra.mxu1 %v5377_v28  ;;  %5438 = vmatpush1.bf16.msra.mxu0 %v5437_v17  ;;  %v5441_v28 = vpack.c.bf16 %v2881_v26, %v2879_v25  ;;  %v2605_v17 = vld [vmem:[#allocation14 + $0x48] sm:$0xff]  ;;  %v5385_v25 = vpack.c.bf16 %v2602_v13, %v2600_v23  ;;  %v2604_v26 = vld [vmem:[#allocation14 + $0x40] sm:$0xff] }
 0x6f4   :  { %5380 = vmatprep.subr.bf16.mxu1 %v5379_v33  ;;  %5440 = vmatprep.subr.bf16.mxu0 %v5439_v24  ;;  %v2885_v33 = vld [vmem:[#allocation14 + $0x310] sm:$0xff]  ;;  %v2607_v24 = vld [vmem:[#allocation14 + $0x58] sm:$0xff]  ;;  %v2903_v13 = vld [vmem:[#allocation14 + $0x3a0] sm:$0xff] }
 0x6f5   :  { %v5445_v41 = vpack.c.bf16 %v2885_v33, %v2883_v30  ;;  %v2608_v30 = vld [vmem:[#allocation14 + $0x60] sm:$0xff]  ;;  %v2610_v33 = vld [vmem:[#allocation14 + $0x70] sm:$0xff] }
 0x6f7   :  { %5442 = vmatpush1.bf16.msra.mxu0 %v5441_v28  ;;  %v5389_v28 = vpack.c.bf16 %v2606_v27, %v2604_v26  ;;  %v2907_v26 = vld [vmem:[#allocation14 + $0x3c0] sm:$0xff] }
 0x6f8   :  { %5444 = vmatprep.subr.bf16.mxu0 %v5443_v29 }
 0x6fb   :  { %5446 = vmatpush1.bf16.msra.mxu0 %v5445_v41  ;;  %v5393_v41 = vpack.c.bf16 %v2610_v33, %v2608_v30  ;;  %v2911_v33 = vld [vmem:[#allocation14 + $0x3e0] sm:$0xff] }
 0x6fc   :  { %5448 = vmatprep.subr.bf16.mxu0 %v5447_v42  ;;  %v5395_v42 = vpack.c.bf16 %v2615_v35, %v2613_v34  ;;  %v2913_v34 = vld [vmem:[#allocation14 + $0x3f0] sm:$0xff] }
 0x6fd   :  { %v5473_v35 = vpack.c.bf16 %v2913_v34, %v2911_v33  ;;  %v3050_v33 = vld [vmem:[#allocation14 + $0x590] sm:$0xff] }
 0x6ff   :  { %5450 = vmatpush1.bf16.msra.mxu0 %v5449_v49  ;;  %v5397_v49 = vpack.c.bf16 %v2614_v45, %v2612_v43  ;;  %v3025_v43 = vld [vmem:[#allocation14 + $0x400] sm:$0xff] }
 0x700   :  { %v6564_v39 = vpop.f32.mrb[20].mxu0  ;;  %5452 = vmatprep.subr.bf16.mxu0 %v5451_v50  ;;  %v5399_v50 = vpack.c.bf16 %v2619_v48, %v2617_v46  ;;  %v3026_v46 = vld [vmem:[#allocation14 + $0x410] sm:$0xff]  ;;  %v3043_v48 = vld [vmem:[#allocation14 + $0x520] sm:$0xff] }
 0x701   :  { %v6566_v40 = vpop.f32.mrb[21].mxu0 }
 0x703   :  { %5454 = vmatpush1.bf16.msra.mxu0 %v5453_v53  ;;  %v2621_v53 = vld [vmem:[#allocation14 + $0xc8] sm:$0xff] }
 0x7a8   :  { %v4530_v57 = vpop.f32.mrb[20].mxu1 }
 0x7a9   :  { %v2485_v60 = vadd.f32 %v4530_v57, %v2412_v56  ;;  %v2479_v61 = vpop.f32.mrb[21].mxu1  ;;  %v5401_v57 = vpack.c.bf16 %v2618_v52, %v2616_v51  ;;  %v3027_v52 = vld [vmem:[#allocation14 + $0x420] sm:$0xff] }
 0x7aa   :  { %v2480_v63 = vadd.f32 %v2479_v61, %v2412_v56  ;;  %v4565_v12 = vpop.f32.mrb[22].mxu0  ;;  %v2623_v56 = vld [vmem:[#allocation14 + $0xd8] sm:$0xff]  ;;  %v2620_v61 = vld [vmem:[#allocation14 + $0xc0] sm:$0xff] }
 0x7ab   :  { %v3735_v54 = vmul.f32 -1.442695, %v2485_v60  ;;  %v2585_v3 = vpop.f32.mrb[23].mxu0  ;;  %v2591_v6 = vadd.f32 %v4565_v12, %v2518_v55  ;;  %v5403_v60 = vpack.c.bf16 %v2623_v56, %v2621_v53  ;;  %v2625_v12 = vld [vmem:[#allocation14 + $0xe8] sm:$0xff]  ;;  %v3028_v53 = vld [vmem:[#allocation14 + $0x430] sm:$0xff]  ;;  %v3045_v56 = vld [vmem:[#allocation14 + $0x540] sm:$0xff] }
 0x7ac   :  { %v3734_v5 = vmul.f32 -1.442695, %v2480_v63  ;;  %v2586_v20 = vadd.f32 %v2585_v3, %v2518_v55  ;;  %v2622_v63 = vld [vmem:[#allocation14 + $0xd0] sm:$0xff]  ;;  %v5808_v55 = vld [vmem:[%s6724_s0 + $0x8] sm:$0xff] }
 0x7ad   :  { %5751 = vpow2.f32 %v3735_v54  ;;  %v2627_v54 = vld [vmem:[#allocation14 + $0xf8] sm:$0xff]  ;;  %v5405_v3 = vpack.c.bf16 %v2622_v63, %v2620_v61  ;;  %v3029_v63 = vld [vmem:[#allocation14 + $0x440] sm:$0xff] }
 0x7ae   :  { %5753 = vpow2.f32 %v3734_v5  ;;  %v5407_v5 = vpack.c.bf16 %v2627_v54, %v2625_v12  ;;  %v3030_v12 = vld [vmem:[#allocation14 + $0x450] sm:$0xff] }
 0x7af   :  { %v5485_v54 = vpack.c.bf16 %v3030_v12, %v3029_v63  ;;  %v3056_v63 = vld [vmem:[#allocation14 + $0x5f0] sm:$0xff] }
 0x7b7   :  { %v5752_v58 = vpop.eup %5751 }
 0x7b8   :  { %v5754_v7 = vpop.eup %5753  ;;  %v2495_v31 = vadd.f32 1.0, %v5752_v58  ;;  %v2624_v58 = vld [vmem:[#allocation14 + $0xe0] sm:$0xff] }
 0x7b9   :  { %v2494_v9 = vadd.f32 1.0, %v5754_v7  ;;  %v2626_v7 = vld [vmem:[#allocation14 + $0xf0] sm:$0xff] }
 0x7ba   :  { %5755 = vrcp.f32 %v2495_v31  ;;  %v5409_v31 = vpack.c.bf16 %v2626_v7, %v2624_v58 }
 0x7bb   :  { %5757 = vrcp.f32 %v2494_v9  ;;  %v5807_v9 = vld [vmem:[%s6724_s0] sm:$0xff]  ;;  %s6158_s0 = smov [#allocation21]  }
 0x7bc   :  { %s3660_s18 = sshll.u32 %s6158_s0, 4  ;;  %s3661_s18 = int_to_ptr.vmem [resolvable:$true] %s3660_s18 }
 0x7bd   :  { %s6011_s22 = scalar_lea.vmem %s3661_s18, 256  ;;  %p6016_p3 = scmp.lt.s32.totalorder %s3661_s18, %s3661_s18 }
 0x7be   :  { %p6012_p2 = scmp.ne.s32.totalorder %s3661_s18, %s6011_s22  ;;  %p6017_p4 = scmp.lt.s32.totalorder %s6011_s22, %s6011_s22 }
 0x7c0   :  { %p6018_p5 = por %p6017_p4, %p6016_p3 }
 0x7c2   :  { %p6019_p6 = pnand %p6018_p5, %p6012_p2 }
 0x7c4   :  { %v5756_v11 = vpop.eup %5755 }
 0x7c5   :  { %v5758_v16 = vpop.eup %5757  ;;  %v2501_v10 = vmul.f32 %v5756_v11, %v6430_v47  ;;  %v5387_v47 = vpack.c.bf16 %v2607_v24, %v2605_v17  ;;  %v2896_v11 = vld [vmem:[#allocation14 + $0x368] sm:$0xff]  ;;  %v2905_v17 = vld [vmem:[#allocation14 + $0x3b0] sm:$0xff] }
 0x7c6   :  { %v2500_v19 = vmul.f32 %v5758_v16, %v6428_v44  ;;  %v2611_v44 = vld [vmem:[#allocation14 + $0x78] sm:$0xff]  ;;  %v5455_v15 = vpack.c.bf16 %v2898_v62, %v2896_v11  ;;  %v2895_v16 = vld [vmem:[#allocation14 + $0x360] sm:$0xff]  ;;  %v5465_v24 = vpack.c.bf16 %v2905_v17, %v2903_v13 }
 0x7c7   :  { %v2595_v1 = vadd.f32 %v2591_v6, %v2501_v10  ;;  %v5391_v29 = vpack.c.bf16 %v2611_v44, %v2609_v59  ;;  %v2897_v10 = vld [vmem:[#allocation14 + $0x370] sm:$0xff]  ;;  %v2912_v44 = vld [vmem:[#allocation14 + $0x3e8] sm:$0xff] }
 0x7c8   :  { %v2594_v22 = vadd.f32 %v2586_v20, %v2500_v19  ;;  %v5457_v6 = vpack.c.bf16 %v2897_v10, %v2895_v16  ;;  %5456 = vmatprep.subr.bf16.mxu0 %v5455_v15  ;;  %v5459_v19 = vpack.c.bf16 %v2902_v0, %v2900_v18  ;;  %v2899_v20 = vld [vmem:[#allocation14 + $0x380] sm:$0xff]  ;;  %v2909_v59 = vld [vmem:[#allocation14 + $0x3d0] sm:$0xff] }
 0x7ca   :  { %2725 = vmatmul.mubr.f32.vlgmr.msra.gmra.mrb[22].mxu1 %v2594_v22  ;;  %5458 = vmatpush1.bf16.msra.mxu0 %v5457_v6  ;;  %v2904_v22 = vld [vmem:[#allocation14 + $0x3a8] sm:$0xff] }
 0x7cb   :  { %5382 = vmatpush1.bf16.msra.mxu1 %v5381_v21  ;;  %2730 = vmatprep.mubr.f32.mxu1 %v6157_v32 }
 0x7cc   :  { %5384 = vmatprep.subr.bf16.mxu1 %v5383_v8  ;;  %5460 = vmatprep.subr.bf16.mxu0 %v5459_v19  ;;  %v2906_v8 = vld [vmem:[#allocation14 + $0x3b8] sm:$0xff] }
 0x7cd   :  { %v5463_v23 = vpack.c.bf16 %v2906_v8, %v2904_v22 }
 0x7ce   :  { %2731 = vmatmul.mubr.f32.gmra.mrb[24].mxu1 %v2595_v1  ;;  %v2901_v1 = vld [vmem:[#allocation14 + $0x390] sm:$0xff] }
 0x7cf   :  { %5386 = vmatpush1.bf16.msra.mxu1 %v5385_v25  ;;  %2801 = vmatprep.mubr.f32.mxu1 %v6157_v32  ;;  %v5461_v21 = vpack.c.bf16 %v2901_v1, %v2899_v20  ;;  %v2908_v25 = vld [vmem:[#allocation14 + $0x3c8] sm:$0xff] }
 0x7d0   :  { %5388 = vmatprep.subr.bf16.mxu1 %v5387_v47  ;;  %v2910_v47 = vld [vmem:[#allocation14 + $0x3d8] sm:$0xff] }
 0x7d1   :  { %5462 = vmatpush1.bf16.msra.mxu0 %v5461_v21  ;;  %v5467_v27 = vpack.c.bf16 %v2910_v47, %v2908_v25 }
 0x7d2   :  { %5464 = vmatprep.subr.bf16.mxu0 %v5463_v23 }
 0x7d3   :  { %5390 = vmatpush1.bf16.msra.mxu1 %v5389_v28  ;;  %v2914_v28 = vld [vmem:[#allocation14 + $0x3f8] sm:$0xff] }
 0x7d4   :  { %5392 = vmatprep.subr.bf16.mxu1 %v5391_v29  ;;  %v5469_v29 = vpack.c.bf16 %v2909_v59, %v2907_v26  ;;  %v5471_v30 = vpack.c.bf16 %v2914_v28, %v2912_v44  ;;  %v3047_v26 = vld [vmem:[#allocation14 + $0x560] sm:$0xff]  ;;  %v3032_v28 = vld [vmem:[#allocation14 + $0x470] sm:$0xff] }
 0x7d5   :  { %5466 = vmatpush1.bf16.msra.mxu0 %v5465_v24  ;;  %v3031_v44 = vld [vmem:[#allocation14 + $0x460] sm:$0xff] }
 0x7d6   :  { %5468 = vmatprep.subr.bf16.mxu0 %v5467_v27  ;;  %v3048_v27 = vld [vmem:[#allocation14 + $0x570] sm:$0xff] }
 0x7d7   :  { %5394 = vmatpush1.bf16.msra.mxu1 %v5393_v41  ;;  %v3041_v41 = vld [vmem:[#allocation14 + $0x500] sm:$0xff]  ;;  %v5487_v59 = vpack.c.bf16 %v3048_v27, %v3047_v26  ;;  %v3235_v26 = vld [vmem:[#allocation13 + $0x10] sm:$0xff]  ;;  %v3237_v27 = vld [vmem:[#allocation13 + $0x48] sm:$0xff] }
 0x7d8   :  { %5396 = vmatprep.subr.bf16.mxu1 %v5395_v42  ;;  %v3042_v42 = vld [vmem:[#allocation14 + $0x510] sm:$0xff] }
 0x7d9   :  { %5470 = vmatpush1.bf16.msra.mxu0 %v5469_v29  ;;  %v5475_v45 = vpack.c.bf16 %v3042_v42, %v3041_v41  ;;  %v5489_v29 = vpack.c.bf16 %v3032_v28, %v3031_v44  ;;  %v3034_v41 = vld [vmem:[#allocation14 + $0x490] sm:$0xff]  ;;  %v3240_v28 = vld [vmem:[#allocation13 + $0x88] sm:$0xff] }
 0x7da   :  { %5472 = vmatprep.subr.bf16.mxu0 %v5471_v30  ;;  %v3049_v30 = vld [vmem:[#allocation14 + $0x580] sm:$0xff] }
 0x7db   :  { %5398 = vmatpush1.bf16.msra.mxu1 %v5397_v49  ;;  %v3044_v49 = vld [vmem:[#allocation14 + $0x530] sm:$0xff]  ;;  %v5491_v34 = vpack.c.bf16 %v3050_v33, %v3049_v30  ;;  %v5541_v33 = vpack.c.bf16 %v3237_v27, %v3235_v26  ;;  %v3266_v26 = vld [vmem:[#allocation13 + $0x360] sm:$0xff] }
 0x7dc   :  { %5400 = vmatprep.subr.bf16.mxu1 %v5399_v50  ;;  %v5477_v50 = vpack.c.bf16 %v3026_v46, %v3025_v43  ;;  %v5479_v51 = vpack.c.bf16 %v3044_v49, %v3043_v48  ;;  %v3051_v43 = vld [vmem:[#allocation14 + $0x5a0] sm:$0xff]  ;;  %v3036_v49 = vld [vmem:[#allocation14 + $0x4b0] sm:$0xff] }
 0x7dd   :  { %5474 = vmatpush1.bf16.msra.mxu0 %v5473_v35  ;;  %v3033_v35 = vld [vmem:[#allocation14 + $0x480] sm:$0xff] }
 0x7de   :  { %v5493_v42 = vpack.c.bf16 %v3034_v41, %v3033_v35  ;;  %v3035_v48 = vld [vmem:[#allocation14 + $0x4a0] sm:$0xff] }
 0x7df   :  { %5402 = vmatpush1.bf16.msra.mxu1 %v5401_v57  ;;  %v3046_v57 = vld [vmem:[#allocation14 + $0x550] sm:$0xff] }
 0x7e0   :  { %5404 = vmatprep.subr.bf16.mxu1 %v5403_v60  ;;  %v5481_v60 = vpack.c.bf16 %v3028_v53, %v3027_v52  ;;  %v5483_v61 = vpack.c.bf16 %v3046_v57, %v3045_v56  ;;  %v3054_v52 = vld [vmem:[#allocation14 + $0x5d0] sm:$0xff]  ;;  %v3037_v56 = vld [vmem:[#allocation14 + $0x4c0] sm:$0xff] }
 0x7e1   :  { %v3038_v57 = vld [vmem:[#allocation14 + $0x4d0] sm:$0xff] }
 0x7e3   :  { %5406 = vmatpush1.bf16.msra.mxu1 %v5405_v3  ;;  %v2815_v3 = vld [vmem:[#allocation16 + $0x55] ss:$8 sm:$0x3] }
 0x7e4   :  { %5408 = vmatprep.subr.bf16.mxu1 %v5407_v5  ;;  %v2820_v5 = vrot.slane %v2815_v3, %v6502_v2  ;;  %v2824_v58 = vrot.slane %v2815_v3, %v6506_v4  ;;  %v3040_v3 = vld [vmem:[#allocation14 + $0x4f0] sm:$0xff] }
 0x7e7   :  { %5410 = vmatpush1.bf16.msra.mxu1 %v5409_v31 }
 0x7e8   :  { %5476 = vmatprep.subr.bf16.mxu1 %v5475_v45  ;;  %v3052_v45 = vld [vmem:[#allocation14 + $0x5b0] sm:$0xff] }
 0x7e9   :  { %v5495_v46 = vpack.c.bf16 %v3052_v45, %v3051_v43  ;;  %v3241_v43 = vld [vmem:[#allocation13 + $0xb8] sm:$0xff] }
 0x7ea   :  { %2802 = vmatmul.mubr.f32.vlgmr.msra.gmra.mrb[22].mxu1 %v5807_v9 }
 0x7eb   :  { %2807 = vmatprep.mubr.f32.mxu1 %v6157_v32  ;;  %5478 = vmatpush3.bf16.msra.mxu1 %v5477_v50  ;;  %v5497_v50 = vpack.c.bf16 %v3036_v49, %v3035_v48  ;;  %v3244_v49 = vld [vmem:[#allocation13 + $0xf8] sm:$0xff] }
 0x7ec   :  { %5480 = vmatprep.subr.bf16.mxu1 %v5479_v51  ;;  %v3053_v51 = vld [vmem:[#allocation14 + $0x5c0] sm:$0xff] }
 0x7ed   :  { %v5499_v53 = vpack.c.bf16 %v3054_v52, %v3053_v51 }
 0x7ee   :  { %2808 = vmatmul.mubr.f32.gmra.mrb[24].mxu1 %v5808_v55 }
 0x7ef   :  { %5482 = vmatpush3.bf16.msra.mxu1 %v5481_v60  ;;  %v5501_v60 = vpack.c.bf16 %v3038_v57, %v3037_v56  ;;  %v3243_v57 = vld [vmem:[#allocation13 + $0xf0] sm:$0xff] }
 0x7f0   :  { %5484 = vmatprep.subr.bf16.mxu1 %v5483_v61  ;;  %v3055_v61 = vld [vmem:[#allocation14 + $0x5e0] sm:$0xff] }
 0x7f1   :  { %v5503_v12 = vpack.c.bf16 %v3056_v63, %v3055_v61  ;;  %v2106_v61 = vld [vmem:[#allocation16 + $0x2d] ss:$0 sm:$0xff] }
 0x7f3   :  { %5486 = vmatpush3.bf16.msra.mxu1 %v5485_v54  ;;  %v3039_v54 = vld [vmem:[#allocation14 + $0x4e0] sm:$0xff] }
 0x7f4   :  { %5488 = vmatprep.subr.bf16.mxu1 %v5487_v59 }
 0x7f7   :  { %5490 = vmatpush3.bf16.msra.mxu1 %v5489_v29  ;;  %v3242_v29 = vld [vmem:[#allocation13 + $0xc0] sm:$0xff] }
 0x7f8   :  { %5492 = vmatprep.subr.bf16.mxu1 %v5491_v34  ;;  %v5543_v41 = vpack.c.bf16 %v3242_v29, %v3240_v28  ;;  %v3265_v28 = vld [vmem:[#allocation13 + $0x358] sm:$0xff]  ;;  %v3503_v29 = vld [vmem:[#allocation13 + $0x30] sm:$0xff] }
 0x7fb   :  { %5494 = vmatpush3.bf16.msra.mxu1 %v5493_v42  ;;  %v3239_v42 = vld [vmem:[#allocation13 + $0x80] sm:$0xff] }
 0x7fc   :  { %5496 = vmatprep.subr.bf16.mxu1 %v5495_v46  ;;  %v5545_v52 = vpack.c.bf16 %v3241_v43, %v3239_v42  ;;  %v3505_v42 = vld [vmem:[#allocation13 + $0xa0] sm:$0xff]  ;;  %v3506_v43 = vld [vmem:[#allocation13 + $0xd8] sm:$0xff] }
 0x7ff   :  { %5498 = vmatpush3.bf16.msra.mxu1 %v5497_v50  ;;  %v3246_v50 = vld [vmem:[#allocation13 + $0x130] sm:$0xff] }
 0x800   :  { %5500 = vmatprep.subr.bf16.mxu1 %v5499_v53  ;;  %v5547_v56 = vpack.c.bf16 %v3246_v50, %v3244_v49 }
 0x803   :  { %5502 = vmatpush3.bf16.msra.mxu1 %v5501_v60  ;;  %v3245_v60 = vld [vmem:[#allocation13 + $0x128] sm:$0xff] }
 0x804   :  { %5504 = vmatprep.subr.bf16.mxu1 %v5503_v12  ;;  %v3248_v12 = vld [vmem:[#allocation13 + $0x168] sm:$0xff] }
 0x8bd   :  { %v2803_v7 = vpop.f32.mrb[22].mxu1 }
 0x8be   :  { %v2827_v31 = vadd.f32 %v2820_v5, %v2803_v7  ;;  %v2805_v9 = vpop.f32.mrb[23].mxu1  ;;  %v3238_v7 = vld [vmem:[#allocation13 + $0x50] sm:$0xff] }
 0x8bf   :  { %v2828_v55 = vadd.f32 %v2824_v58, %v2805_v9  ;;  %v3143_v9 = vld [vmem:[#allocation14 + $0x600] sm:$0xff] }
 0x8c0   :  { %v2835_v11 = vmul.f32 1.442695, %v2827_v31  ;;  %vm2831_vm3 = vcmp.gt.f32.partialorder %v2827_v31, 0.0 }
 0x8c1   :  { %v2837_v62 = vmul.f32 1.442695, %v2828_v55  ;;  %v2809_v15 = vpop.f32.mrb[24].mxu1  ;;  %vm2832_vm2 = vcmp.gt.f32.partialorder %v2828_v55, 0.0 }
 0x8c2   :  { %5759 = vpow2.f32 %v2835_v11  ;;  %v2829_v16 = vadd.f32 %v2820_v5, %v2809_v15  ;;  %v2811_v10 = vpop.f32.mrb[25].mxu1  ;;  %v5505_v5 = vpack.c.bf16 %v3040_v3, %v3039_v54  ;;  %v3145_v11 = vld [vmem:[#allocation14 + $0x620] sm:$0xff]  ;;  %v3146_v15 = vld [vmem:[#allocation14 + $0x630] sm:$0xff]  ;;  %v5549_v3 = vpack.c.bf16 %v3245_v60, %v3243_v57 }
 0x8c3   :  { %5761 = vpow2.f32 %v2837_v62  ;;  %v2830_v6 = vadd.f32 %v2824_v58, %v2811_v10  ;;  %v3236_v58 = vld [vmem:[#allocation13 + $0x18] sm:$0xff]  ;;  %v3250_v54 = vld [vmem:[#allocation13 + $0x1a0] sm:$0xff] }
 0x8c4   :  { %v2839_v18 = vmul.f32 1.442695, %v2829_v16  ;;  %vm2833_vm5 = vcmp.gt.f32.partialorder %v2829_v16, 0.0  ;;  %5506 = vmatpush3.bf16.msra.mxu1 %v5505_v5  ;;  %v2916_v10 = vld [vmem:[#allocation16 + $0x56] ss:$8 sm:$0x3]  ;;  %v6585_v5 = vadd.f32 %v6558_v37, %v2106_v61 }
 0x8c5   :  { %v2841_v0 = vmul.f32 1.442695, %v2830_v6  ;;  %vm2834_vm4 = vcmp.gt.f32.partialorder %v2830_v6, 0.0  ;;  %v3253_v37 = vld [vmem:[#allocation13 + $0x208] sm:$0xff]  ;;  %v3509_v60 = vld [vmem:[#allocation13 + $0x180] sm:$0xff] }
 0x8c6   :  { %5763 = vpow2.f32 %v2839_v18  ;;  %v2925_v18 = vrot.slane %v2916_v10, %v6506_v4  ;;  %vm2182_vm10 = vcmp.gt.f32.partialorder %v6585_v5, 0.0 }
 0x8c7   :  { %5765 = vpow2.f32 %v2841_v0 }
 0x8cc   :  { %v5760_v19 = vpop.eup %5759 }
 0x8cd   :  { %v5762_v20 = vpop.eup %5761  ;;  %v3736_v1 = vadd.f32 -1.0, %v5760_v19 }
 0x8ce   :  { %v3737_v21 = vadd.f32 -1.0, %v5762_v20 }
 0x8cf   :  { %v2847_v13 = vsel %vm2831_vm3, %v2827_v31, %v3736_v1  ;;  %v5539_v31 = vpack.c.bf16 %v3238_v7, %v3236_v58  ;;  %v5551_v58 = vpack.c.bf16 %v3250_v54, %v3248_v12  ;;  %v3247_v7 = vld [vmem:[#allocation13 + $0x160] sm:$0xff] }
 0x8d0   :  { %v5764_v22 = vpop.eup %5763  ;;  %v2848_v8 = vsel %vm2832_vm2, %v2828_v55, %v3737_v21  ;;  %v3144_v55 = vld [vmem:[#allocation14 + $0x610] sm:$0xff] }
 0x8d1   :  { %v5766_v23 = vpop.eup %5765  ;;  %2992 = vmatprep.mubr.f32.mxu0 %v2848_v8  ;;  %v3738_v17 = vadd.f32 -1.0, %v5764_v22  ;;  %5540 = vmatprep.subr.bf16.mxu1 %v5539_v31  ;;  %v5507_v62 = vpack.c.bf16 %v3144_v55, %v3143_v9  ;;  %v3249_v31 = vld [vmem:[#allocation13 + $0x198] sm:$0xff]  ;;  %v3254_v55 = vld [vmem:[#allocation13 + $0x210] sm:$0xff] }
 0x8d2   :  { %2993 = vmatmul.mubr.f32.vlgmr.msra.gmra.mrb[24].mxu0 %v2847_v13  ;;  %v3739_v24 = vadd.f32 -1.0, %v5766_v23  ;;  %v3252_v9 = vld [vmem:[#allocation13 + $0x1d8] sm:$0xff] }
 0x8d3   :  { %v2849_v47 = vsel %vm2833_vm5, %v2829_v16, %v3738_v17  ;;  %v5511_v16 = vpack.c.bf16 %v3146_v15, %v3145_v11  ;;  %5508 = vmatprep.subr.bf16.mxu0 %v5507_v62  ;;  %v6587_v11 = vld [vmem:[#allocation16 + $0x2f] ss:$0 sm:$0xff]  ;;  %v6590_v15 = vadd.f32 %v6556_v36, %v2106_v61  ;;  %v3510_v61 = vld [vmem:[#allocation13 + $0x1b8] sm:$0xff] }
 0x8d4   :  { %v2850_v25 = vsel %vm2834_vm4, %v2830_v6, %v3739_v24  ;;  %5510 = vmatpush3.bf16.msra.mxu0 %v5507_v62  ;;  %v2921_v6 = vrot.slane %v2916_v10, %v6502_v2  ;;  %v5553_v62 = vpack.c.bf16 %v3249_v31, %v3247_v7  ;;  %v5555_v10 = vpack.c.bf16 %v3254_v55, %v3252_v9  ;;  %v3513_v31 = vld [vmem:[#allocation13 + $0x260] sm:$0xff]  ;;  %v3514_v9 = vld [vmem:[#allocation13 + $0x298] sm:$0xff] }
 0x8d5   :  { %2998 = vmatprep.mubr.f32.mxu0 %v2850_v25  ;;  %5512 = vmatprep.subr.bf16.mxu0 %v5511_v16  ;;  %vm2183_vm11 = vcmp.gt.f32.partialorder %v6590_v15, 0.0  ;;  %v2383_v12 = vadd.f32 %v6564_v39, %v6587_v11  ;;  %v5615_v54 = vpack.c.bf16 %v3510_v61, %v3509_v60  ;;  %v5623_v55 = vpack.c.bf16 %v3514_v9, %v3513_v31  ;;  %v3517_v39 = vld [vmem:[#allocation13 + $0x340] sm:$0xff]  ;;  %v3388_v60 = vld [vmem:[#allocation13 + $0xd0] sm:$0xff] }
 0x8d6   :  { %2999 = vmatmul.mubr.f32.gmra.mrb[26].mxu0 %v2849_v47  ;;  %v3392_v31 = vld [vmem:[#allocation13 + $0x140] sm:$0xff] }
 0x8d7   :  { %vm2387_vm13 = vcmp.gt.f32.partialorder %v2383_v12, 0.0 }
 0x8d8   :  { %5514 = vmatpush3.bf16.msra.mxu0 %v5511_v16  ;;  %v2184_v16 = vmul.f32 1.442695, %v6585_v5 }
 0x9a5   :  { %v2994_v0 = vpop.f32.mrb[24].mxu0 }
 0x9a6   :  { %v2995_v19 = vadd.f32 %v2994_v0, %v2921_v6  ;;  %v2996_v20 = vpop.f32.mrb[25].mxu0  ;;  %v3256_v0 = vld [vmem:[#allocation13 + $0x248] sm:$0xff] }
 0x9a7   :  { %v2997_v1 = vadd.f32 %v2996_v20, %v2925_v18 }
 0x9a8   :  { %v3009_v21 = vmul.f32 1.442695, %v2995_v19  ;;  %vm3005_vm7 = vcmp.gt.f32.partialorder %v2995_v19, 0.0 }
 0x9a9   :  { %v3011_v22 = vmul.f32 1.442695, %v2997_v1  ;;  %v3000_v8 = vpop.f32.mrb[26].mxu0  ;;  %vm3006_vm6 = vcmp.gt.f32.partialorder %v2997_v1, 0.0 }
 0x9aa   :  { %5767 = vpow2.f32 %v3009_v21  ;;  %v3001_v23 = vadd.f32 %v3000_v8, %v2921_v6  ;;  %v3002_v13 = vpop.f32.mrb[27].mxu0  ;;  %v3251_v6 = vld [vmem:[#allocation13 + $0x1d0] sm:$0xff]  ;;  %v3255_v21 = vld [vmem:[#allocation13 + $0x240] sm:$0xff] }
 0x9ab   :  { %5769 = vpow2.f32 %v3011_v22  ;;  %v3003_v17 = vadd.f32 %v3002_v13, %v2925_v18  ;;  %v6595_v18 = vadd.f32 %v6566_v40, %v6587_v11  ;;  %v5557_v20 = vpack.c.bf16 %v3253_v37, %v3251_v6  ;;  %v3257_v22 = vld [vmem:[#allocation13 + $0x278] sm:$0xff]  ;;  %v3262_v13 = vld [vmem:[#allocation13 + $0x2f0] sm:$0xff] }
 0x9ac   :  { %v3013_v24 = vmul.f32 1.442695, %v3001_v23  ;;  %vm3007_vm9 = vcmp.gt.f32.partialorder %v3001_v23, 0.0  ;;  %v3518_v11 = vld [vmem:[#allocation13 + $0x378] sm:$0xff] }
 0x9ad   :  { %v3015_v25 = vmul.f32 1.442695, %v3003_v17  ;;  %vm3008_vm8 = vcmp.gt.f32.partialorder %v3003_v17, 0.0  ;;  %v2388_v8 = vmul.f32 1.442695, %v6595_v18  ;;  %vm2386_vm12 = vcmp.gt.f32.partialorder %v6595_v18, 0.0 }
 0x9ae   :  { %5771 = vpow2.f32 %v3013_v24  ;;  %v3259_v24 = vld [vmem:[#allocation13 + $0x2b0] sm:$0xff] }
 0x9af   :  { %5773 = vpow2.f32 %v3015_v25  ;;  %v3261_v25 = vld [vmem:[#allocation13 + $0x2e8] sm:$0xff] }
 0x9b0   :  { %5775 = vpow2.f32 %v2184_v16  ;;  %v5565_v27 = vpack.c.bf16 %v3261_v25, %v3259_v24  ;;  %v3155_v24 = vld [vmem:[#allocation14 + $0x6c0] sm:$0xff]  ;;  %v3156_v25 = vld [vmem:[#allocation14 + $0x6d0] sm:$0xff] }
 0x9b4   :  { %v5768_v47 = vpop.eup %5767 }
 0x9b5   :  { %v5770_v59 = vpop.eup %5769  ;;  %v3740_v44 = vadd.f32 -1.0, %v5768_v47  ;;  %v3264_v47 = vld [vmem:[#allocation13 + $0x328] sm:$0xff] }
 0x9b6   :  { %v3741_v30 = vadd.f32 -1.0, %v5770_v59  ;;  %v5567_v59 = vpack.c.bf16 %v3266_v26, %v3264_v47  ;;  %v5531_v47 = vpack.c.bf16 %v3156_v25, %v3155_v24  ;;  %v3157_v26 = vld [vmem:[#allocation14 + $0x6e0] sm:$0xff]  ;;  %v3402_v24 = vld [vmem:[#allocation13 + $0x258] sm:$0xff]  ;;  %v3404_v25 = vld [vmem:[#allocation13 + $0x290] sm:$0xff] }
 0x9b7   :  { %v3021_v46 = vsel %vm3005_vm7, %v2995_v19, %v3740_v44  ;;  %v3258_v19 = vld [vmem:[#allocation13 + $0x280] sm:$0xff] }
 0x9b8   :  { %v5772_v34 = vpop.eup %5771  ;;  %v3022_v35 = vsel %vm3006_vm6, %v2997_v1, %v3741_v30  ;;  %v2186_v1 = vmul.f32 1.442695, %v6590_v15  ;;  %v5559_v36 = vpack.c.bf16 %v3258_v19, %v3256_v0  ;;  %v3263_v44 = vld [vmem:[#allocation13 + $0x320] sm:$0xff]  ;;  %v3504_v30 = vld [vmem:[#allocation13 + $0x68] sm:$0xff]  ;;  %v3148_v19 = vld [vmem:[#allocation14 + $0x650] sm:$0xff] }
 0x9b9   :  { %v5774_v45 = vpop.eup %5773  ;;  %3122 = vmatprep.mubr.f32.mxu1 %v3022_v35  ;;  %v3742_v48 = vadd.f32 -1.0, %v5772_v34  ;;  %v5569_v34 = vpack.c.bf16 %v3265_v28, %v3263_v44  ;;  %v5603_v35 = vpack.c.bf16 %v3504_v30, %v3503_v29  ;;  %v3147_v0 = vld [vmem:[#allocation14 + $0x640] sm:$0xff]  ;;  %v3382_v44 = vld [vmem:[#allocation13 + $0x28] sm:$0xff] }
 0x9ba   :  { %3123 = vmatmul.mubr.f32.vlgmr.msra.gmra.mrb[26].mxu1 %v3021_v46  ;;  %v3743_v51 = vadd.f32 -1.0, %v5774_v45  ;;  %5777 = vpow2.f32 %v2186_v1  ;;  %v3149_v1 = vld [vmem:[#allocation14 + $0x660] sm:$0xff] }
 0x9bb   :  { %5542 = vmatpush1.bf16.msra.mxu1 %v5541_v33  ;;  %v3023_v63 = vsel %vm3007_vm9, %v3001_v23, %v3742_v48  ;;  %v3260_v23 = vld [vmem:[#allocation13 + $0x2b8] sm:$0xff]  ;;  %5779 = vpow2.f32 %v2388_v8  ;;  %v5776_v33 = vpop.eup %5775  ;;  %v5607_v48 = vpack.c.bf16 %v3506_v43, %v3505_v42  ;;  %v3152_v8 = vld [vmem:[#allocation14 + $0x690] sm:$0xff]  ;;  %v3384_v28 = vld [vmem:[#allocation13 + $0x60] sm:$0xff] }
 0x9bc   :  { %v3024_v53 = vsel %vm3008_vm8, %v3003_v17, %v3743_v51  ;;  %5544 = vmatprep.subr.bf16.mxu1 %v5543_v41  ;;  %v5561_v17 = vpack.c.bf16 %v3257_v22, %v3255_v21  ;;  %v5563_v40 = vpack.c.bf16 %v3262_v13, %v3260_v23  ;;  %v3728_v41 = vadd.f32 -1.0, %v5776_v33  ;;  %v3507_v51 = vld [vmem:[#allocation13 + $0x110] sm:$0xff]  ;;  %v3151_v22 = vld [vmem:[#allocation14 + $0x680] sm:$0xff] }
 0x9bd   :  { %3127 = vmatprep.mubr.f32.mxu1 %v3024_v53  ;;  %v5523_v23 = vpack.c.bf16 %v3152_v8, %v3151_v22  ;;  %v3153_v13 = vld [vmem:[#allocation14 + $0x6a0] sm:$0xff]  ;;  %v5571_v29 = vpack.c.bf16 %v3384_v28, %v3382_v44  ;;  %v3057_v33 = vld [vmem:[#allocation16 + $0x57] ss:$0 sm:$0xff]  ;;  %v3403_v44 = vld [vmem:[#allocation13 + $0x288] sm:$0xff] }
 0x9be   :  { %3128 = vmatmul.mubr.f32.gmra.mrb[28].mxu1 %v3023_v63  ;;  %v2190_v49 = vsel %vm2182_vm10, %v6585_v5, %v3728_v41  ;;  %v3512_v5 = vld [vmem:[#allocation13 + $0x228] sm:$0xff]  ;;  %v3408_v28 = vld [vmem:[#allocation13 + $0x300] sm:$0xff] }
 0x9bf   :  { %5546 = vmatpush1.bf16.msra.mxu1 %v5545_v52  ;;  %3344 = vmatprep.mubr.f32.mxu1 %v6157_v32  ;;  %v3508_v52 = vld [vmem:[#allocation13 + $0x148] sm:$0xff] }
 0x9c0   :  { %5548 = vmatprep.subr.bf16.mxu1 %v5547_v56  ;;  %v5611_v56 = vpack.c.bf16 %v3508_v52, %v3507_v51  ;;  %v3381_v52 = vld [vmem:[#allocation13 + $0x20] sm:$0xff] }
 0x9c3   :  { %5550 = vmatpush1.bf16.msra.mxu1 %v5549_v3  ;;  %v3511_v3 = vld [vmem:[#allocation13 + $0x1f0] sm:$0xff] }
 0x9c4   :  { %5552 = vmatprep.subr.bf16.mxu1 %v5551_v58  ;;  %v5778_v45 = vpop.eup %5777  ;;  %v2390_v58 = vmul.f32 1.442695, %v2383_v12  ;;  %v5619_v7 = vpack.c.bf16 %v3512_v5, %v3511_v3  ;;  %v3385_v3 = vld [vmem:[#allocation13 + $0x90] sm:$0xff]  ;;  %v3387_v5 = vld [vmem:[#allocation13 + $0xc8] sm:$0xff] }
 0x9c5   :  { %v5780_v46 = vpop.eup %5779  ;;  %v3729_v50 = vadd.f32 -1.0, %v5778_v45  ;;  %v5577_v9 = vpack.c.bf16 %v3387_v5, %v3385_v3 }
 0x9c6   :  { %v3732_v53 = vadd.f32 -1.0, %v5780_v46  ;;  %5781 = vpow2.f32 %v2390_v58 }
 0x9c7   :  { %5554 = vmatpush1.bf16.msra.mxu1 %v5553_v62  ;;  %v2191_v57 = vsel %vm2183_vm11, %v6590_v15, %v3729_v50  ;;  %v3515_v62 = vld [vmem:[#allocation13 + $0x2d0] sm:$0xff]  ;;  %v3516_v15 = vld [vmem:[#allocation13 + $0x308] sm:$0xff] }
 0x9c8   :  { %5556 = vmatprep.subr.bf16.mxu1 %v5555_v10  ;;  %v2394_v63 = vsel %vm2386_vm12, %v6595_v18, %v3732_v53  ;;  %v5627_v16 = vpack.c.bf16 %v3516_v15, %v3515_v62  ;;  %v5631_v10 = vpack.c.bf16 %v3518_v11, %v3517_v39  ;;  %v3383_v53 = vld [vmem:[#allocation13 + $0x58] sm:$0xff]  ;;  %v3389_v62 = vld [vmem:[#allocation13 + $0x100] sm:$0xff]  ;;  %v3396_v11 = vld [vmem:[#allocation13 + $0x1b0] sm:$0xff] }
 0x9c9   :  { %v3391_v15 = vld [vmem:[#allocation13 + $0x138] sm:$0xff] }
 0x9ca   :  { %v3394_v39 = vld [vmem:[#allocation13 + $0x178] sm:$0xff] }
 0x9cb   :  { %5558 = vmatpush1.bf16.msra.mxu1 %v5557_v20  ;;  %v5515_v20 = vpack.c.bf16 %v3148_v19, %v3147_v0  ;;  %v3393_v0 = vld [vmem:[#allocation13 + $0x170] sm:$0xff]  ;;  %v3395_v19 = vld [vmem:[#allocation13 + $0x1a8] sm:$0xff] }
 0x9cc   :  { %5560 = vmatprep.subr.bf16.mxu1 %v5559_v36  ;;  %v3150_v36 = vld [vmem:[#allocation14 + $0x670] sm:$0xff] }
 0x9cd   :  { %5516 = vmatprep.subr.bf16.mxu0 %v5515_v20  ;;  %v5519_v21 = vpack.c.bf16 %v3150_v36, %v3149_v1  ;;  %v3398_v1 = vld [vmem:[#allocation13 + $0x1e8] sm:$0xff]  ;;  %v3400_v36 = vld [vmem:[#allocation13 + $0x220] sm:$0xff] }
 0x9ce   :  { %5518 = vmatpush3.bf16.msra.mxu0 %v5515_v20 }
 0x9cf   :  { %5562 = vmatpush1.bf16.msra.mxu1 %v5561_v17  ;;  %5520 = vmatprep.subr.bf16.mxu0 %v5519_v21  ;;  %v3154_v17 = vld [vmem:[#allocation14 + $0x6b0] sm:$0xff] }
 0x9d0   :  { %5564 = vmatprep.subr.bf16.mxu1 %v5563_v40  ;;  %v5782_v6 = vpop.eup %5781  ;;  %v5527_v40 = vpack.c.bf16 %v3154_v17, %v3153_v13  ;;  %v5587_v13 = vpack.c.bf16 %v3400_v36, %v3398_v1  ;;  %v3399_v17 = vld [vmem:[#allocation13 + $0x218] sm:$0xff] }
 0x9d1   :  { %v3733_v37 = vadd.f32 -1.0, %v5782_v6 }
 0x9d2   :  { %5522 = vmatpush3.bf16.msra.mxu0 %v5519_v21  ;;  %v5585_v21 = vpack.c.bf16 %v3395_v19, %v3393_v0 }
 0x9d3   :  { %5566 = vmatpush1.bf16.msra.mxu1 %v5565_v27  ;;  %v2395_v18 = vsel %vm2387_vm13, %v2383_v12, %v3733_v37  ;;  %5524 = vmatprep.subr.bf16.mxu0 %v5523_v23  ;;  %v3158_v27 = vld [vmem:[#allocation14 + $0x6f0] sm:$0xff]  ;;  %v5573_v12 = vpack.c.bf16 %v3383_v53, %v3381_v52 }
 0x9d4   :  { %5568 = vmatprep.subr.bf16.mxu1 %v5567_v59  ;;  %v5535_v59 = vpack.c.bf16 %v3158_v27, %v3157_v26  ;;  %v5591_v27 = vpack.c.bf16 %v3404_v25, %v3402_v24 }
 0x9d6   :  { %5526 = vmatpush3.bf16.msra.mxu0 %v5523_v23 }
 0x9d7   :  { %5570 = vmatpush1.bf16.msra.mxu1 %v5569_v34  ;;  %5528 = vmatprep.subr.bf16.mxu0 %v5527_v40 }
 0x9d8   :  { %5604 = vmatprep.subr.bf16.mxu1 %v5603_v35 }
 0x9da   :  { %3345 = vmatmul.mubr.f32.vlgmr.msra.gmra.mrb[30].mxu1 %v2190_v49  ;;  %5530 = vmatpush3.bf16.msra.mxu0 %v5527_v40 }
 0x9db   :  { %5606 = vmatpush3.bf16.msra.mxu1 %v5603_v35  ;;  %3350 = vmatprep.mubr.f32.mxu1 %v6157_v32 }
 0x9dc   :  { %5608 = vmatprep.subr.bf16.mxu1 %v5607_v48  ;;  %5532 = vmatprep.subr.bf16.mxu0 %v5531_v47 }
 0x9de   :  { %3351 = vmatmul.mubr.f32.gmra.mrb[32].mxu1 %v2191_v57  ;;  %5534 = vmatpush3.bf16.msra.mxu0 %v5531_v47  ;;  %v3386_v57 = vld [vmem:[#allocation13 + $0x98] sm:$0xff] }
 0x9df   :  { %5610 = vmatpush3.bf16.msra.mxu1 %v5607_v48  ;;  %4633 = vmatprep.mubr.f32.mxu1 %v2394_v63 }
 0x9e0   :  { %5612 = vmatprep.subr.bf16.mxu1 %v5611_v56  ;;  %5536 = vmatprep.subr.bf16.mxu0 %v5535_v59 }
 0x9e2   :  { %5538 = vmatpush3.bf16.msra.mxu0 %v5535_v59  ;;  %v3401_v59 = vld [vmem:[#allocation13 + $0x250] sm:$0xff] }
 0x9e3   :  { %5614 = vmatpush3.bf16.msra.mxu1 %v5611_v56  ;;  %5572 = vmatprep.subr.bf16.mxu0 %v5571_v29  ;;  %v5593_v29 = vpack.c.bf16 %v3403_v44, %v3401_v59 }
 0x9e4   :  { %5616 = vmatprep.subr.bf16.mxu1 %v5615_v54 }
 0x9e7   :  { %5618 = vmatpush3.bf16.msra.mxu1 %v5615_v54  ;;  %v5575_v54 = vpack.c.bf16 %v3388_v60, %v3386_v57  ;;  %v3519_v57 = vld [vmem:[#allocation16 + $0x54] ss:$0 sm:$0xff] }
 0x9e8   :  { %5620 = vmatprep.subr.bf16.mxu1 %v5619_v7 }
 0x9eb   :  { %5622 = vmatpush3.bf16.msra.mxu1 %v5619_v7  ;;  %v3390_v7 = vld [vmem:[#allocation13 + $0x108] sm:$0xff] }
 0x9ec   :  { %5624 = vmatprep.subr.bf16.mxu1 %v5623_v55 }
 0x9ef   :  { %5626 = vmatpush3.bf16.msra.mxu1 %v5623_v55  ;;  %v5579_v55 = vpack.c.bf16 %v3392_v31, %v3390_v7 }
 0x9f0   :  { %5628 = vmatprep.subr.bf16.mxu1 %v5627_v16 }
 0x9f3   :  { %5630 = vmatpush3.bf16.msra.mxu1 %v5627_v16  ;;  %v2208_v16 = vld [vmem:[#allocation16 + $0x2e] ss:$0 sm:$0xff] }
 0x9f4   :  { %5632 = vmatprep.subr.bf16.mxu1 %v5631_v10  ;;  %v2276_v6 = vadd.f32 %v6562_v38, %v2208_v16  ;;  %v2281_v22 = vadd.f32 %v6560_v14, %v2208_v16  ;;  %v3397_v38 = vld [vmem:[#allocation13 + $0x1e0] sm:$0xff]  ;;  %v3406_v14 = vld [vmem:[#allocation13 + $0x2c8] sm:$0xff] }
 0x9f5   :  { %v5589_v47 = vpack.c.bf16 %v3399_v17, %v3397_v38 }
 0x9f6   :  { %v2286_v8 = vmul.f32 1.442695, %v2276_v6  ;;  %v2288_v26 = vmul.f32 1.442695, %v2281_v22  ;;  %vm2284_vm1 = vcmp.gt.f32.partialorder %v2276_v6, 0.0  ;;  %vm2285_vm2 = vcmp.gt.f32.partialorder %v2281_v22, 0.0 }
 0x9f7   :  { %5634 = vmatpush3.bf16.msra.mxu1 %v5631_v10  ;;  %v5581_v10 = vpack.c.bf16 %v3391_v15, %v3389_v62 }
 0x9fa   :  { %4634 = vmatmul.mubr.f32.vlgmr.msra.gmra.mrb[34].mxu1 %v2395_v18  ;;  %v5583_v18 = vpack.c.bf16 %v3396_v11, %v3394_v39 }
 0xa8d   :  { %v4034_v30 = vpop.f32.mrb[26].mxu1 }
 0xa8e   :  { %v4035_v34 = vpop.f32.mrb[27].mxu1 }
 0xa8f   :  { %v4036_v35 = vadd.f32 %v4035_v34, %v4034_v30  ;;  %v5595_v30 = vpack.c.bf16 %v3408_v28, %v3406_v14  ;;  %v3407_v34 = vld [vmem:[#allocation13 + $0x2f8] sm:$0xff] }
 0xa91   :  { %v3125_v41 = vadd.f32 %v4036_v35, %v3057_v33  ;;  %v4037_v42 = vpop.f32.mrb[28].mxu1  ;;  %v3410_v35 = vld [vmem:[#allocation13 + $0x338] sm:$0xff] }
 0xa92   :  { %v4038_v43 = vpop.f32.mrb[29].mxu1 }
 0xa93   :  { %v3135_v45 = vmul.f32 1.442695, %v3125_v41  ;;  %v4039_v46 = vadd.f32 %v4038_v43, %v4037_v42  ;;  %vm3133_vm14 = vcmp.gt.f32.partialorder %v3125_v41, 0.0 }
 0xa95   :  { %5783 = vpow2.f32 %v3135_v45  ;;  %v3130_v48 = vadd.f32 %v4039_v46, %v3057_v33  ;;  %v3405_v33 = vld [vmem:[#allocation13 + $0x2c0] sm:$0xff]  ;;  %v3409_v45 = vld [vmem:[#allocation13 + $0x330] sm:$0xff]  ;;  %v3411_v46 = vld [vmem:[#allocation13 + $0x368] sm:$0xff] }
 0xa96   :  { %v5597_v42 = vpack.c.bf16 %v3407_v34, %v3405_v33 }
 0xa97   :  { %v3137_v49 = vmul.f32 1.442695, %v3130_v48  ;;  %vm3134_vm15 = vcmp.gt.f32.partialorder %v3130_v48, 0.0 }
 0xa99   :  { %5785 = vpow2.f32 %v3137_v49  ;;  %v5601_v49 = vpack.c.bf16 %v3411_v46, %v3409_v45 }
 0xa9a   :  { %5787 = vpow2.f32 %v2286_v8 }
 0xa9b   :  { %5789 = vpow2.f32 %v2288_v26 }
 0xa9f   :  { %v5784_v50 = vpop.eup %5783 }
 0xaa0   :  { %v3744_v51 = vadd.f32 -1.0, %v5784_v50 }
 0xaa2   :  { %v3141_v56 = vsel %vm3133_vm14, %v3125_v41, %v3744_v51  ;;  %v3412_v41 = vld [vmem:[#allocation13 + $0x370] sm:$0xff] }
 0xaa3   :  { %v5786_v61 = vpop.eup %5785  ;;  %4598 = vmatprep.mubr.f32.mxu0 %v3141_v56  ;;  %v5599_v43 = vpack.c.bf16 %v3412_v41, %v3410_v35 }
 0xaa4   :  { %v3745_v63 = vadd.f32 -1.0, %v5786_v61 }
 0xaa6   :  { %v3142_v58 = vsel %vm3134_vm15, %v3130_v48, %v3745_v63  ;;  %v5788_v48 = vpop.eup %5787 }
 0xaa7   :  { %4599 = vmatmul.mubr.f32.vlgmr.msra.gmra.mrb[28].mxu0 %v3142_v58  ;;  %v3730_v50 = vadd.f32 -1.0, %v5788_v48  ;;  %v5790_v51 = vpop.eup %5789 }
 0xaa8   :  { %5574 = vmatpush1.bf16.msra.mxu0 %v5573_v12  ;;  %3490 = vmatprep.mubr.f32.mxu0 %v6157_v32  ;;  %v3731_v53 = vadd.f32 -1.0, %v5790_v51 }
 0xaa9   :  { %5576 = vmatprep.subr.bf16.mxu0 %v5575_v54  ;;  %v2292_v52 = vsel %vm2284_vm1, %v2276_v6, %v3730_v50 }
 0xaaa   :  { %v2293_v56 = vsel %vm2285_vm2, %v2281_v22, %v3731_v53 }
 0xaac   :  { %5578 = vmatpush1.bf16.msra.mxu0 %v5577_v9 }
 0xaad   :  { %v6610_v37 = vpop.f32.mrb[30].mxu1  ;;  %5580 = vmatprep.subr.bf16.mxu0 %v5579_v55 }
 0xaae   :  { %v6612_v20 = vpop.f32.mrb[31].mxu1 }
 0xab0   :  { %5582 = vmatpush1.bf16.msra.mxu0 %v5581_v10 }
 0xab1   :  { %v6615_v23 = vpop.f32.mrb[32].mxu1  ;;  %5584 = vmatprep.subr.bf16.mxu0 %v5583_v18 }
 0xab2   :  { %v6617_v40 = vpop.f32.mrb[33].mxu1 }
 0xab4   :  { %5586 = vmatpush1.bf16.msra.mxu0 %v5585_v21 }
 0xab5   :  { %5588 = vmatprep.subr.bf16.mxu0 %v5587_v13 }
 0xab8   :  { %5590 = vmatpush1.bf16.msra.mxu0 %v5589_v47 }
 0xab9   :  { %5592 = vmatprep.subr.bf16.mxu0 %v5591_v27 }
 0xabc   :  { %5594 = vmatpush1.bf16.msra.mxu0 %v5593_v29 }
 0xabd   :  { %5596 = vmatprep.subr.bf16.mxu0 %v5595_v30 }
 0xac0   :  { %5598 = vmatpush1.bf16.msra.mxu0 %v5597_v42 }
 0xac1   :  { %5600 = vmatprep.subr.bf16.mxu0 %v5599_v43 }
 0xac4   :  { %5602 = vmatpush1.bf16.msra.mxu0 %v5601_v49 }
 0xac7   :  { %3491 = vmatmul.mubr.f32.vlgmr.msra.gmra.mrb[30].mxu0 %v2292_v52 }
 0xac8   :  { %3496 = vmatprep.mubr.f32.mxu0 %v6157_v32 }
 0xacb   :  { %3497 = vmatmul.mubr.f32.gmra.mrb[32].mxu0 %v2293_v56 }
 0xacd   :  { %v4635_v60 = vpop.f32.mrb[34].mxu1 }
 0xace   :  { %v3592_v61 = vadd.f32 %v4635_v60, %v3519_v57  ;;  %v3586_v63 = vpop.f32.mrb[35].mxu1 }
 0xacf   :  { %v3587_v12 = vadd.f32 %v3586_v63, %v3519_v57 }
 0xad0   :  { %3598 = vst [vmem:[#allocation20 + $0x8] sm:$0xff] %v3592_v61 }
 0xad1   :  { %3597 = vst [vmem:[#allocation20] sm:$0xff] %v3587_v12 }
 0xad2   :  { %6022 = shalt.err (!%p6019_p6)
}
 0xad3   :  { %s6023_s10 = scalar_lea.hbm %s6738_s14, 256 }
 0xad4   :  { %p6024_p7 = scmp.ne.s32.totalorder %s6738_s14, %s6023_s10  ;;  %p6027_p8 = scmp.lt.u32.totalorder %s6023_s10, %s6738_s14 }
 0xad6   :  { %p6029_p9 = pnand %p6027_p8, %p6024_p7 }
 0xad8   :  { %6032 = shalt.err (!%p6029_p9)
}
 0xad9   :  { %3666 = dma.vmem_to_hbm [thread:$0]  %s3661_s18, 256, %s6738_s14, [#allocation22], %s6745_s27, %s6745_s27, %s6744_s23  }
 0xada   :  { %s6159_s26 = smov [#allocation23]  }
 0xadb   :  { %s3672_s4 = sshll.u32 %s6159_s26, 4  ;;  %s3673_s4 = int_to_ptr.vmem [resolvable:$true] %s3672_s4 }
 0xadc   :  { %s6033_s30 = scalar_lea.vmem %s3673_s4, 256  ;;  %p6038_p11 = scmp.lt.s32.totalorder %s3673_s4, %s3673_s4 }
 0xadd   :  { %p6034_p10 = scmp.ne.s32.totalorder %s3673_s4, %s6033_s30  ;;  %p6039_p12 = scmp.lt.s32.totalorder %s6033_s30, %s6033_s30 }
 0xadf   :  { %p6040_p13 = por %p6039_p12, %p6038_p11 }
 0xae1   :  { %p6041_p0 = pnand %p6040_p13, %p6034_p10 }
 0xae3   :  { %6044 = shalt.err (!%p6041_p0)
}
 0xae4   :  { %s6045_s9 = scalar_lea.hbm %s6739_s15, 256 }
 0xae5   :  { %p6046_p1 = scmp.ne.s32.totalorder %s6739_s15, %s6045_s9  ;;  %p6049_p2 = scmp.lt.u32.totalorder %s6045_s9, %s6739_s15 }
 0xae7   :  { %p6051_p3 = pnand %p6049_p2, %p6046_p1 }
 0xae9   :  { %6054 = shalt.err (!%p6051_p3)
}
 0xaea   :  { %3678 = dma.vmem_to_hbm [thread:$0]  %s3673_s4, 256, %s6739_s15, [#allocation22], %s6745_s27, %s6745_s27, %s6744_s23   ;;  %v3268_v32 = vld [vmem:[#allocation16 + $0x52] ss:$8 sm:$0x3] }
 0xaeb   :  { %v3273_v54 = vrot.slane %v3268_v32, %v6502_v2  ;;  %v3277_v3 = vrot.slane %v3268_v32, %v6506_v4  ;;  %v3159_v7 = vld [vmem:[#allocation16 + $0x78] ss:$0 sm:$0xff]  ;;  %s6160_s22 = smov [#allocation17]  }
 0xaec   :  { %s3624_s8 = sshll.u32 %s6160_s22, 4  ;;  %s3625_s8 = int_to_ptr.vmem [resolvable:$true] %s3624_s8 }
 0xaed   :  { %v3347_v5 = vadd.f32 %v6610_v37, %v3273_v54  ;;  %v3349_v58 = vadd.f32 %v6612_v20, %v3277_v3  ;;  %v3353_v9 = vadd.f32 %v6615_v23, %v3273_v54  ;;  %v3355_v62 = vadd.f32 %v6617_v40, %v3277_v3  ;;  %s6055_s15 = scalar_lea.vmem %s3625_s8, 256  ;;  %p6060_p5 = scmp.lt.s32.totalorder %s3625_s8, %s3625_s8 }
 0xaee   :  { %p6056_p4 = scmp.ne.s32.totalorder %s3625_s8, %s6055_s15  ;;  %p6061_p6 = scmp.lt.s32.totalorder %s6055_s15, %s6055_s15 }
 0xaef   :  { %v3746_v31 = vmul.f32 -1.442695, %v3347_v5  ;;  %v3747_v55 = vmul.f32 -1.442695, %v3349_v58  ;;  %v3748_v10 = vmul.f32 -1.442695, %v3353_v9 }
 0xaf0   :  { %v3749_v6 = vmul.f32 -1.442695, %v3355_v62  ;;  %p6062_p7 = por %p6061_p6, %p6060_p5 }
 0xaf1   :  { %5791 = vpow2.f32 %v3746_v31 }
 0xaf2   :  { %5793 = vpow2.f32 %v3747_v55  ;;  %p6063_p8 = pnand %p6062_p7, %p6056_p4 }
 0xb7a   :  { %v4600_v15 = vpop.f32.mrb[28].mxu0 }
 0xb7b   :  { %v3232_v16 = vadd.f32 %v4600_v15, %v3159_v7  ;;  %v3226_v39 = vpop.f32.mrb[29].mxu0 }
 0xb7c   :  { %v3227_v11 = vadd.f32 %v3226_v39, %v3159_v7 }
 0xb7d   :  { %3596 = vst [vmem:[#allocation17 + $0x8] sm:$0xff] %v3232_v16 }
 0xb7e   :  { %3595 = vst [vmem:[#allocation17] sm:$0xff] %v3227_v11 }
 0xb7f   :  { %6066 = shalt.err (!%p6063_p8)
}
 0xb80   :  { %s6067_s21 = scalar_lea.hbm %s6735_s11, 256 }
 0xb81   :  { %p6068_p9 = scmp.ne.s32.totalorder %s6735_s11, %s6067_s21  ;;  %p6071_p10 = scmp.lt.u32.totalorder %s6067_s21, %s6735_s11 }
 0xb83   :  { %p6073_p11 = pnand %p6071_p10, %p6068_p9 }
 0xb85   :  { %6076 = shalt.err (!%p6073_p11)
}
 0xb86   :  { %3630 = dma.vmem_to_hbm [thread:$0]  %s3625_s8, 256, %s6735_s11, [#allocation4], %s6745_s27, %s6745_s27, %s6744_s23   ;;  %5795 = vpow2.f32 %v3748_v10  ;;  %v5792_v37 = vpop.eup %5791  ;;  %v3414_v22 = vld [vmem:[#allocation16 + $0x53] ss:$8 sm:$0x3] }
 0xb87   :  { %5797 = vpow2.f32 %v3749_v6  ;;  %v5794_v18 = vpop.eup %5793  ;;  %v3369_v0 = vadd.f32 1.0, %v5792_v37  ;;  %v3419_v8 = vrot.slane %v3414_v22, %v6502_v2  ;;  %v3423_v13 = vrot.slane %v3414_v22, %v6506_v4  ;;  %v5809_v24 = vld [vmem:[%s6725_s1] sm:$0xff]  ;;  %v5810_v59 = vld [vmem:[%s6725_s1 + $0x8] sm:$0xff]  ;;  %v5811_v30 = vld [vmem:[%s6725_s1 + $0x10] sm:$0xff]  ;;  %s6161_s5 = smov [#allocation18]   ;;  %s6162_s0 = smov [#allocation20]  }
 0xb88   :  { %v3370_v20 = vadd.f32 1.0, %v5794_v18  ;;  %s3636_s16 = sshll.u32 %s6161_s5, 4  ;;  %v5812_v41 = vld [vmem:[%s6725_s1 + $0x18] sm:$0xff]  ;;  %s3648_s18 = sshll.u32 %s6162_s0, 4  ;;  %s3637_s16 = int_to_ptr.vmem [resolvable:$true] %s3636_s16  ;;  %s6686_s18 = int_to_ptr.vmem [resolvable:$true] %s3648_s18 }
 0xb89   :  { %5799 = vrcp.f32 %v3369_v0  ;;  %s6077_s22 = scalar_lea.vmem %s3637_s16, 512  ;;  %p6082_p13 = scmp.lt.s32.totalorder %s3637_s16, %s3637_s16 }
 0xb8a   :  { %5801 = vrcp.f32 %v3370_v20  ;;  %p6078_p12 = scmp.ne.s32.totalorder %s3637_s16, %s6077_s22  ;;  %p6083_p0 = scmp.lt.s32.totalorder %s6077_s22, %s6077_s22 }
 0xb8c   :  { %p6084_p1 = por %p6083_p0, %p6082_p13 }
 0xb8e   :  { %p6085_p2 = pnand %p6084_p1, %p6078_p12 }
 0xb90   :  { %v5796_v19 = vpop.eup %5795 }
 0xb91   :  { %v5798_v1 = vpop.eup %5797  ;;  %v3371_v36 = vadd.f32 1.0, %v5796_v19 }
 0xb92   :  { %v3372_v21 = vadd.f32 1.0, %v5798_v1 }
 0xb93   :  { %5803 = vrcp.f32 %v3371_v36  ;;  %v5800_v23 = vpop.eup %5799 }
 0xb94   :  { %5805 = vrcp.f32 %v3372_v21  ;;  %v5802_v38 = vpop.eup %5801  ;;  %v3607_v25 = vmul.f32 %v5809_v24, %v5800_v23 }
 0xb95   :  { %v3608_v44 = vmul.f32 %v5810_v59, %v5802_v38 }
 0xb9a   :  { %v3492_v17 = vpop.f32.mrb[30].mxu0 }
 0xb9b   :  { %v3493_v40 = vadd.f32 %v3492_v17, %v3419_v8  ;;  %v3494_v47 = vpop.f32.mrb[31].mxu0 }
 0xb9c   :  { %v3495_v27 = vadd.f32 %v3494_v47, %v3423_v13 }
 0xb9d   :  { %v5804_v26 = vpop.eup %5803  ;;  %v3611_v14 = vadd.f32 %v3607_v25, %v3493_v40 }
 0xb9e   :  { %v5806_v2 = vpop.eup %5805  ;;  %3604 = vst [vmem:[#allocation18 + $0x8] sm:$0xff] %v3495_v27  ;;  %v3612_v4 = vadd.f32 %v3608_v44, %v3495_v27  ;;  %v3498_v28 = vpop.f32.mrb[32].mxu0  ;;  %v3609_v33 = vmul.f32 %v5811_v30, %v5804_v26 }
 0xb9f   :  { %3615 = vst [vmem:[#allocation18] sm:$0xff] %v3611_v14  ;;  %v3499_v29 = vadd.f32 %v3498_v28, %v3419_v8  ;;  %v3500_v34 = vpop.f32.mrb[33].mxu0  ;;  %v3610_v42 = vmul.f32 %v5812_v41, %v5806_v2 }
 0xba0   :  { %3616 = vst.msk [vmem:[#allocation18 + $0x8] sm:$0xff] %vm205_vm0, %v3612_v4  ;;  %v3501_v35 = vadd.f32 %v3500_v34, %v3423_v13 }
 0xba1   :  { %v3613_v43 = vadd.f32 %v3609_v33, %v3499_v29 }
 0xba2   :  { %3606 = vst [vmem:[#allocation18 + $0x18] sm:$0xff] %v3501_v35  ;;  %v3614_v45 = vadd.f32 %v3610_v42, %v3501_v35 }
 0xba3   :  { %3617 = vst [vmem:[#allocation18 + $0x10] sm:$0xff] %v3613_v43 }
 0xba4   :  { %3618 = vst.msk [vmem:[#allocation18 + $0x18] sm:$0xff] %vm205_vm0, %v3614_v45 }
 0xba5   :  { %6088 = shalt.err (!%p6085_p2)
}
 0xba6   :  { %s6089_s15 = scalar_lea.hbm %s6736_s12, 512 }
 0xba7   :  { %p6090_p3 = scmp.ne.s32.totalorder %s6736_s12, %s6089_s15  ;;  %p6093_p4 = scmp.lt.u32.totalorder %s6089_s15, %s6736_s12 }
 0xba9   :  { %p6095_p5 = pnand %p6093_p4, %p6090_p3 }
 0xbab   :  { %6098 = shalt.err (!%p6095_p5)
}
 0xbac   :  { %3642 = dma.vmem_to_hbm [thread:$0]  %s3637_s16, 512, %s6736_s12, [#allocation19], %s6147_s7, %s6147_s7, %s6148_s20  }
 0xbad   :  { %s6099_s28 = scalar_lea.vmem %s6686_s18, 256  ;;  %p6104_p7 = scmp.lt.s32.totalorder %s6686_s18, %s6686_s18 }
 0xbae   :  { %p6100_p6 = scmp.ne.s32.totalorder %s6686_s18, %s6099_s28  ;;  %p6105_p8 = scmp.lt.s32.totalorder %s6099_s28, %s6099_s28 }
 0xbb0   :  { %p6106_p9 = por %p6105_p8, %p6104_p7 }
 0xbb2   :  { %p6107_p10 = pnand %p6106_p9, %p6100_p6 }
 0xbb4   :  { %6110 = shalt.err (!%p6107_p10)
}
 0xbb5   :  { %s6111_s11 = scalar_lea.hbm %s6737_s13, 256 }
 0xbb6   :  { %p6112_p11 = scmp.ne.s32.totalorder %s6737_s13, %s6111_s11  ;;  %p6115_p12 = scmp.lt.u32.totalorder %s6111_s11, %s6737_s13 }
 0xbb8   :  { %p6117_p13 = pnand %p6115_p12, %p6112_p11 }
 0xbba   :  { %6120 = shalt.err (!%p6117_p13)
}
 0xbbb   :  { %3654 = dma.vmem_to_hbm [thread:$0]  %s6686_s18, 256, %s6737_s13, [#allocation19], %s6745_s27, %s6745_s27, %s6744_s23  }
 0xbbc   :  { %6131 = dma.done.wait [#allocation4], 256  }
 0xbbd   :  { %6132 = vsyncadd [#allocation4], 4294967040 }
 0xbbe   :  { %6133 = dma.done.wait [#allocation19], 768  }
 0xbbf   :  { %6134 = vsyncadd [#allocation19], 4294966528 }
 0xbc0   :  { %6135 = dma.done.wait [#allocation22], 512  }
 0xbc1   :  { %6136 = vsyncadd [#allocation22], 4294966784 }
 0xbc2   :  { %3694 = vsyncpa [#allocation3], 1 }
 0xbc3   :  { %3695 = vsyncpa [#allocation6], 1 }
 0xbc4   :  { %3696 = vsyncpa [#allocation9], 1 }
 0xbc5   :  { %3697 = vsyncpa [#allocation12], 1 }
 0xbc6   :  { %3698 = vsyncpa [#allocation15], 1 }
 0xbc7   :  { %3699 = vsyncpa [#allocation4], 1 }
 0xbc8   :  { %3700 = vsyncpa [#allocation19], 1 }
 0xbc9   :  { %3701 = vsyncpa [#allocation22], 1 }

</bundles_post_ra>
